<compile_context>
chip_gen: v7x
topology: tpu7x:2x2x1
jax: 0.10.0
libtpu: 0.0.40
codegen_flags: <defaults>
</compile_context>

<pallas_src>
import jax
import jax.numpy as jnp
from jax import lax
from jax.experimental import pallas as pl
from jax.experimental.pallas import tpu as pltpu


# ------------------------------------------------------------------ kernel ----
def _make_basic_block_kernel(H, W, Cin, Cout, has_downsample):
    HW = H * W

    def kernel(*refs):
        if has_downsample:
            (x_ref, w1_ref, s1_ref, w2_ref, s2_ref, wd_ref, sd_ref,
             o_ref, xpad_ref, ypad_ref) = refs
        else:
            (x_ref, w1_ref, s1_ref, w2_ref, s2_ref,
             o_ref, xpad_ref, ypad_ref) = refs
            wd_ref = sd_ref = None

        # ---- stage zero-padded input (f32 staging, bf16 fed to the MXU) ----
        xpad_ref[...] = jnp.zeros_like(xpad_ref)
        x_f32 = x_ref[0].astype(jnp.float32)                      # (H, W, Cin)
        xpad_ref[pl.ds(1, H), pl.ds(1, W), :] = x_f32

        s1 = s1_ref[...]
        scale1, shift1 = s1[0:1, :], s1[1:2, :]                   # (1, Cout)
        s2 = s2_ref[...]
        scale2, shift2 = s2[0:1, :], s2[1:2, :]

        # ---- conv1 (3x3, pad 1) + bn1 + relu --------------------------------
        acc1 = jnp.zeros((HW, Cout), jnp.float32)
        for kh in range(3):
            for kw in range(3):
                tap = (xpad_ref[pl.ds(kh, H), pl.ds(kw, W), :]
                       .reshape(HW, Cin).astype(jnp.bfloat16))
                acc1 = acc1 + jnp.dot(tap, w1_ref[kh * 3 + kw],
                                      preferred_element_type=jnp.float32)
        y1 = jnp.maximum(acc1 * scale1 + shift1, 0.0)             # (HW, Cout) f32

        # ---- stage zero-padded conv1 output ---------------------------------
        ypad_ref[...] = jnp.zeros_like(ypad_ref)
        ypad_ref[pl.ds(1, H), pl.ds(1, W), :] = y1.reshape(H, W, Cout)

        # ---- conv2 (3x3, pad 1) + bn2 ---------------------------------------
        acc2 = jnp.zeros((HW, Cout), jnp.float32)
        for kh in range(3):
            for kw in range(3):
                tap = (ypad_ref[pl.ds(kh, H), pl.ds(kw, W), :]
                       .reshape(HW, Cout).astype(jnp.bfloat16))
                acc2 = acc2 + jnp.dot(tap, w2_ref[kh * 3 + kw],
                                      preferred_element_type=jnp.float32)
        y2 = acc2 * scale2 + shift2

        # ---- shortcut (identity or 1x1-conv projection + bn) + relu ---------
        if has_downsample:
            xb = x_ref[0].reshape(HW, Cin)                        # bf16
            idn = jnp.dot(xb, wd_ref[...], preferred_element_type=jnp.float32)
            sd = sd_ref[...]
            idn = idn * sd[0:1, :] + sd[1:2, :]
        else:
            idn = x_ref[0].astype(jnp.float32).reshape(HW, Cout)

        out = jnp.maximum(y2 + idn, 0.0)
        o_ref[0] = out.reshape(H, W, Cout)

    return kernel


# ----------------------------------------------------------------- wrapper ----
def basic_block_forward(x_nchw, kp):
    """x_nchw: (N, Cin, H, W) float32 -> (N, Cout, H, W) float32. stride == 1."""
    N, Cin, H, W = x_nchw.shape
    Cout = kp["w1"].shape[2]
    has_ds = "wd" in kp

    x_nhwc = jnp.transpose(x_nchw, (0, 2, 3, 1)).astype(jnp.bfloat16)
    kernel = _make_basic_block_kernel(H, W, Cin, Cout, has_ds)

    in_specs = [
        pl.BlockSpec((1, H, W, Cin), lambda i: (i, 0, 0, 0)),
        pl.BlockSpec((9, Cin, Cout), lambda i: (0, 0, 0)),
        pl.BlockSpec((2, Cout), lambda i: (0, 0)),
        pl.BlockSpec((9, Cout, Cout), lambda i: (0, 0, 0)),
        pl.BlockSpec((2, Cout), lambda i: (0, 0)),
    ]
    args = [x_nhwc, kp["w1"], kp["s1"], kp["w2"], kp["s2"]]
    if has_ds:
        in_specs += [
            pl.BlockSpec((Cin, Cout), lambda i: (0, 0)),
            pl.BlockSpec((2, Cout), lambda i: (0, 0)),
        ]
        args += [kp["wd"], kp["sd"]]

    out_nhwc = pl.pallas_call(
        kernel,
        out_shape=jax.ShapeDtypeStruct((N, H, W, Cout), jnp.float32),
        grid=(N,),
        in_specs=in_specs,
        out_specs=pl.BlockSpec((1, H, W, Cout), lambda i: (i, 0, 0, 0)),
        scratch_shapes=[
            pltpu.VMEM((H + 2, W + 2, Cin), jnp.float32),   # padded input
            pltpu.VMEM((H + 2, W + 2, Cout), jnp.float32),  # padded conv1 out
        ],
        compiler_params=pltpu.CompilerParams(dimension_semantics=("parallel",)),
    )(*args)
    return jnp.transpose(out_nhwc, (0, 3, 1, 2))


# --------------------------------------------------- parameter preparation ----
def _fold_bn(gamma, beta, mean, var, eps=1e-5):
    scale = gamma / jnp.sqrt(var + eps)
    return jnp.stack([scale, beta - mean * scale], axis=0).astype(jnp.float32)


def to_kernel_params(rp):
    cout, cin = rp["conv1_w"].shape[0], rp["conv1_w"].shape[1]
    kp = dict(
        # torch (Cout, Cin, kh, kw) -> (kh*3+kw, Cin, Cout), bf16 for streaming
        w1=jnp.transpose(rp["conv1_w"], (2, 3, 1, 0)).reshape(9, cin, cout)
            .astype(jnp.bfloat16),
        s1=_fold_bn(*rp["bn1"]),
        w2=jnp.transpose(rp["conv2_w"], (2, 3, 1, 0)).reshape(9, cout, cout)
            .astype(jnp.bfloat16),
        s2=_fold_bn(*rp["bn2"]),
    )
    if "down_w" in rp:
        kp["wd"] = rp["down_w"][:, :, 0, 0].T.astype(jnp.bfloat16)
        kp["sd"] = _fold_bn(*rp["bn_d"])
    return kp


def init_params(key, cin, cout):
    ks = jax.random.split(key, 6)

    def uconv(k, shape, fan_in):
        b = 1.0 / jnp.sqrt(float(fan_in))
        return jax.random.uniform(k, shape, jnp.float32, -b, b)

    def bn_params(k):
        k1, k2, k3, k4 = jax.random.split(k, 4)
        gamma = jax.random.uniform(k1, (cout,), jnp.float32, 0.5, 1.5)
        beta = jax.random.uniform(k2, (cout,), jnp.float32, -0.5, 0.5)
        mean = jax.random.normal(k3, (cout,), jnp.float32) * 0.3
        var = jax.random.uniform(k4, (cout,), jnp.float32, 0.5, 1.5)
        return (gamma, beta, mean, var)

    rp = dict(
        conv1_w=uconv(ks[0], (cout, cin, 3, 3), cin * 9),
        bn1=bn_params(ks[1]),
        conv2_w=uconv(ks[2], (cout, cout, 3, 3), cout * 9),
        bn2=bn_params(ks[3]),
    )
    if cin != cout:
        rp["down_w"] = uconv(ks[4], (cout, cin, 1, 1), cin)
        rp["bn_d"] = bn_params(ks[5])
    return rp


# ------------------------------------------- plain-JAX reference (NCHW) -------
def reference_forward(x, rp):
    def bn(y, gamma, beta, mean, var, eps=1e-5):
        s = gamma / jnp.sqrt(var + eps)
        return y * s[None, :, None, None] + (beta - mean * s)[None, :, None, None]

    dn = ("NCHW", "OIHW", "NCHW")
    xb = x.astype(jnp.bfloat16)

    out = lax.conv_general_dilated(
        xb, rp["conv1_w"].astype(jnp.bfloat16), (1, 1), ((1, 1), (1, 1)),
        dimension_numbers=dn, preferred_element_type=jnp.float32)
    out = jnp.maximum(bn(out, *rp["bn1"]), 0.0)
    out = lax.conv_general_dilated(
        out.astype(jnp.bfloat16), rp["conv2_w"].astype(jnp.bfloat16),
        (1, 1), ((1, 1), (1, 1)),
        dimension_numbers=dn, preferred_element_type=jnp.float32)
    out = bn(out, *rp["bn2"])

    if "down_w" in rp:
        idn = lax.conv_general_dilated(
            xb, rp["down_w"].astype(jnp.bfloat16), (1, 1), ((0, 0), (0, 0)),
            dimension_numbers=dn, preferred_element_type=jnp.float32)
        idn = bn(idn, *rp["bn_d"])
    else:
        idn = xb.astype(jnp.float32)
    return jnp.maximum(out + idn, 0.0)


# --------------------------------------------------------------------- main ---
if __name__ == "__main__":
    key = jax.random.PRNGKey(0)
    N, H, W = 2, 16, 16
    # (Cin, Cout): projection-shortcut block and identity-shortcut block
    configs = [(32, 64), (64, 64)]

    for idx, (cin, cout) in enumerate(configs):
        kparam, kdata = jax.random.split(jax.random.fold_in(key, idx))
        torch_params = init_params(kparam, cin, cout)
        kernel_params = to_kernel_params(torch_params)

        x = jax.random.normal(kdata, (N, cin, H, W), jnp.float32)

        fwd = jax.jit(lambda xx: basic_block_forward(xx, kernel_params))
        out = jax.block_until_ready(fwd(x))
        assert out.shape == (N, cout, H, W)

        ref = reference_forward(x, torch_params)
        err = jnp.max(jnp.abs(out - ref))
        if not jnp.allclose(out, ref, rtol=2e-3, atol=2e-3):
            raise AssertionError(
                f"kernel/reference mismatch (Cin={cin}, Cout={cout}): "
                f"max abs err = {err}")

    print("KERNEL_OK")
</pallas_src>

<mosaic_0001>
module attributes {stable_mosaic.version = 11 : i64} {
  func.func @kernel(%arg0: i32, %arg1: memref<1x16x16x32xbf16, #tpu.memory_space<vmem>>, %arg2: memref<9x32x64xbf16, #tpu.memory_space<vmem>>, %arg3: memref<2x64xf32, #tpu.memory_space<vmem>>, %arg4: memref<9x64x64xbf16, #tpu.memory_space<vmem>>, %arg5: memref<2x64xf32, #tpu.memory_space<vmem>>, %arg6: memref<32x64xbf16, #tpu.memory_space<vmem>>, %arg7: memref<2x64xf32, #tpu.memory_space<vmem>>, %arg8: memref<1x16x16x64xf32, #tpu.memory_space<vmem>>, %arg9: memref<18x18x32xf32, #tpu.memory_space<vmem>>, %arg10: memref<18x18x64xf32, #tpu.memory_space<vmem>>) attributes {dimension_semantics = [#tpu.dimension_semantics<parallel>], iteration_bounds = array<i64: 2>, scalar_prefetch = 0 : i64, scratch_operands = 2 : i64, tpu.core_type = #tpu.core_type<tc>, window_params = [{transform_indices = @transform_0, window_bounds = array<i64: 1, 16, 16, 32>}, {pipeline_mode = #tpu.pipeline_mode<synchronous>, transform_indices = @transform_1, window_bounds = array<i64: 9, 32, 64>}, {pipeline_mode = #tpu.pipeline_mode<synchronous>, transform_indices = @transform_2, window_bounds = array<i64: 2, 64>}, {pipeline_mode = #tpu.pipeline_mode<synchronous>, transform_indices = @transform_3, window_bounds = array<i64: 9, 64, 64>}, {pipeline_mode = #tpu.pipeline_mode<synchronous>, transform_indices = @transform_4, window_bounds = array<i64: 2, 64>}, {pipeline_mode = #tpu.pipeline_mode<synchronous>, transform_indices = @transform_5, window_bounds = array<i64: 32, 64>}, {pipeline_mode = #tpu.pipeline_mode<synchronous>, transform_indices = @transform_6, window_bounds = array<i64: 2, 64>}, {transform_indices = @transform_7, window_bounds = array<i64: 1, 16, 16, 64>}]} {
    %cst = arith.constant 0.000000e+00 : f32
    %0 = vector.broadcast %cst : f32 to vector<18x18x32xf32>
    %c0 = arith.constant 0 : index
    %c0_0 = arith.constant 0 : index
    %c0_1 = arith.constant 0 : index
    %1 = vector.load %arg9[%c0, %c0_0, %c0_1] : memref<18x18x32xf32, #tpu.memory_space<vmem>>, vector<18x18x32xf32>
    tpu.vector_store %arg9[%c0, %c0_0, %c0_1], %0 {strides = array<i32>} : memref<18x18x32xf32, #tpu.memory_space<vmem>>, vector<18x18x32xf32>,
    %c0_2 = arith.constant 0 : index
    %c0_3 = arith.constant 0 : index
    %c0_4 = arith.constant 0 : index
    %c0_5 = arith.constant 0 : index
    %2 = vector.load %arg1[%c0_2, %c0_3, %c0_4, %c0_5] : memref<1x16x16x32xbf16, #tpu.memory_space<vmem>>, vector<1x16x16x32xbf16>
    %3 = vector.shape_cast %2 : vector<1x16x16x32xbf16> to vector<16x16x32xbf16>
    %4 = arith.extf %3 : vector<16x16x32xbf16> to vector<16x16x32xf32>
    %c1 = arith.constant 1 : index
    %c1_6 = arith.constant 1 : index
    %c0_7 = arith.constant 0 : index
    %5 = vector.load %arg9[%c1, %c1_6, %c0_7] : memref<18x18x32xf32, #tpu.memory_space<vmem>>, vector<16x16x32xf32>
    tpu.vector_store %arg9[%c1, %c1_6, %c0_7], %4 {strides = array<i32>} : memref<18x18x32xf32, #tpu.memory_space<vmem>>, vector<16x16x32xf32>,
    %c0_8 = arith.constant 0 : index
    %c0_9 = arith.constant 0 : index
    %6 = vector.load %arg3[%c0_8, %c0_9] : memref<2x64xf32, #tpu.memory_space<vmem>>, vector<2x64xf32>
    %7 = vector.extract_strided_slice %6 {offsets = [0, 0], sizes = [1, 64], strides = [1, 1]} : vector<2x64xf32> to vector<1x64xf32>
    %8 = vector.extract_strided_slice %6 {offsets = [1, 0], sizes = [1, 64], strides = [1, 1]} : vector<2x64xf32> to vector<1x64xf32>
    %c0_10 = arith.constant 0 : index
    %c0_11 = arith.constant 0 : index
    %9 = vector.load %arg5[%c0_10, %c0_11] : memref<2x64xf32, #tpu.memory_space<vmem>>, vector<2x64xf32>
    %10 = vector.extract_strided_slice %9 {offsets = [0, 0], sizes = [1, 64], strides = [1, 1]} : vector<2x64xf32> to vector<1x64xf32>
    %11 = vector.extract_strided_slice %9 {offsets = [1, 0], sizes = [1, 64], strides = [1, 1]} : vector<2x64xf32> to vector<1x64xf32>
    %cst_12 = arith.constant 0.000000e+00 : f32
    %12 = vector.broadcast %cst_12 : f32 to vector<256x64xf32>
    %c0_13 = arith.constant 0 : index
    %c0_14 = arith.constant 0 : index
    %c0_15 = arith.constant 0 : index
    %13 = vector.load %arg9[%c0_13, %c0_14, %c0_15] : memref<18x18x32xf32, #tpu.memory_space<vmem>>, vector<16x16x32xf32>
    %14 = vector.shape_cast %13 : vector<16x16x32xf32> to vector<256x32xf32>
    %15 = arith.truncf %14 : vector<256x32xf32> to vector<256x32xbf16>
    %c0_16 = arith.constant 0 : index
    %c0_17 = arith.constant 0 : index
    %c0_18 = arith.constant 0 : index
    %16 = vector.load %arg2[%c0_16, %c0_17, %c0_18] : memref<9x32x64xbf16, #tpu.memory_space<vmem>>, vector<1x32x64xbf16>
    %17 = vector.shape_cast %16 : vector<1x32x64xbf16> to vector<32x64xbf16>
    %cst_19 = arith.constant dense<0.000000e+00> : vector<256x64xf32>
    %18 = tpu.matmul %15, %17, %cst_19 {dimension_numbers = #tpu.dot_dimension_numbers<[1], [0], [0], [1], [0, 0, 1, 1], [], []>} : vector<256x32xbf16>, vector<32x64xbf16>, vector<256x64xf32> -> vector<256x64xf32>
    %19 = arith.addf %12, %18 : vector<256x64xf32>
    %c0_20 = arith.constant 0 : index
    %c1_21 = arith.constant 1 : index
    %c0_22 = arith.constant 0 : index
    %20 = vector.load %arg9[%c0_20, %c1_21, %c0_22] : memref<18x18x32xf32, #tpu.memory_space<vmem>>, vector<16x16x32xf32>
    %21 = vector.shape_cast %20 : vector<16x16x32xf32> to vector<256x32xf32>
    %22 = arith.truncf %21 : vector<256x32xf32> to vector<256x32xbf16>
    %c1_23 = arith.constant 1 : index
    %c0_24 = arith.constant 0 : index
    %c0_25 = arith.constant 0 : index
    %23 = vector.load %arg2[%c1_23, %c0_24, %c0_25] : memref<9x32x64xbf16, #tpu.memory_space<vmem>>, vector<1x32x64xbf16>
    %24 = vector.shape_cast %23 : vector<1x32x64xbf16> to vector<32x64xbf16>
    %cst_26 = arith.constant dense<0.000000e+00> : vector<256x64xf32>
    %25 = tpu.matmul %22, %24, %cst_26 {dimension_numbers = #tpu.dot_dimension_numbers<[1], [0], [0], [1], [0, 0, 1, 1], [], []>} : vector<256x32xbf16>, vector<32x64xbf16>, vector<256x64xf32> -> vector<256x64xf32>
    %26 = arith.addf %19, %25 : vector<256x64xf32>
    %c0_27 = arith.constant 0 : index
    %c2 = arith.constant 2 : index
    %c0_28 = arith.constant 0 : index
    %27 = vector.load %arg9[%c0_27, %c2, %c0_28] : memref<18x18x32xf32, #tpu.memory_space<vmem>>, vector<16x16x32xf32>
    %28 = vector.shape_cast %27 : vector<16x16x32xf32> to vector<256x32xf32>
    %29 = arith.truncf %28 : vector<256x32xf32> to vector<256x32xbf16>
    %c2_29 = arith.constant 2 : index
    %c0_30 = arith.constant 0 : index
    %c0_31 = arith.constant 0 : index
    %30 = vector.load %arg2[%c2_29, %c0_30, %c0_31] : memref<9x32x64xbf16, #tpu.memory_space<vmem>>, vector<1x32x64xbf16>
    %31 = vector.shape_cast %30 : vector<1x32x64xbf16> to vector<32x64xbf16>
    %cst_32 = arith.constant dense<0.000000e+00> : vector<256x64xf32>
    %32 = tpu.matmul %29, %31, %cst_32 {dimension_numbers = #tpu.dot_dimension_numbers<[1], [0], [0], [1], [0, 0, 1, 1], [], []>} : vector<256x32xbf16>, vector<32x64xbf16>, vector<256x64xf32> -> vector<256x64xf32>
    %33 = arith.addf %26, %32 : vector<256x64xf32>
    %c1_33 = arith.constant 1 : index
    %c0_34 = arith.constant 0 : index
    %c0_35 = arith.constant 0 : index
    %34 = vector.load %arg9[%c1_33, %c0_34, %c0_35] : memref<18x18x32xf32, #tpu.memory_space<vmem>>, vector<16x16x32xf32>
    %35 = vector.shape_cast %34 : vector<16x16x32xf32> to vector<256x32xf32>
    %36 = arith.truncf %35 : vector<256x32xf32> to vector<256x32xbf16>
    %c3 = arith.constant 3 : index
    %c0_36 = arith.constant 0 : index
    %c0_37 = arith.constant 0 : index
    %37 = vector.load %arg2[%c3, %c0_36, %c0_37] : memref<9x32x64xbf16, #tpu.memory_space<vmem>>, vector<1x32x64xbf16>
    %38 = vector.shape_cast %37 : vector<1x32x64xbf16> to vector<32x64xbf16>
    %cst_38 = arith.constant dense<0.000000e+00> : vector<256x64xf32>
    %39 = tpu.matmul %36, %38, %cst_38 {dimension_numbers = #tpu.dot_dimension_numbers<[1], [0], [0], [1], [0, 0, 1, 1], [], []>} : vector<256x32xbf16>, vector<32x64xbf16>, vector<256x64xf32> -> vector<256x64xf32>
    %40 = arith.addf %33, %39 : vector<256x64xf32>
    %c1_39 = arith.constant 1 : index
    %c1_40 = arith.constant 1 : index
    %c0_41 = arith.constant 0 : index
    %41 = vector.load %arg9[%c1_39, %c1_40, %c0_41] : memref<18x18x32xf32, #tpu.memory_space<vmem>>, vector<16x16x32xf32>
    %42 = vector.shape_cast %41 : vector<16x16x32xf32> to vector<256x32xf32>
    %43 = arith.truncf %42 : vector<256x32xf32> to vector<256x32xbf16>
    %c4 = arith.constant 4 : index
    %c0_42 = arith.constant 0 : index
    %c0_43 = arith.constant 0 : index
    %44 = vector.load %arg2[%c4, %c0_42, %c0_43] : memref<9x32x64xbf16, #tpu.memory_space<vmem>>, vector<1x32x64xbf16>
    %45 = vector.shape_cast %44 : vector<1x32x64xbf16> to vector<32x64xbf16>
    %cst_44 = arith.constant dense<0.000000e+00> : vector<256x64xf32>
    %46 = tpu.matmul %43, %45, %cst_44 {dimension_numbers = #tpu.dot_dimension_numbers<[1], [0], [0], [1], [0, 0, 1, 1], [], []>} : vector<256x32xbf16>, vector<32x64xbf16>, vector<256x64xf32> -> vector<256x64xf32>
    %47 = arith.addf %40, %46 : vector<256x64xf32>
    %c1_45 = arith.constant 1 : index
    %c2_46 = arith.constant 2 : index
    %c0_47 = arith.constant 0 : index
    %48 = vector.load %arg9[%c1_45, %c2_46, %c0_47] : memref<18x18x32xf32, #tpu.memory_space<vmem>>, vector<16x16x32xf32>
    %49 = vector.shape_cast %48 : vector<16x16x32xf32> to vector<256x32xf32>
    %50 = arith.truncf %49 : vector<256x32xf32> to vector<256x32xbf16>
    %c5 = arith.constant 5 : index
    %c0_48 = arith.constant 0 : index
    %c0_49 = arith.constant 0 : index
    %51 = vector.load %arg2[%c5, %c0_48, %c0_49] : memref<9x32x64xbf16, #tpu.memory_space<vmem>>, vector<1x32x64xbf16>
    %52 = vector.shape_cast %51 : vector<1x32x64xbf16> to vector<32x64xbf16>
    %cst_50 = arith.constant dense<0.000000e+00> : vector<256x64xf32>
    %53 = tpu.matmul %50, %52, %cst_50 {dimension_numbers = #tpu.dot_dimension_numbers<[1], [0], [0], [1], [0, 0, 1, 1], [], []>} : vector<256x32xbf16>, vector<32x64xbf16>, vector<256x64xf32> -> vector<256x64xf32>
    %54 = arith.addf %47, %53 : vector<256x64xf32>
    %c2_51 = arith.constant 2 : index
    %c0_52 = arith.constant 0 : index
    %c0_53 = arith.constant 0 : index
    %55 = vector.load %arg9[%c2_51, %c0_52, %c0_53] : memref<18x18x32xf32, #tpu.memory_space<vmem>>, vector<16x16x32xf32>
    %56 = vector.shape_cast %55 : vector<16x16x32xf32> to vector<256x32xf32>
    %57 = arith.truncf %56 : vector<256x32xf32> to vector<256x32xbf16>
    %c6 = arith.constant 6 : index
    %c0_54 = arith.constant 0 : index
    %c0_55 = arith.constant 0 : index
    %58 = vector.load %arg2[%c6, %c0_54, %c0_55] : memref<9x32x64xbf16, #tpu.memory_space<vmem>>, vector<1x32x64xbf16>
    %59 = vector.shape_cast %58 : vector<1x32x64xbf16> to vector<32x64xbf16>
    %cst_56 = arith.constant dense<0.000000e+00> : vector<256x64xf32>
    %60 = tpu.matmul %57, %59, %cst_56 {dimension_numbers = #tpu.dot_dimension_numbers<[1], [0], [0], [1], [0, 0, 1, 1], [], []>} : vector<256x32xbf16>, vector<32x64xbf16>, vector<256x64xf32> -> vector<256x64xf32>
    %61 = arith.addf %54, %60 : vector<256x64xf32>
    %c2_57 = arith.constant 2 : index
    %c1_58 = arith.constant 1 : index
    %c0_59 = arith.constant 0 : index
    %62 = vector.load %arg9[%c2_57, %c1_58, %c0_59] : memref<18x18x32xf32, #tpu.memory_space<vmem>>, vector<16x16x32xf32>
    %63 = vector.shape_cast %62 : vector<16x16x32xf32> to vector<256x32xf32>
    %64 = arith.truncf %63 : vector<256x32xf32> to vector<256x32xbf16>
    %c7 = arith.constant 7 : index
    %c0_60 = arith.constant 0 : index
    %c0_61 = arith.constant 0 : index
    %65 = vector.load %arg2[%c7, %c0_60, %c0_61] : memref<9x32x64xbf16, #tpu.memory_space<vmem>>, vector<1x32x64xbf16>
    %66 = vector.shape_cast %65 : vector<1x32x64xbf16> to vector<32x64xbf16>
    %cst_62 = arith.constant dense<0.000000e+00> : vector<256x64xf32>
    %67 = tpu.matmul %64, %66, %cst_62 {dimension_numbers = #tpu.dot_dimension_numbers<[1], [0], [0], [1], [0, 0, 1, 1], [], []>} : vector<256x32xbf16>, vector<32x64xbf16>, vector<256x64xf32> -> vector<256x64xf32>
    %68 = arith.addf %61, %67 : vector<256x64xf32>
    %c2_63 = arith.constant 2 : index
    %c2_64 = arith.constant 2 : index
    %c0_65 = arith.constant 0 : index
    %69 = vector.load %arg9[%c2_63, %c2_64, %c0_65] : memref<18x18x32xf32, #tpu.memory_space<vmem>>, vector<16x16x32xf32>
    %70 = vector.shape_cast %69 : vector<16x16x32xf32> to vector<256x32xf32>
    %71 = arith.truncf %70 : vector<256x32xf32> to vector<256x32xbf16>
    %c8 = arith.constant 8 : index
    %c0_66 = arith.constant 0 : index
    %c0_67 = arith.constant 0 : index
    %72 = vector.load %arg2[%c8, %c0_66, %c0_67] : memref<9x32x64xbf16, #tpu.memory_space<vmem>>, vector<1x32x64xbf16>
    %73 = vector.shape_cast %72 : vector<1x32x64xbf16> to vector<32x64xbf16>
    %cst_68 = arith.constant dense<0.000000e+00> : vector<256x64xf32>
    %74 = tpu.matmul %71, %73, %cst_68 {dimension_numbers = #tpu.dot_dimension_numbers<[1], [0], [0], [1], [0, 0, 1, 1], [], []>} : vector<256x32xbf16>, vector<32x64xbf16>, vector<256x64xf32> -> vector<256x64xf32>
    %75 = arith.addf %68, %74 : vector<256x64xf32>
    %76 = vector.broadcast %7 : vector<1x64xf32> to vector<256x64xf32>
    %77 = arith.mulf %75, %76 : vector<256x64xf32>
    %78 = vector.broadcast %8 : vector<1x64xf32> to vector<256x64xf32>
    %79 = arith.addf %77, %78 : vector<256x64xf32>
    %cst_69 = arith.constant 0.000000e+00 : f32
    %80 = vector.broadcast %cst_69 : f32 to vector<256x64xf32>
    %81 = arith.maximumf %79, %80 : vector<256x64xf32>
    %cst_70 = arith.constant 0.000000e+00 : f32
    %82 = vector.broadcast %cst_70 : f32 to vector<18x18x64xf32>
    %c0_71 = arith.constant 0 : index
    %c0_72 = arith.constant 0 : index
    %c0_73 = arith.constant 0 : index
    %83 = vector.load %arg10[%c0_71, %c0_72, %c0_73] : memref<18x18x64xf32, #tpu.memory_space<vmem>>, vector<18x18x64xf32>
    tpu.vector_store %arg10[%c0_71, %c0_72, %c0_73], %82 {strides = array<i32>} : memref<18x18x64xf32, #tpu.memory_space<vmem>>, vector<18x18x64xf32>,
    %84 = vector.shape_cast %81 : vector<256x64xf32> to vector<16x16x64xf32>
    %c1_74 = arith.constant 1 : index
    %c1_75 = arith.constant 1 : index
    %c0_76 = arith.constant 0 : index
    %85 = vector.load %arg10[%c1_74, %c1_75, %c0_76] : memref<18x18x64xf32, #tpu.memory_space<vmem>>, vector<16x16x64xf32>
    tpu.vector_store %arg10[%c1_74, %c1_75, %c0_76], %84 {strides = array<i32>} : memref<18x18x64xf32, #tpu.memory_space<vmem>>, vector<16x16x64xf32>,
    %cst_77 = arith.constant 0.000000e+00 : f32
    %86 = vector.broadcast %cst_77 : f32 to vector<256x64xf32>
    %c0_78 = arith.constant 0 : index
    %c0_79 = arith.constant 0 : index
    %c0_80 = arith.constant 0 : index
    %87 = vector.load %arg10[%c0_78, %c0_79, %c0_80] : memref<18x18x64xf32, #tpu.memory_space<vmem>>, vector<16x16x64xf32>
    %88 = vector.shape_cast %87 : vector<16x16x64xf32> to vector<256x64xf32>
    %89 = arith.truncf %88 : vector<256x64xf32> to vector<256x64xbf16>
    %c0_81 = arith.constant 0 : index
    %c0_82 = arith.constant 0 : index
    %c0_83 = arith.constant 0 : index
    %90 = vector.load %arg4[%c0_81, %c0_82, %c0_83] : memref<9x64x64xbf16, #tpu.memory_space<vmem>>, vector<1x64x64xbf16>
    %91 = vector.shape_cast %90 : vector<1x64x64xbf16> to vector<64x64xbf16>
    %cst_84 = arith.constant dense<0.000000e+00> : vector<256x64xf32>
    %92 = tpu.matmul %89, %91, %cst_84 {dimension_numbers = #tpu.dot_dimension_numbers<[1], [0], [0], [1], [0, 0, 1, 1], [], []>} : vector<256x64xbf16>, vector<64x64xbf16>, vector<256x64xf32> -> vector<256x64xf32>
    %93 = arith.addf %86, %92 : vector<256x64xf32>
    %c0_85 = arith.constant 0 : index
    %c1_86 = arith.constant 1 : index
    %c0_87 = arith.constant 0 : index
    %94 = vector.load %arg10[%c0_85, %c1_86, %c0_87] : memref<18x18x64xf32, #tpu.memory_space<vmem>>, vector<16x16x64xf32>
    %95 = vector.shape_cast %94 : vector<16x16x64xf32> to vector<256x64xf32>
    %96 = arith.truncf %95 : vector<256x64xf32> to vector<256x64xbf16>
    %c1_88 = arith.constant 1 : index
    %c0_89 = arith.constant 0 : index
    %c0_90 = arith.constant 0 : index
    %97 = vector.load %arg4[%c1_88, %c0_89, %c0_90] : memref<9x64x64xbf16, #tpu.memory_space<vmem>>, vector<1x64x64xbf16>
    %98 = vector.shape_cast %97 : vector<1x64x64xbf16> to vector<64x64xbf16>
    %cst_91 = arith.constant dense<0.000000e+00> : vector<256x64xf32>
    %99 = tpu.matmul %96, %98, %cst_91 {dimension_numbers = #tpu.dot_dimension_numbers<[1], [0], [0], [1], [0, 0, 1, 1], [], []>} : vector<256x64xbf16>, vector<64x64xbf16>, vector<256x64xf32> -> vector<256x64xf32>
    %100 = arith.addf %93, %99 : vector<256x64xf32>
    %c0_92 = arith.constant 0 : index
    %c2_93 = arith.constant 2 : index
    %c0_94 = arith.constant 0 : index
    %101 = vector.load %arg10[%c0_92, %c2_93, %c0_94] : memref<18x18x64xf32, #tpu.memory_space<vmem>>, vector<16x16x64xf32>
    %102 = vector.shape_cast %101 : vector<16x16x64xf32> to vector<256x64xf32>
    %103 = arith.truncf %102 : vector<256x64xf32> to vector<256x64xbf16>
    %c2_95 = arith.constant 2 : index
    %c0_96 = arith.constant 0 : index
    %c0_97 = arith.constant 0 : index
    %104 = vector.load %arg4[%c2_95, %c0_96, %c0_97] : memref<9x64x64xbf16, #tpu.memory_space<vmem>>, vector<1x64x64xbf16>
    %105 = vector.shape_cast %104 : vector<1x64x64xbf16> to vector<64x64xbf16>
    %cst_98 = arith.constant dense<0.000000e+00> : vector<256x64xf32>
    %106 = tpu.matmul %103, %105, %cst_98 {dimension_numbers = #tpu.dot_dimension_numbers<[1], [0], [0], [1], [0, 0, 1, 1], [], []>} : vector<256x64xbf16>, vector<64x64xbf16>, vector<256x64xf32> -> vector<256x64xf32>
    %107 = arith.addf %100, %106 : vector<256x64xf32>
    %c1_99 = arith.constant 1 : index
    %c0_100 = arith.constant 0 : index
    %c0_101 = arith.constant 0 : index
    %108 = vector.load %arg10[%c1_99, %c0_100, %c0_101] : memref<18x18x64xf32, #tpu.memory_space<vmem>>, vector<16x16x64xf32>
    %109 = vector.shape_cast %108 : vector<16x16x64xf32> to vector<256x64xf32>
    %110 = arith.truncf %109 : vector<256x64xf32> to vector<256x64xbf16>
    %c3_102 = arith.constant 3 : index
    %c0_103 = arith.constant 0 : index
    %c0_104 = arith.constant 0 : index
    %111 = vector.load %arg4[%c3_102, %c0_103, %c0_104] : memref<9x64x64xbf16, #tpu.memory_space<vmem>>, vector<1x64x64xbf16>
    %112 = vector.shape_cast %111 : vector<1x64x64xbf16> to vector<64x64xbf16>
    %cst_105 = arith.constant dense<0.000000e+00> : vector<256x64xf32>
    %113 = tpu.matmul %110, %112, %cst_105 {dimension_numbers = #tpu.dot_dimension_numbers<[1], [0], [0], [1], [0, 0, 1, 1], [], []>} : vector<256x64xbf16>, vector<64x64xbf16>, vector<256x64xf32> -> vector<256x64xf32>
    %114 = arith.addf %107, %113 : vector<256x64xf32>
    %c1_106 = arith.constant 1 : index
    %c1_107 = arith.constant 1 : index
    %c0_108 = arith.constant 0 : index
    %115 = vector.load %arg10[%c1_106, %c1_107, %c0_108] : memref<18x18x64xf32, #tpu.memory_space<vmem>>, vector<16x16x64xf32>
    %116 = vector.shape_cast %115 : vector<16x16x64xf32> to vector<256x64xf32>
    %117 = arith.truncf %116 : vector<256x64xf32> to vector<256x64xbf16>
    %c4_109 = arith.constant 4 : index
    %c0_110 = arith.constant 0 : index
    %c0_111 = arith.constant 0 : index
    %118 = vector.load %arg4[%c4_109, %c0_110, %c0_111] : memref<9x64x64xbf16, #tpu.memory_space<vmem>>, vector<1x64x64xbf16>
    %119 = vector.shape_cast %118 : vector<1x64x64xbf16> to vector<64x64xbf16>
    %cst_112 = arith.constant dense<0.000000e+00> : vector<256x64xf32>
    %120 = tpu.matmul %117, %119, %cst_112 {dimension_numbers = #tpu.dot_dimension_numbers<[1], [0], [0], [1], [0, 0, 1, 1], [], []>} : vector<256x64xbf16>, vector<64x64xbf16>, vector<256x64xf32> -> vector<256x64xf32>
    %121 = arith.addf %114, %120 : vector<256x64xf32>
    %c1_113 = arith.constant 1 : index
    %c2_114 = arith.constant 2 : index
    %c0_115 = arith.constant 0 : index
    %122 = vector.load %arg10[%c1_113, %c2_114, %c0_115] : memref<18x18x64xf32, #tpu.memory_space<vmem>>, vector<16x16x64xf32>
    %123 = vector.shape_cast %122 : vector<16x16x64xf32> to vector<256x64xf32>
    %124 = arith.truncf %123 : vector<256x64xf32> to vector<256x64xbf16>
    %c5_116 = arith.constant 5 : index
    %c0_117 = arith.constant 0 : index
    %c0_118 = arith.constant 0 : index
    %125 = vector.load %arg4[%c5_116, %c0_117, %c0_118] : memref<9x64x64xbf16, #tpu.memory_space<vmem>>, vector<1x64x64xbf16>
    %126 = vector.shape_cast %125 : vector<1x64x64xbf16> to vector<64x64xbf16>
    %cst_119 = arith.constant dense<0.000000e+00> : vector<256x64xf32>
    %127 = tpu.matmul %124, %126, %cst_119 {dimension_numbers = #tpu.dot_dimension_numbers<[1], [0], [0], [1], [0, 0, 1, 1], [], []>} : vector<256x64xbf16>, vector<64x64xbf16>, vector<256x64xf32> -> vector<256x64xf32>
    %128 = arith.addf %121, %127 : vector<256x64xf32>
    %c2_120 = arith.constant 2 : index
    %c0_121 = arith.constant 0 : index
    %c0_122 = arith.constant 0 : index
    %129 = vector.load %arg10[%c2_120, %c0_121, %c0_122] : memref<18x18x64xf32, #tpu.memory_space<vmem>>, vector<16x16x64xf32>
    %130 = vector.shape_cast %129 : vector<16x16x64xf32> to vector<256x64xf32>
    %131 = arith.truncf %130 : vector<256x64xf32> to vector<256x64xbf16>
    %c6_123 = arith.constant 6 : index
    %c0_124 = arith.constant 0 : index
    %c0_125 = arith.constant 0 : index
    %132 = vector.load %arg4[%c6_123, %c0_124, %c0_125] : memref<9x64x64xbf16, #tpu.memory_space<vmem>>, vector<1x64x64xbf16>
    %133 = vector.shape_cast %132 : vector<1x64x64xbf16> to vector<64x64xbf16>
    %cst_126 = arith.constant dense<0.000000e+00> : vector<256x64xf32>
    %134 = tpu.matmul %131, %133, %cst_126 {dimension_numbers = #tpu.dot_dimension_numbers<[1], [0], [0], [1], [0, 0, 1, 1], [], []>} : vector<256x64xbf16>, vector<64x64xbf16>, vector<256x64xf32> -> vector<256x64xf32>
    %135 = arith.addf %128, %134 : vector<256x64xf32>
    %c2_127 = arith.constant 2 : index
    %c1_128 = arith.constant 1 : index
    %c0_129 = arith.constant 0 : index
    %136 = vector.load %arg10[%c2_127, %c1_128, %c0_129] : memref<18x18x64xf32, #tpu.memory_space<vmem>>, vector<16x16x64xf32>
    %137 = vector.shape_cast %136 : vector<16x16x64xf32> to vector<256x64xf32>
    %138 = arith.truncf %137 : vector<256x64xf32> to vector<256x64xbf16>
    %c7_130 = arith.constant 7 : index
    %c0_131 = arith.constant 0 : index
    %c0_132 = arith.constant 0 : index
    %139 = vector.load %arg4[%c7_130, %c0_131, %c0_132] : memref<9x64x64xbf16, #tpu.memory_space<vmem>>, vector<1x64x64xbf16>
    %140 = vector.shape_cast %139 : vector<1x64x64xbf16> to vector<64x64xbf16>
    %cst_133 = arith.constant dense<0.000000e+00> : vector<256x64xf32>
    %141 = tpu.matmul %138, %140, %cst_133 {dimension_numbers = #tpu.dot_dimension_numbers<[1], [0], [0], [1], [0, 0, 1, 1], [], []>} : vector<256x64xbf16>, vector<64x64xbf16>, vector<256x64xf32> -> vector<256x64xf32>
    %142 = arith.addf %135, %141 : vector<256x64xf32>
    %c2_134 = arith.constant 2 : index
    %c2_135 = arith.constant 2 : index
    %c0_136 = arith.constant 0 : index
    %143 = vector.load %arg10[%c2_134, %c2_135, %c0_136] : memref<18x18x64xf32, #tpu.memory_space<vmem>>, vector<16x16x64xf32>
    %144 = vector.shape_cast %143 : vector<16x16x64xf32> to vector<256x64xf32>
    %145 = arith.truncf %144 : vector<256x64xf32> to vector<256x64xbf16>
    %c8_137 = arith.constant 8 : index
    %c0_138 = arith.constant 0 : index
    %c0_139 = arith.constant 0 : index
    %146 = vector.load %arg4[%c8_137, %c0_138, %c0_139] : memref<9x64x64xbf16, #tpu.memory_space<vmem>>, vector<1x64x64xbf16>
    %147 = vector.shape_cast %146 : vector<1x64x64xbf16> to vector<64x64xbf16>
    %cst_140 = arith.constant dense<0.000000e+00> : vector<256x64xf32>
    %148 = tpu.matmul %145, %147, %cst_140 {dimension_numbers = #tpu.dot_dimension_numbers<[1], [0], [0], [1], [0, 0, 1, 1], [], []>} : vector<256x64xbf16>, vector<64x64xbf16>, vector<256x64xf32> -> vector<256x64xf32>
    %149 = arith.addf %142, %148 : vector<256x64xf32>
    %150 = vector.broadcast %10 : vector<1x64xf32> to vector<256x64xf32>
    %151 = arith.mulf %149, %150 : vector<256x64xf32>
    %152 = vector.broadcast %11 : vector<1x64xf32> to vector<256x64xf32>
    %153 = arith.addf %151, %152 : vector<256x64xf32>
    %c0_141 = arith.constant 0 : index
    %c0_142 = arith.constant 0 : index
    %c0_143 = arith.constant 0 : index
    %c0_144 = arith.constant 0 : index
    %154 = vector.load %arg1[%c0_141, %c0_142, %c0_143, %c0_144] : memref<1x16x16x32xbf16, #tpu.memory_space<vmem>>, vector<1x16x16x32xbf16>
    %155 = vector.shape_cast %154 : vector<1x16x16x32xbf16> to vector<16x16x32xbf16>
    %156 = vector.shape_cast %155 : vector<16x16x32xbf16> to vector<256x32xbf16>
    %c0_145 = arith.constant 0 : index
    %c0_146 = arith.constant 0 : index
    %157 = vector.load %arg6[%c0_145, %c0_146] : memref<32x64xbf16, #tpu.memory_space<vmem>>, vector<32x64xbf16>
    %cst_147 = arith.constant dense<0.000000e+00> : vector<256x64xf32>
    %158 = tpu.matmul %156, %157, %cst_147 {dimension_numbers = #tpu.dot_dimension_numbers<[1], [0], [0], [1], [0, 0, 1, 1], [], []>} : vector<256x32xbf16>, vector<32x64xbf16>, vector<256x64xf32> -> vector<256x64xf32>
    %c0_148 = arith.constant 0 : index
    %c0_149 = arith.constant 0 : index
    %159 = vector.load %arg7[%c0_148, %c0_149] : memref<2x64xf32, #tpu.memory_space<vmem>>, vector<2x64xf32>
    %160 = vector.extract_strided_slice %159 {offsets = [0, 0], sizes = [1, 64], strides = [1, 1]} : vector<2x64xf32> to vector<1x64xf32>
    %161 = vector.broadcast %160 : vector<1x64xf32> to vector<256x64xf32>
    %162 = arith.mulf %158, %161 : vector<256x64xf32>
    %163 = vector.extract_strided_slice %159 {offsets = [1, 0], sizes = [1, 64], strides = [1, 1]} : vector<2x64xf32> to vector<1x64xf32>
    %164 = vector.broadcast %163 : vector<1x64xf32> to vector<256x64xf32>
    %165 = arith.addf %162, %164 : vector<256x64xf32>
    %166 = arith.addf %153, %165 : vector<256x64xf32>
    %cst_150 = arith.constant 0.000000e+00 : f32
    %167 = vector.broadcast %cst_150 : f32 to vector<256x64xf32>
    %168 = arith.maximumf %166, %167 : vector<256x64xf32>
    %169 = vector.shape_cast %168 : vector<256x64xf32> to vector<16x16x64xf32>
    %c0_151 = arith.constant 0 : index
    %c0_152 = arith.constant 0 : index
    %c0_153 = arith.constant 0 : index
    %c0_154 = arith.constant 0 : index
    %170 = vector.load %arg8[%c0_151, %c0_152, %c0_153, %c0_154] : memref<1x16x16x64xf32, #tpu.memory_space<vmem>>, vector<1x16x16x64xf32>
    %171 = vector.shape_cast %170 : vector<1x16x16x64xf32> to vector<16x16x64xf32>
    %172 = vector.shape_cast %169 : vector<16x16x64xf32> to vector<1x16x16x64xf32>
    tpu.vector_store %arg8[%c0_151, %c0_152, %c0_153, %c0_154], %172 {strides = array<i32>} : memref<1x16x16x64xf32, #tpu.memory_space<vmem>>, vector<1x16x16x64xf32>,
    return
  }
  func.func @transform_0(%arg0: i32) -> (i32, i32, i32, i32) {
    %c0_i32 = arith.constant 0 : i32
    %c0_i32_0 = arith.constant 0 : i32
    %c0_i32_1 = arith.constant 0 : i32
    %c0_i32_2 = arith.constant 0 : i32
    return %arg0, %c0_i32, %c0_i32_0, %c0_i32_1 : i32, i32, i32, i32
  }
  func.func @transform_1(%arg0: i32) -> (i32, i32, i32) {
    %c0_i32 = arith.constant 0 : i32
    %c0_i32_0 = arith.constant 0 : i32
    %c0_i32_1 = arith.constant 0 : i32
    %c0_i32_2 = arith.constant 0 : i32
    return %c0_i32, %c0_i32_0, %c0_i32_1 : i32, i32, i32
  }
  func.func @transform_2(%arg0: i32) -> (i32, i32) {
    %c0_i32 = arith.constant 0 : i32
    %c0_i32_0 = arith.constant 0 : i32
    %c0_i32_1 = arith.constant 0 : i32
    return %c0_i32, %c0_i32_0 : i32, i32
  }
  func.func @transform_3(%arg0: i32) -> (i32, i32, i32) {
    %c0_i32 = arith.constant 0 : i32
    %c0_i32_0 = arith.constant 0 : i32
    %c0_i32_1 = arith.constant 0 : i32
    %c0_i32_2 = arith.constant 0 : i32
    return %c0_i32, %c0_i32_0, %c0_i32_1 : i32, i32, i32
  }
  func.func @transform_4(%arg0: i32) -> (i32, i32) {
    %c0_i32 = arith.constant 0 : i32
    %c0_i32_0 = arith.constant 0 : i32
    %c0_i32_1 = arith.constant 0 : i32
    return %c0_i32, %c0_i32_0 : i32, i32
  }
  func.func @transform_5(%arg0: i32) -> (i32, i32) {
    %c0_i32 = arith.constant 0 : i32
    %c0_i32_0 = arith.constant 0 : i32
    %c0_i32_1 = arith.constant 0 : i32
    return %c0_i32, %c0_i32_0 : i32, i32
  }
  func.func @transform_6(%arg0: i32) -> (i32, i32) {
    %c0_i32 = arith.constant 0 : i32
    %c0_i32_0 = arith.constant 0 : i32
    %c0_i32_1 = arith.constant 0 : i32
    return %c0_i32, %c0_i32_0 : i32, i32
  }
  func.func @transform_7(%arg0: i32) -> (i32, i32, i32, i32) {
    %c0_i32 = arith.constant 0 : i32
    %c0_i32_0 = arith.constant 0 : i32
    %c0_i32_1 = arith.constant 0 : i32
    %c0_i32_2 = arith.constant 0 : i32
    return %arg0, %c0_i32, %c0_i32_0, %c0_i32_1 : i32, i32, i32, i32
  }
}

</mosaic_0001>

<bundles_post_ra>
// kernel: _lambda_.1
= control target key start
LH: loop header
LB: loop body
LE: loop exit
PB: predicated region body
PF: predicated region fallthrough
CT: control target
= control target key end

     0   :  { %12 = vsyncpa [#allocation5], 0  ;;  %s10960_s0 = inlined_call_operand.vmem [shape: bf16[2,16,16,32], index: 0, kind: input, shape index: {}]   ;;  %s10961_s1 = inlined_call_operand.vmem [shape: bf16[9,32,64], index: 1, kind: input, shape index: {}]   ;;  %s10962_s2 = inlined_call_operand.vmem [shape: f32[2,64], index: 2, kind: input, shape index: {}]   ;;  %s10963_s3 = inlined_call_operand.vmem [shape: bf16[9,64,64], index: 3, kind: input, shape index: {}]   ;;  %s10964_s4 = inlined_call_operand.vmem [shape: f32[2,64], index: 4, kind: input, shape index: {}]   ;;  %s10965_s5 = inlined_call_operand.vmem [shape: bf16[32,64], index: 5, kind: input, shape index: {}]   ;;  %s10966_s6 = inlined_call_operand.vmem [shape: f32[2,64], index: 6, kind: input, shape index: {}]   ;;  %s10967_s7 = inlined_call_operand.hbm [shape: f32[2,16,16,64], index: 7, kind: output, shape index: {}]  }
   0x1   :  { %14 = vsyncpa [#allocation5 + $0x1], 0  ;;  %s9187_s24 = smov 0   ;;  %s9189_s25 = smov 0  }
   0x2   :  { %s9191_s26 = smov 0   ;;  %s9193_s27 = smov 0  }
   0x3 LB: > { %s9208_s28 = sadd.s32 4294967295, %s9141_s27   ;;  %s6804_s29 = sadd.s32 4294967294, %s9141_s27   ;;  %s9141_s27 = sphi %s9193_s27, %s10973_s27   ;;  %s9137_s26 = sphi %s9191_s26, %s10972_s26   ;;  %s9133_s25 = sphi %s9189_s25, %s10971_s25   ;;  %s9129_s24 = sphi %s9187_s24, %s10970_s24  }
   0x4   : > { %s9212_s30 = sadd.s32 1, %s9141_s27   ;;  %s179_s8 = sadd.s32 1, %s9137_s26 }
   0x5   : > { %s176_s9 = ssub.s32 %s9141_s27, %s9212_s30  ;;  %p189_p0 = scmp.ne.s32.totalorder %s9137_s26, %s9133_s25 }
   0x6   : > { %p177_p1 = scmp.eq.s32.totalorder %s176_s9, 0  ;;  %p190_p2 = scmp.eq.s32.totalorder %s9208_s28, 1 }
   0x7   : > { %p195_p3 = scmp.ne.s32.totalorder %s9133_s25, %s9129_s24  ;;  %p196_p4 = scmp.eq.s32.totalorder %s6804_s29, 1 }
   0x8   : > { %s9223_s10 = scalar_select %p177_p1, %s9137_s26, %s179_s8  }
   0x9   : > { %p9225_p5 = por %p190_p2, %p189_p0  ;;  %p9229_p6 = por %p196_p4, %p195_p3 }
   0xa   : > { %p6807_p7 = scmp.ge.s32.totalorder %s9141_s27, 1  ;;  %p240_p8 = scmp.lt.s32.totalorder %s9141_s27, 3 }
   0xc   : > { %p241_p9 = pnand %p6807_p7, %p240_p8 }
   0xd   : > { %v9007_v0 = vld [vmem:[%s10961_s1 + $0x10] sm:$0xff] (!%p241_p9)   ;;  %vm278_vm0 = vcmask (!%p241_p9), 261120   ;;  %v9241_v1 = vld [vmem:[%s10961_s1 + $0x18] sm:$0xff] (!%p241_p9)   ;;  %v9143_v2 = vmov (!%p241_p9), 0.0   ;;  %vm281_vm1 = vcmask (!%p241_p9), 254976   ;;  %p272_p10 = scmp.lt.s32.totalorder (!%p241_p9), %s9208_s28, 1 }
   0xe   : > { %244 = sbr.rel (%p241_p9) target bundleno = 1570 (0x622), region = 48  ;;  %7729 = vmatprep.subr.bf16.mxu0 (!%p241_p9), %v9007_v0  ;;  %279 = vst.msk [vmem:[#allocation2] sm:$0xff] (!%p241_p9), %vm278_vm0, %v9143_v2  ;;  %280 = vst.msk [vmem:[#allocation2 + $0x8] sm:$0xff] (!%p241_p9), %vm278_vm0, %v9143_v2  ;;  %8449 = vmatprep.subr.bf16.mxu1 (!%p241_p9), %v9007_v0  ;;  %v9356_v3 = vld [vmem:[%s10961_s1] sm:$0xff] (!%p241_p9)   ;;  %v9010_v57 = vld [vmem:[%s10961_s1 + $0x8] sm:$0xff] (!%p241_p9)   ;;  %vm3227_vm2 = vcmask (!%p241_p9), 523264  }
   0xf   : > { %283 = vst.msk [vmem:[#allocation2 + $0x18] sm:$0xff] (!%p241_p9), %vm278_vm0, %v9143_v2  ;;  %284 = vst.msk [vmem:[#allocation2 + $0x20] sm:$0xff] (!%p241_p9), %vm278_vm0, %v9143_v2  ;;  %7730 = vmatpush3.bf16.msra.mxu0 (!%p241_p9), %v9007_v0  ;;  %8451 = vmatpush3.bf16.msra.mxu1 (!%p241_p9), %v9007_v0  ;;  %v9011_v63 = vld [vmem:[%s10961_s1 + $0x20] sm:$0xff] (!%p241_p9)   ;;  %vm3230_vm3 = vcmask (!%p241_p9), 517120   ;;  %s269_s17 = sand.u32 (!%p241_p9), 1, %s9133_s25   ;;  %s9144_s9 = smov (!%p241_p9), [#allocation4]  }
  0x10   : > { %286 = vst.msk [vmem:[#allocation2 + $0x30] sm:$0xff] (!%p241_p9), %vm278_vm0, %v9143_v2  ;;  %287 = vst.msk [vmem:[#allocation2 + $0x38] sm:$0xff] (!%p241_p9), %vm278_vm0, %v9143_v2  ;;  %7731 = vmatprep.subr.bf16.mxu0 (!%p241_p9), %v9241_v1  ;;  %8450 = vmatprep.subr.bf16.mxu1 (!%p241_p9), %v9241_v1  ;;  %s6808_s18 = sshll.u32 (!%p241_p9), %s269_s17, 8  ;;  %s9083_s13 = sshll.u32 (!%p241_p9), %s9144_s9, 4  ;;  %s9084_s13 = int_to_ptr.vmem [resolvable:$false] %s9083_s13 }
  0x11   : > { %289 = vst.msk [vmem:[#allocation2 + $0x48] sm:$0xff] (!%p241_p9), %vm278_vm0, %v9143_v2  ;;  %290 = vst.msk [vmem:[#allocation2 + $0x50] sm:$0xff] (!%p241_p9), %vm278_vm0, %v9143_v2  ;;  %s9085_s14 = scalar_lea.vmem (!%p241_p9), %s9084_s13, 8192 }
  0x12   : > { %292 = vst.msk [vmem:[#allocation2 + $0x60] sm:$0xff] (!%p241_p9), %vm278_vm0, %v9143_v2  ;;  %293 = vst.msk [vmem:[#allocation2 + $0x68] sm:$0xff] (!%p241_p9), %vm278_vm0, %v9143_v2 }
  0x13   : > { %295 = vst.msk [vmem:[#allocation2 + $0x78] sm:$0xff] (!%p241_p9), %vm278_vm0, %v9143_v2  ;;  %296 = vst.msk [vmem:[#allocation2 + $0x80] sm:$0xff] (!%p241_p9), %vm278_vm0, %v9143_v2  ;;  %7732 = vmatpush3.bf16.msra.mxu0 (!%p241_p9), %v9241_v1  ;;  %8452 = vmatpush3.bf16.msra.mxu1 (!%p241_p9), %v9241_v1 }
  0x14   : > { %298 = vst.msk [vmem:[#allocation2 + $0x90] sm:$0xff] (!%p241_p9), %vm278_vm0, %v9143_v2  ;;  %299 = vst.msk [vmem:[#allocation2 + $0x98] sm:$0xff] (!%p241_p9), %vm278_vm0, %v9143_v2  ;;  %7765 = vmatprep.subr.bf16.mxu0 (!%p241_p9), %v9356_v3 }
  0x15   : > { %301 = vst.msk [vmem:[#allocation2 + $0xa8] sm:$0xff] %vm278_vm0, %v9143_v2  ;;  %302 = vst.msk [vmem:[#allocation2 + $0xb0] sm:$0xff] %vm278_vm0, %v9143_v2  ;;  %s273_s19 = scalar_select %p272_p10, %s9208_s28, 1  ;;  %v485_v4 = vld [vmem:[#allocation2 + $0x1] sm:$0xff] }
  0x16   : > { %304 = vst.msk [vmem:[#allocation2 + $0xc0] sm:$0xff] %vm278_vm0, %v9143_v2  ;;  %305 = vst.msk [vmem:[#allocation2 + $0xc8] sm:$0xff] %vm278_vm0, %v9143_v2 }
  0x17   : > { %307 = vst.msk [vmem:[#allocation2 + $0xd8] sm:$0xff] %vm278_vm0, %v9143_v2  ;;  %308 = vst.msk [vmem:[#allocation2 + $0xe0] sm:$0xff] %vm278_vm0, %v9143_v2  ;;  %s7288_s20 = sshll.u32 %s273_s19, 7  ;;  %s10706_s19 = scalar_lea.vmem [#allocation4], %s6808_s18 }
  0x18   : > { %310 = vst.msk [vmem:[#allocation2 + $0xf0] sm:$0xff] %vm278_vm0, %v9143_v2  ;;  %311 = vst.msk [vmem:[#allocation2 + $0xf8] sm:$0xff] %vm278_vm0, %v9143_v2  ;;  %s9366_s23 = scalar_lea.vmem %s10960_s0, %s7288_s20  ;;  %s7289_s20 = sshll.u32 %s9208_s28, 12 }
  0x19   : > { %313 = vst.msk [vmem:[#allocation2 + $0x108] sm:$0xff] %vm278_vm0, %v9143_v2  ;;  %314 = vst.msk [vmem:[#allocation2 + $0x110] sm:$0xff] %vm278_vm0, %v9143_v2  ;;  %v7291_v5 = vld [vmem:[%s9366_s23] sm:$0xff]   ;;  %v7354_v6 = vld [vmem:[%s9366_s23 + $0x8] sm:$0xff]   ;;  %s6742_s21 = sshll.u32 %s10706_s19, 4  ;;  %s10907_s29 = scalar_lea.hbm %s10967_s7, %s7289_s20  ;;  %s10909_s21 = int_to_ptr.vmem [resolvable:$true] %s6742_s21 }
  0x1a   : > { %316 = vst.msk [vmem:[#allocation2 + $0x120] sm:$0xff] %vm278_vm0, %v9143_v2  ;;  %317 = vst.msk [vmem:[#allocation2 + $0x128] sm:$0xff] %vm278_vm0, %v9143_v2  ;;  %v7292_v8 = vunpack.c.l.bf16 %v7291_v5  ;;  %v7293_v9 = vunpack.c.h.bf16 %v7291_v5  ;;  %v7296_v10 = vunpack.c.l.bf16 %v7354_v6  ;;  %v7297_v11 = vunpack.c.h.bf16 %v7354_v6  ;;  %v7355_v12 = vld [vmem:[%s9366_s23 + $0x10] sm:$0xff]   ;;  %v7356_v13 = vld [vmem:[%s9366_s23 + $0x18] sm:$0xff]   ;;  %s10919_s28 = scalar_lea.sflag [#allocation5], %s269_s17  ;;  %s9079_s8 = scalar_lea.vmem %s10909_s21, 4096 }
  0x1b   : > { %319 = vst.msk [vmem:[#allocation2 + $0x138] sm:$0xff] %vm278_vm0, %v9143_v2  ;;  %320 = vst.msk [vmem:[#allocation2 + $0x140] sm:$0xff] %vm278_vm0, %v9143_v2  ;;  %v7300_v15 = vunpack.c.l.bf16 %v7355_v12  ;;  %v7301_v16 = vunpack.c.h.bf16 %v7355_v12  ;;  %v7304_v17 = vunpack.c.l.bf16 %v7356_v13  ;;  %v7357_v18 = vld [vmem:[%s9366_s23 + $0x20] sm:$0xff]   ;;  %v7358_v19 = vld [vmem:[%s9366_s23 + $0x28] sm:$0xff]   ;;  %v7305_v21 = vunpack.c.h.bf16 %v7356_v13  ;;  %p9080_p11 = scmp.ne.s32.totalorder %s10909_s21, %s9079_s8  ;;  %p9086_p0 = scmp.lt.s32.totalorder %s10909_s21, %s9084_s13 }
  0x1c   : > { %322 = vst.msk [vmem:[#allocation2 + $0x150] sm:$0xff] %vm278_vm0, %v9143_v2  ;;  %323 = vst.msk [vmem:[#allocation2 + $0x158] sm:$0xff] %vm278_vm0, %v9143_v2  ;;  %v7359_v20 = vld [vmem:[%s9366_s23 + $0x30] sm:$0xff]   ;;  %v7308_v22 = vunpack.c.l.bf16 %v7357_v18  ;;  %v7309_v23 = vunpack.c.h.bf16 %v7357_v18  ;;  %v7312_v24 = vunpack.c.l.bf16 %v7358_v19  ;;  %v7360_v25 = vld [vmem:[%s9366_s23 + $0x38] sm:$0xff]   ;;  %v7313_v26 = vunpack.c.h.bf16 %v7358_v19  ;;  %p9087_p1 = scmp.lt.s32.totalorder %s9085_s14, %s9079_s8 }
  0x1d   : > { %325 = vst.msk [vmem:[#allocation2 + $0x168] sm:$0xff] %vm278_vm0, %v9143_v2  ;;  %326 = vst.msk [vmem:[#allocation2 + $0x170] sm:$0xff] %vm278_vm0, %v9143_v2  ;;  %v7316_v27 = vunpack.c.l.bf16 %v7359_v20  ;;  %v7317_v28 = vunpack.c.h.bf16 %v7359_v20  ;;  %v7361_v29 = vld [vmem:[%s9366_s23 + $0x40] sm:$0xff]   ;;  %v7362_v30 = vld [vmem:[%s9366_s23 + $0x48] sm:$0xff]   ;;  %v7320_v32 = vunpack.c.l.bf16 %v7360_v25  ;;  %v7321_v33 = vunpack.c.h.bf16 %v7360_v25  ;;  %p9081_p12 = pnand %p9080_p11, %p9225_p5 }
  0x1e   : > { %328 = vst.msk [vmem:[#allocation2 + $0x180] sm:$0xff] %vm278_vm0, %v9143_v2  ;;  %329 = vst.msk [vmem:[#allocation2 + $0x188] sm:$0xff] %vm278_vm0, %v9143_v2  ;;  %v7363_v31 = vld [vmem:[%s9366_s23 + $0x50] sm:$0xff]   ;;  %v7324_v34 = vunpack.c.l.bf16 %v7361_v29  ;;  %v7325_v35 = vunpack.c.h.bf16 %v7361_v29  ;;  %v7364_v36 = vld [vmem:[%s9366_s23 + $0x58] sm:$0xff]   ;;  %v7328_v39 = vunpack.c.l.bf16 %v7362_v30  ;;  %v7329_v40 = vunpack.c.h.bf16 %v7362_v30  ;;  %p9088_p2 = por %p9087_p1, %p9086_p0 }
  0x1f   : > { %331 = vst.msk [vmem:[#allocation2 + $0x198] sm:$0xff] %vm278_vm0, %v9143_v2  ;;  %332 = vst.msk [vmem:[#allocation2 + $0x1a0] sm:$0xff] %vm278_vm0, %v9143_v2  ;;  %v7365_v37 = vld [vmem:[%s9366_s23 + $0x60] sm:$0xff]   ;;  %v7366_v38 = vld [vmem:[%s9366_s23 + $0x68] sm:$0xff]   ;;  %v7332_v41 = vunpack.c.l.bf16 %v7363_v31  ;;  %v7333_v42 = vunpack.c.h.bf16 %v7363_v31  ;;  %v7336_v44 = vunpack.c.l.bf16 %v7364_v36  ;;  %v7337_v45 = vunpack.c.h.bf16 %v7364_v36  ;;  %p9082_p13 = pneg %p9081_p12 }
  0x20   : > { %282 = vst.msk [vmem:[#allocation2 + $0x10] sm:$0x3] %vm281_vm1, %v9143_v2  ;;  %285 = vst.msk [vmem:[#allocation2 + $0x28] sm:$0x3] %vm281_vm1, %v9143_v2  ;;  %v7367_v43 = vld [vmem:[%s9366_s23 + $0x70] sm:$0xff]   ;;  %v7340_v46 = vunpack.c.l.bf16 %v7365_v37  ;;  %v7341_v47 = vunpack.c.h.bf16 %v7365_v37  ;;  %v7344_v48 = vunpack.c.l.bf16 %v7366_v38  ;;  %v7345_v49 = vunpack.c.h.bf16 %v7366_v38  ;;  %v434_v12 = vld [vmem:[#allocation2 + $0x8] sm:$0xff] }
  0x21   : > { %288 = vst.msk [vmem:[#allocation2 + $0x40] sm:$0x3] %vm281_vm1, %v9143_v2  ;;  %291 = vst.msk [vmem:[#allocation2 + $0x58] sm:$0x3] %vm281_vm1, %v9143_v2  ;;  %v7348_v50 = vunpack.c.l.bf16 %v7367_v43  ;;  %v7349_v51 = vunpack.c.h.bf16 %v7367_v43  ;;  %v9012_v20 = vld [vmem:[%s10961_s1 + $0x28] sm:$0xff]   ;;  %p9089_p3 = pnand %p9088_p2, %p9082_p13 }
  0x22   : > { %294 = vst.msk [vmem:[#allocation2 + $0x70] sm:$0x3] %vm281_vm1, %v9143_v2  ;;  %297 = vst.msk [vmem:[#allocation2 + $0x88] sm:$0x3] %vm281_vm1, %v9143_v2 }
  0x23   : > { %300 = vst.msk [vmem:[#allocation2 + $0xa0] sm:$0x3] %vm281_vm1, %v9143_v2  ;;  %303 = vst.msk [vmem:[#allocation2 + $0xb8] sm:$0x3] %vm281_vm1, %v9143_v2 }
  0x24   : > { %306 = vst.msk [vmem:[#allocation2 + $0xd0] sm:$0x3] %vm281_vm1, %v9143_v2  ;;  %309 = vst.msk [vmem:[#allocation2 + $0xe8] sm:$0x3] %vm281_vm1, %v9143_v2 }
  0x25   : > { %312 = vst.msk [vmem:[#allocation2 + $0x100] sm:$0x3] %vm281_vm1, %v9143_v2  ;;  %315 = vst.msk [vmem:[#allocation2 + $0x118] sm:$0x3] %vm281_vm1, %v9143_v2 }
  0x26   : > { %318 = vst.msk [vmem:[#allocation2 + $0x130] sm:$0x3] %vm281_vm1, %v9143_v2  ;;  %321 = vst.msk [vmem:[#allocation2 + $0x148] sm:$0x3] %vm281_vm1, %v9143_v2 }
  0x27   : > { %324 = vst.msk [vmem:[#allocation2 + $0x160] sm:$0x3] %vm281_vm1, %v9143_v2  ;;  %327 = vst.msk [vmem:[#allocation2 + $0x178] sm:$0x3] %vm281_vm1, %v9143_v2  ;;  %v486_v7 = vld [vmem:[#allocation2 + $0x9] sm:$0xff] }
  0x28   : > { %330 = vst.msk [vmem:[#allocation2 + $0x190] sm:$0x3] %vm281_vm1, %v9143_v2  ;;  %333 = vst.msk [vmem:[#allocation2 + $0x1a8] sm:$0x3] %vm281_vm1, %v9143_v2  ;;  %v517_v14 = vpack.c.bf16 %v486_v7, %v485_v4 }
  0x29   : > { %399 = vst.msk [vmem:[#allocation2 + $0x19] sm:$0xff] %vm278_vm0, %v7292_v8  ;;  %400 = vst.msk [vmem:[#allocation2 + $0x21] sm:$0xff] %vm278_vm0, %v7293_v9 }
  0x2a   : > { %401 = vst.msk [vmem:[#allocation2 + $0x31] sm:$0xff] %vm278_vm0, %v7296_v10  ;;  %402 = vst.msk [vmem:[#allocation2 + $0x39] sm:$0xff] %vm278_vm0, %v7297_v11  ;;  %7733 = vmatprep.mubr.msk.bf16.mxu0 %vm278_vm0, %v517_v14  ;;  %v433_v11 = vld [vmem:[#allocation2] sm:$0xff] }
  0x2b   : > { %403 = vst.msk [vmem:[#allocation2 + $0x49] sm:$0xff] %vm278_vm0, %v7300_v15  ;;  %404 = vst.msk [vmem:[#allocation2 + $0x51] sm:$0xff] %vm278_vm0, %v7301_v16  ;;  %v465_v14 = vpack.c.bf16 %v434_v12, %v433_v11 }
  0x2c   : > { %405 = vst.msk [vmem:[#allocation2 + $0x61] sm:$0xff] %vm278_vm0, %v7304_v17  ;;  %406 = vst.msk [vmem:[#allocation2 + $0x69] sm:$0xff] %vm278_vm0, %v7305_v21 }
  0x2d   : > { %407 = vst.msk [vmem:[#allocation2 + $0x79] sm:$0xff] %vm278_vm0, %v7308_v22  ;;  %408 = vst.msk [vmem:[#allocation2 + $0x81] sm:$0xff] %vm278_vm0, %v7309_v23 }
  0x2e   : > { %409 = vst.msk [vmem:[#allocation2 + $0x91] sm:$0xff] %vm278_vm0, %v7312_v24  ;;  %410 = vst.msk [vmem:[#allocation2 + $0x99] sm:$0xff] %vm278_vm0, %v7313_v26  ;;  %v9462_v26 = vld [vmem:[%s10961_s1 + $0x30] sm:$0xff]  }
  0x2f   : > { %411 = vst.msk [vmem:[#allocation2 + $0xa9] sm:$0xff] %vm278_vm0, %v7316_v27  ;;  %412 = vst.msk [vmem:[#allocation2 + $0xb1] sm:$0xff] %vm278_vm0, %v7317_v28 }
  0x30   : > { %413 = vst.msk [vmem:[#allocation2 + $0xc1] sm:$0xff] %vm278_vm0, %v7320_v32  ;;  %414 = vst.msk [vmem:[#allocation2 + $0xc9] sm:$0xff] %vm278_vm0, %v7321_v33  ;;  %v487_v52 = vld [vmem:[#allocation2 + $0x19] sm:$0xff]  ;;  %v488_v53 = vld [vmem:[#allocation2 + $0x21] sm:$0xff] }
  0x31   : > { %415 = vst.msk [vmem:[#allocation2 + $0xd9] sm:$0xff] %vm278_vm0, %v7324_v34  ;;  %416 = vst.msk [vmem:[#allocation2 + $0xe1] sm:$0xff] %vm278_vm0, %v7325_v35  ;;  %v489_v54 = vld [vmem:[#allocation2 + $0x31] sm:$0xff]  ;;  %v9414_v55 = vpack.c.bf16 %v488_v53, %v487_v52  ;;  %v490_v56 = vld [vmem:[#allocation2 + $0x39] sm:$0xff] }
  0x32   : > { %417 = vst.msk [vmem:[#allocation2 + $0xf1] sm:$0xff] %vm278_vm0, %v7328_v39  ;;  %418 = vst.msk [vmem:[#allocation2 + $0xf9] sm:$0xff] %vm278_vm0, %v7329_v40  ;;  %v9419_v58 = vpack.c.bf16 %v490_v56, %v489_v54  ;;  %v491_v59 = vld [vmem:[#allocation2 + $0x49] sm:$0xff]  ;;  %v492_v60 = vld [vmem:[#allocation2 + $0x51] sm:$0xff] }
  0x33   : > { %419 = vst.msk [vmem:[#allocation2 + $0x109] sm:$0xff] %vm278_vm0, %v7332_v41  ;;  %420 = vst.msk [vmem:[#allocation2 + $0x111] sm:$0xff] %vm278_vm0, %v7333_v42  ;;  %7734 = vmatmul.mubr.msk.bf16.vlgmr.msra.gmra.mrb[0].mxu0 %vm278_vm0, %v9414_v55  ;;  %v493_v61 = vld [vmem:[#allocation2 + $0x61] sm:$0xff]  ;;  %v494_v62 = vld [vmem:[#allocation2 + $0x69] sm:$0xff]  ;;  %v9429_v0 = vpack.c.bf16 %v492_v60, %v491_v59 }
  0x34   : > { %421 = vst.msk [vmem:[#allocation2 + $0x121] sm:$0xff] %vm278_vm0, %v7336_v44  ;;  %422 = vst.msk [vmem:[#allocation2 + $0x129] sm:$0xff] %vm278_vm0, %v7337_v45  ;;  %7766 = vmatpush3.bf16.msra.mxu0 %v9356_v3  ;;  %7737 = vmatprep.mubr.msk.bf16.mxu0 %vm278_vm0, %v9419_v58  ;;  %v9431_v1 = vpack.c.bf16 %v494_v62, %v493_v61  ;;  %v495_v3 = vld [vmem:[#allocation2 + $0x79] sm:$0xff]  ;;  %v496_v4 = vld [vmem:[#allocation2 + $0x81] sm:$0xff] }
  0x35   : > { %423 = vst.msk [vmem:[#allocation2 + $0x139] sm:$0xff] %vm278_vm0, %v7340_v46  ;;  %424 = vst.msk [vmem:[#allocation2 + $0x141] sm:$0xff] %vm278_vm0, %v7341_v47  ;;  %7767 = vmatprep.subr.bf16.mxu0 %v9010_v57  ;;  %v497_v5 = vld [vmem:[#allocation2 + $0x91] sm:$0xff]  ;;  %v498_v6 = vld [vmem:[#allocation2 + $0x99] sm:$0xff]  ;;  %v9437_v7 = vpack.c.bf16 %v496_v4, %v495_v3 }
  0x36   : > { %425 = vst.msk [vmem:[#allocation2 + $0x151] sm:$0xff] %vm278_vm0, %v7344_v48  ;;  %426 = vst.msk [vmem:[#allocation2 + $0x159] sm:$0xff] %vm278_vm0, %v7345_v49  ;;  %v9439_v8 = vpack.c.bf16 %v498_v6, %v497_v5  ;;  %v499_v9 = vld [vmem:[#allocation2 + $0xa9] sm:$0xff]  ;;  %v500_v10 = vld [vmem:[#allocation2 + $0xb1] sm:$0xff] }
  0x37   : > { %427 = vst.msk [vmem:[#allocation2 + $0x169] sm:$0xff] %vm278_vm0, %v7348_v50  ;;  %428 = vst.msk [vmem:[#allocation2 + $0x171] sm:$0xff] %vm278_vm0, %v7349_v51  ;;  %v9445_v13 = vpack.c.bf16 %v500_v10, %v499_v9  ;;  %v435_v15 = vld [vmem:[#allocation2 + $0x18] sm:$0xff]  ;;  %v436_v16 = vld [vmem:[#allocation2 + $0x20] sm:$0xff] }
  0x38   : > { %7768 = vmatpush3.bf16.msra.mxu0 %v9010_v57  ;;  %v437_v17 = vld [vmem:[#allocation2 + $0x30] sm:$0xff]  ;;  %v438_v18 = vld [vmem:[#allocation2 + $0x38] sm:$0xff]  ;;  %v9450_v19 = vpack.c.bf16 %v436_v16, %v435_v15  ;;  %v439_v22 = vld [vmem:[#allocation2 + $0x48] sm:$0xff]  ;;  %3235 = vst.msk [vmem:[#allocation3 + $0x30] sm:$0xff] %vm3227_vm2, %v9143_v2 }
  0x39   : > { %7801 = vmatprep.subr.bf16.mxu0 %v9011_v63  ;;  %v9455_v21 = vpack.c.bf16 %v438_v18, %v437_v17  ;;  %v440_v23 = vld [vmem:[#allocation2 + $0x50] sm:$0xff]  ;;  %v441_v24 = vld [vmem:[#allocation2 + $0x60] sm:$0xff]  ;;  %v442_v25 = vld [vmem:[#allocation2 + $0x68] sm:$0xff]  ;;  %3236 = vst.msk [vmem:[#allocation3 + $0x38] sm:$0xff] %vm3227_vm2, %v9143_v2 }
  0x3a   : > { %v9466_v27 = vpack.c.bf16 %v440_v23, %v439_v22  ;;  %v9468_v28 = vpack.c.bf16 %v442_v25, %v441_v24  ;;  %v443_v29 = vld [vmem:[#allocation2 + $0x78] sm:$0xff]  ;;  %v444_v30 = vld [vmem:[#allocation2 + $0x80] sm:$0xff]  ;;  %v445_v31 = vld [vmem:[#allocation2 + $0x90] sm:$0xff]  ;;  %3228 = vst.msk [vmem:[#allocation3] sm:$0xff] %vm3227_vm2, %v9143_v2 }
  0x3b   : > { %7738 = vmatmul.mubr.msk.bf16.gmra.mrb[4].mxu0 %vm278_vm0, %v9429_v0  ;;  %v446_v32 = vld [vmem:[#allocation2 + $0x98] sm:$0xff]  ;;  %v9475_v33 = vpack.c.bf16 %v444_v30, %v443_v29  ;;  %v447_v35 = vld [vmem:[#allocation2 + $0xa8] sm:$0xff]  ;;  %v448_v36 = vld [vmem:[#allocation2 + $0xb0] sm:$0xff]  ;;  %3229 = vst.msk [vmem:[#allocation3 + $0x8] sm:$0xff] %vm3227_vm2, %v9143_v2 }
  0x3c   : > { %7741 = vmatprep.mubr.msk.bf16.mxu0 %vm278_vm0, %v9431_v1  ;;  %v9477_v34 = vpack.c.bf16 %v446_v32, %v445_v31  ;;  %v449_v37 = vld [vmem:[#allocation2 + $0xc0] sm:$0xff]  ;;  %v450_v38 = vld [vmem:[#allocation2 + $0xc8] sm:$0xff]  ;;  %v9483_v39 = vpack.c.bf16 %v448_v36, %v447_v35  ;;  %v451_v41 = vld [vmem:[#allocation2 + $0xd8] sm:$0xff]  ;;  %3232 = vst.msk [vmem:[#allocation3 + $0x18] sm:$0xff] %vm3227_vm2, %v9143_v2 }
  0x3d   : > { %v9485_v40 = vpack.c.bf16 %v450_v38, %v449_v37  ;;  %v452_v42 = vld [vmem:[#allocation2 + $0xe0] sm:$0xff]  ;;  %v453_v43 = vld [vmem:[#allocation2 + $0xf0] sm:$0xff]  ;;  %v454_v44 = vld [vmem:[#allocation2 + $0xf8] sm:$0xff]  ;;  %3233 = vst.msk [vmem:[#allocation3 + $0x20] sm:$0xff] %vm3227_vm2, %v9143_v2 }
  0x3e   : > { %v9491_v45 = vpack.c.bf16 %v452_v42, %v451_v41  ;;  %v9493_v46 = vpack.c.bf16 %v454_v44, %v453_v43  ;;  %v455_v47 = vld [vmem:[#allocation2 + $0x108] sm:$0xff]  ;;  %v456_v48 = vld [vmem:[#allocation2 + $0x110] sm:$0xff]  ;;  %v457_v49 = vld [vmem:[#allocation2 + $0x120] sm:$0xff]  ;;  %3238 = vst.msk [vmem:[#allocation3 + $0x48] sm:$0xff] %vm3227_vm2, %v9143_v2 }
  0x3f   : > { %v458_v50 = vld [vmem:[#allocation2 + $0x128] sm:$0xff]  ;;  %v9499_v51 = vpack.c.bf16 %v456_v48, %v455_v47  ;;  %v459_v53 = vld [vmem:[#allocation2 + $0x138] sm:$0xff]  ;;  %v460_v54 = vld [vmem:[#allocation2 + $0x140] sm:$0xff]  ;;  %3239 = vst.msk [vmem:[#allocation3 + $0x50] sm:$0xff] %vm3227_vm2, %v9143_v2 }
  0x40   : > { %v9501_v52 = vpack.c.bf16 %v458_v50, %v457_v49  ;;  %v461_v56 = vld [vmem:[#allocation2 + $0x150] sm:$0xff]  ;;  %v462_v57 = vld [vmem:[#allocation2 + $0x158] sm:$0xff]  ;;  %v9508_v60 = vpack.c.bf16 %v460_v54, %v459_v53  ;;  %v463_v3 = vld [vmem:[#allocation2 + $0x168] sm:$0xff]  ;;  %3241 = vst.msk [vmem:[#allocation3 + $0x60] sm:$0xff] %vm3227_vm2, %v9143_v2 }
  0x41   : > { %v7368_v59 = vld [vmem:[%s9366_s23 + $0x78] sm:$0xff]   ;;  %v464_v4 = vld [vmem:[#allocation2 + $0x170] sm:$0xff]  ;;  %v980_v5 = vld [vmem:[#allocation2 + $0x2] sm:$0xff]  ;;  %3242 = vst.msk [vmem:[#allocation3 + $0x68] sm:$0xff] %vm3227_vm2, %v9143_v2 }
  0x42   : > { %v7352_v61 = vunpack.c.l.bf16 %v7368_v59  ;;  %v7353_v62 = vunpack.c.h.bf16 %v7368_v59  ;;  %v981_v6 = vld [vmem:[#allocation2 + $0xa] sm:$0xff]  ;;  %v9518_v9 = vpack.c.bf16 %v464_v4, %v463_v3  ;;  %v982_v11 = vld [vmem:[#allocation2 + $0x1a] sm:$0xff]  ;;  %v983_v12 = vld [vmem:[#allocation2 + $0x22] sm:$0xff]  ;;  %3244 = vst.msk [vmem:[#allocation3 + $0x78] sm:$0xff] %vm3227_vm2, %v9143_v2 }
  0x43   : > { %7742 = vmatmul.mubr.msk.bf16.gmra.mrb[8].mxu0 %vm278_vm0, %v9437_v7  ;;  %v1012_v10 = vpack.c.bf16 %v981_v6, %v980_v5  ;;  %v985_v15 = vld [vmem:[#allocation2 + $0x3a] sm:$0xff]  ;;  %v9523_v16 = vpack.c.bf16 %v983_v12, %v982_v11  ;;  %v987_v22 = vld [vmem:[#allocation2 + $0x52] sm:$0xff]  ;;  %v988_v23 = vld [vmem:[#allocation2 + $0x62] sm:$0xff]  ;;  %3245 = vst.msk [vmem:[#allocation3 + $0x80] sm:$0xff] %vm3227_vm2, %v9143_v2 }
  0x44   : > { %7745 = vmatprep.mubr.msk.bf16.mxu0 %vm278_vm0, %v9439_v8  ;;  %429 = vst.msk [vmem:[#allocation2 + $0x181] sm:$0xff] %vm278_vm0, %v7352_v61  ;;  %430 = vst.msk [vmem:[#allocation2 + $0x189] sm:$0xff] %vm278_vm0, %v7353_v62  ;;  %v9014_v18 = vld [vmem:[%s10961_s1 + $0x38] sm:$0xff]   ;;  %v989_v24 = vld [vmem:[#allocation2 + $0x6a] sm:$0xff] }
  0x45   : > { %v9538_v25 = vld [vmem:[%s10961_s1 + $0x40] sm:$0xff]   ;;  %v9542_v30 = vpack.c.bf16 %v989_v24, %v988_v23  ;;  %v992_v32 = vld [vmem:[#allocation2 + $0x92] sm:$0xff]  ;;  %v994_v38 = vld [vmem:[#allocation2 + $0xaa] sm:$0xff]  ;;  %3247 = vst.msk [vmem:[#allocation3 + $0x90] sm:$0xff] %vm3227_vm2, %v9143_v2 }
  0x46   : > { %v991_v31 = vld [vmem:[#allocation2 + $0x82] sm:$0xff]  ;;  %v993_v35 = vld [vmem:[#allocation2 + $0x9a] sm:$0xff]  ;;  %v995_v41 = vld [vmem:[#allocation2 + $0xb2] sm:$0xff]  ;;  %3248 = vst.msk [vmem:[#allocation3 + $0x98] sm:$0xff] %vm3227_vm2, %v9143_v2 }
  0x47   : > { %v9551_v37 = vpack.c.bf16 %v993_v35, %v992_v32  ;;  %v1606_v42 = vld [vmem:[#allocation2 + $0xc1] sm:$0xff]  ;;  %v1607_v43 = vld [vmem:[#allocation2 + $0xc9] sm:$0xff]  ;;  %v9559_v49 = vpack.c.bf16 %v995_v41, %v994_v38  ;;  %v1608_v54 = vld [vmem:[#allocation2 + $0xd9] sm:$0xff]  ;;  %3250 = vst.msk [vmem:[#allocation3 + $0xa8] sm:$0xff] %vm3227_vm2, %v9143_v2 }
  0x48   : > { %v996_v44 = vld [vmem:[#allocation2 + $0xc2] sm:$0xff]  ;;  %v997_v47 = vld [vmem:[#allocation2 + $0xca] sm:$0xff]  ;;  %v9557_v48 = vpack.c.bf16 %v1607_v43, %v1606_v42  ;;  %v998_v53 = vld [vmem:[#allocation2 + $0xda] sm:$0xff]  ;;  %3251 = vst.msk [vmem:[#allocation3 + $0xb0] sm:$0xff] %vm3227_vm2, %v9143_v2 }
  0x49   : > { %v9563_v50 = vpack.c.bf16 %v997_v47, %v996_v44  ;;  %v1610_v61 = vld [vmem:[#allocation2 + $0xf1] sm:$0xff]  ;;  %v1611_v62 = vld [vmem:[#allocation2 + $0xf9] sm:$0xff]  ;;  %v1612_v12 = vld [vmem:[#allocation2 + $0x109] sm:$0xff]  ;;  %3253 = vst.msk [vmem:[#allocation3 + $0xc0] sm:$0xff] %vm3227_vm2, %v9143_v2 }
  0x4a   : > { %7749 = vmatprep.mubr.msk.bf16.mxu1 %vm278_vm0, %v9557_v48  ;;  %v1000_v3 = vld [vmem:[#allocation2 + $0xf2] sm:$0xff]  ;;  %v1001_v4 = vld [vmem:[#allocation2 + $0xfa] sm:$0xff]  ;;  %v9571_v5 = vpack.c.bf16 %v1611_v62, %v1610_v61  ;;  %v1002_v11 = vld [vmem:[#allocation2 + $0x10a] sm:$0xff]  ;;  %3254 = vst.msk [vmem:[#allocation3 + $0xc8] sm:$0xff] %vm3227_vm2, %v9143_v2 }
  0x4b   : > { %7746 = vmatmul.mubr.msk.bf16.gmra.mrb[12].mxu0 %vm278_vm0, %v9445_v13  ;;  %v1004_v23 = vld [vmem:[#allocation2 + $0x122] sm:$0xff]  ;;  %v1005_v24 = vld [vmem:[#allocation2 + $0x12a] sm:$0xff]  ;;  %v1006_v35 = vld [vmem:[#allocation2 + $0x13a] sm:$0xff]  ;;  %3256 = vst.msk [vmem:[#allocation3 + $0xd8] sm:$0xff] %vm3227_vm2, %v9143_v2 }
  0x4c   : > { %7769 = vmatprep.mubr.msk.bf16.mxu0 %vm278_vm0, %v465_v14  ;;  %v984_v14 = vld [vmem:[#allocation2 + $0x32] sm:$0xff]  ;;  %v9595_v32 = vpack.c.bf16 %v1005_v24, %v1004_v23  ;;  %v1617_v41 = vld [vmem:[#allocation2 + $0x141] sm:$0xff]  ;;  %v1620_v62 = vld [vmem:[#allocation2 + $0x169] sm:$0xff]  ;;  %3257 = vst.msk [vmem:[#allocation3 + $0xe0] sm:$0xff] %vm3227_vm2, %v9143_v2 }
  0x4d   : > { %v9525_v17 = vpack.c.bf16 %v985_v15, %v984_v14  ;;  %v1613_v14 = vld [vmem:[#allocation2 + $0x111] sm:$0xff]  ;;  %v1616_v38 = vld [vmem:[#allocation2 + $0x139] sm:$0xff]  ;;  %v1007_v42 = vld [vmem:[#allocation2 + $0x142] sm:$0xff]  ;;  %3259 = vst.msk [vmem:[#allocation3 + $0xf0] sm:$0xff] %vm3227_vm2, %v9143_v2 }
  0x4e   : > { %v1003_v15 = vld [vmem:[#allocation2 + $0x112] sm:$0xff]  ;;  %v9601_v43 = vpack.c.bf16 %v1617_v41, %v1616_v38  ;;  %v9019_v24 = vld [vmem:[%s10961_s1 + $0x60] sm:$0xff]   ;;  %v9024_v41 = vld [vmem:[%s10961_s1 + $0x88] sm:$0xff]   ;;  %3260 = vst.msk [vmem:[#allocation3 + $0xf8] sm:$0xff] %vm3227_vm2, %v9143_v2 }
  0x4f   : > { %v1618_v44 = vld [vmem:[#allocation2 + $0x151] sm:$0xff]  ;;  %v1619_v47 = vld [vmem:[#allocation2 + $0x159] sm:$0xff]  ;;  %3262 = vst.msk [vmem:[#allocation3 + $0x108] sm:$0xff] %vm3227_vm2, %v9143_v2  ;;  %3263 = vst.msk [vmem:[#allocation3 + $0x110] sm:$0xff] %vm3227_vm2, %v9143_v2 }
  0x50   : > { %v9018_v23 = vld [vmem:[%s10961_s1 + $0x58] sm:$0xff]   ;;  %v9023_v38 = vld [vmem:[%s10961_s1 + $0x80] sm:$0xff]   ;;  %3265 = vst.msk [vmem:[#allocation3 + $0x120] sm:$0xff] %vm3227_vm2, %v9143_v2  ;;  %3266 = vst.msk [vmem:[#allocation3 + $0x128] sm:$0xff] %vm3227_vm2, %v9143_v2 }
  0x51   : > { %3268 = vst.msk [vmem:[#allocation3 + $0x138] sm:$0xff] %vm3227_vm2, %v9143_v2  ;;  %3269 = vst.msk [vmem:[#allocation3 + $0x140] sm:$0xff] %vm3227_vm2, %v9143_v2 }
  0x52   : > { %3271 = vst.msk [vmem:[#allocation3 + $0x150] sm:$0xff] %vm3227_vm2, %v9143_v2  ;;  %3272 = vst.msk [vmem:[#allocation3 + $0x158] sm:$0xff] %vm3227_vm2, %v9143_v2 }
  0x53   : > { %7770 = vmatmul.mubr.msk.bf16.vlgmr.msra.gmra.mrb[0].mxu0 %vm278_vm0, %v9450_v19  ;;  %3274 = vst.msk [vmem:[#allocation3 + $0x168] sm:$0xff] %vm3227_vm2, %v9143_v2  ;;  %3275 = vst.msk [vmem:[#allocation3 + $0x170] sm:$0xff] %vm3227_vm2, %v9143_v2 }
  0x54   : > { %7802 = vmatpush3.bf16.msra.mxu0 %v9011_v63  ;;  %7773 = vmatprep.mubr.msk.bf16.mxu0 %vm278_vm0, %v9455_v21  ;;  %v9510_v63 = vpack.c.bf16 %v462_v57, %v461_v56  ;;  %v1609_v56 = vld [vmem:[#allocation2 + $0xe1] sm:$0xff]  ;;  %3277 = vst.msk [vmem:[#allocation3 + $0x180] sm:$0xff] %vm3227_vm2, %v9143_v2  ;;  %3278 = vst.msk [vmem:[#allocation3 + $0x188] sm:$0xff] %vm3227_vm2, %v9143_v2 }
  0x55   : > { %7803 = vmatprep.subr.bf16.mxu0 %v9012_v20  ;;  %v999_v57 = vld [vmem:[#allocation2 + $0xe2] sm:$0xff]  ;;  %v9569_v59 = vpack.c.bf16 %v1609_v56, %v1608_v54  ;;  %v1009_v54 = vld [vmem:[#allocation2 + $0x15a] sm:$0xff]  ;;  %v9603_v56 = vpack.c.bf16 %v1619_v47, %v1618_v44  ;;  %v2519_v47 = vld [vmem:[#allocation2 + $0x91] sm:$0xff]  ;;  %3280 = vst.msk [vmem:[#allocation3 + $0x198] sm:$0xff] %vm3227_vm2, %v9143_v2 }
  0x56   : > { %v9575_v6 = vpack.c.bf16 %v999_v57, %v998_v53  ;;  %v1008_v53 = vld [vmem:[#allocation2 + $0x152] sm:$0xff]  ;;  %v9607_v57 = vpack.c.bf16 %v1007_v42, %v1006_v35  ;;  %v2518_v44 = vld [vmem:[#allocation2 + $0x81] sm:$0xff]  ;;  %3281 = vst.msk [vmem:[#allocation3 + $0x1a0] sm:$0xff] %vm3227_vm2, %v9143_v2 }
  0x57   : > { %7750 = vmatmul.mubr.msk.bf16.vlgmr.msra.gmra.mrb[0].mxu1 %vm278_vm0, %v9569_v59  ;;  %v9611_v61 = vpack.c.bf16 %v1009_v54, %v1008_v53  ;;  %v9022_v35 = vld [vmem:[%s10961_s1 + $0x78] sm:$0xff]   ;;  %3237 = vst.msk [vmem:[#allocation3 + $0x40] sm:$0x3] %vm3230_vm3, %v9143_v2  ;;  %3231 = vst.msk [vmem:[#allocation3 + $0x10] sm:$0x3] %vm3230_vm3, %v9143_v2 }
  0x58   : > { %7804 = vmatpush3.bf16.msra.mxu0 %v9012_v20  ;;  %v986_v20 = vld [vmem:[#allocation2 + $0x4a] sm:$0xff]  ;;  %7753 = vmatprep.mubr.msk.bf16.mxu1 %vm278_vm0, %v9571_v5  ;;  %v2517_v42 = vld [vmem:[#allocation2 + $0x79] sm:$0xff]  ;;  %3234 = vst.msk [vmem:[#allocation3 + $0x28] sm:$0x3] %vm3230_vm3, %v9143_v2  ;;  %3240 = vst.msk [vmem:[#allocation3 + $0x58] sm:$0x3] %vm3230_vm3, %v9143_v2 }
  0x59   : > { %7837 = vmatprep.subr.bf16.mxu0 %v9462_v26  ;;  %v9540_v29 = vpack.c.bf16 %v987_v22, %v986_v20  ;;  %v1614_v20 = vld [vmem:[#allocation2 + $0x121] sm:$0xff]  ;;  %v1615_v22 = vld [vmem:[#allocation2 + $0x129] sm:$0xff]  ;;  %v2520_v53 = vld [vmem:[#allocation2 + $0x99] sm:$0xff]  ;;  %v2546_v54 = vpack.c.bf16 %v2518_v44, %v2517_v42  ;;  %3243 = vst.msk [vmem:[#allocation3 + $0x70] sm:$0x3] %vm3230_vm3, %v9143_v2 }
  0x5a   : > { %3246 = vst.msk [vmem:[#allocation3 + $0x88] sm:$0x3] %vm3230_vm3, %v9143_v2  ;;  %3249 = vst.msk [vmem:[#allocation3 + $0xa0] sm:$0x3] %vm3230_vm3, %v9143_v2 }
  0x5b   : > { %7774 = vmatmul.mubr.msk.bf16.gmra.mrb[4].mxu0 %vm278_vm0, %v9466_v27  ;;  %3252 = vst.msk [vmem:[#allocation3 + $0xb8] sm:$0x3] %vm3230_vm3, %v9143_v2  ;;  %3255 = vst.msk [vmem:[#allocation3 + $0xd0] sm:$0x3] %vm3230_vm3, %v9143_v2 }
  0x5c   : > { %7777 = vmatprep.mubr.msk.bf16.mxu0 %vm278_vm0, %v9468_v28  ;;  %3258 = vst.msk [vmem:[#allocation3 + $0xe8] sm:$0x3] %vm3230_vm3, %v9143_v2  ;;  %3261 = vst.msk [vmem:[#allocation3 + $0x100] sm:$0x3] %vm3230_vm3, %v9143_v2 }
  0x5d   : > { %3264 = vst.msk [vmem:[#allocation3 + $0x118] sm:$0x3] %vm3230_vm3, %v9143_v2  ;;  %3267 = vst.msk [vmem:[#allocation3 + $0x130] sm:$0x3] %vm3230_vm3, %v9143_v2 }
  0x5e   : > { %3270 = vst.msk [vmem:[#allocation3 + $0x148] sm:$0x3] %vm3230_vm3, %v9143_v2  ;;  %3273 = vst.msk [vmem:[#allocation3 + $0x160] sm:$0x3] %vm3230_vm3, %v9143_v2 }
  0x5f   : > { %3276 = vst.msk [vmem:[#allocation3 + $0x178] sm:$0x3] %vm3230_vm3, %v9143_v2  ;;  %3279 = vst.msk [vmem:[#allocation3 + $0x190] sm:$0x3] %vm3230_vm3, %v9143_v2 }
  0x60   : > { %3282 = vst.msk [vmem:[#allocation3 + $0x1a8] sm:$0x3] %vm3230_vm3, %v9143_v2  ;;  %v9966_v2 = vld [vmem:[%s10963_s3] sm:$0xff]  }
  0x63   : > { %7778 = vmatmul.mubr.msk.bf16.gmra.mrb[8].mxu0 %vm278_vm0, %v9475_v33 }
  0x64   : > { %7781 = vmatprep.mubr.msk.bf16.mxu0 %vm278_vm0, %v9477_v34 }
  0x6b   : > { %7782 = vmatmul.mubr.msk.bf16.gmra.mrb[12].mxu0 %vm278_vm0, %v9483_v39 }
  0x6c   : > { %7785 = vmatprep.mubr.msk.bf16.mxu0 %vm278_vm0, %v9485_v40 }
  0x73   : > { %7786 = vmatmul.mubr.msk.bf16.gmra.mrb[16].mxu0 %vm278_vm0, %v9491_v45 }
  0x74   : > { %7789 = vmatprep.mubr.msk.bf16.mxu0 %vm278_vm0, %v9493_v46 }
  0x7b   : > { %7790 = vmatmul.mubr.msk.bf16.gmra.mrb[20].mxu0 %vm278_vm0, %v9499_v51 }
  0x7c   : > { %7793 = vmatprep.mubr.msk.bf16.mxu0 %vm278_vm0, %v9501_v52 }
  0x83   : > { %7794 = vmatmul.mubr.msk.bf16.gmra.mrb[24].mxu0 %vm278_vm0, %v9508_v60 }
  0x84   : > { %7797 = vmatprep.mubr.msk.bf16.mxu0 %vm278_vm0, %v9510_v63 }
  0x8b   : > { %7798 = vmatmul.mubr.msk.bf16.gmra.mrb[28].mxu0 %vm278_vm0, %v9518_v9 }
  0x8c   : > { %7805 = vmatprep.mubr.msk.bf16.mxu0 %vm278_vm0, %v1012_v10  ;;  %v9579_v10 = vpack.c.bf16 %v1001_v4, %v1000_v3  ;;  %v1621_v3 = vld [vmem:[#allocation2 + $0x171] sm:$0xff] }
  0x8d   : > { %v1010_v4 = vld [vmem:[#allocation2 + $0x16a] sm:$0xff] }
  0x93   : > { %7806 = vmatmul.mubr.msk.bf16.vlgmr.msra.gmra.mrb[0].mxu0 %vm278_vm0, %v9523_v16 }
  0x94   : > { %7838 = vmatpush3.bf16.msra.mxu0 %v9462_v26  ;;  %7809 = vmatprep.mubr.msk.bf16.mxu0 %vm278_vm0, %v9525_v17  ;;  %v990_v26 = vld [vmem:[#allocation2 + $0x7a] sm:$0xff] }
  0x95   : > { %7839 = vmatprep.subr.bf16.mxu0 %v9014_v18  ;;  %v9549_v36 = vpack.c.bf16 %v991_v31, %v990_v26  ;;  %v9587_v26 = vpack.c.bf16 %v1615_v22, %v1614_v20  ;;  %v9591_v31 = vpack.c.bf16 %v1003_v15, %v1002_v11  ;;  %v1011_v11 = vld [vmem:[#allocation2 + $0x172] sm:$0xff]  ;;  %v9016_v15 = vld [vmem:[%s10961_s1 + $0x48] sm:$0xff]  }
  0x96   : > { %v9017_v20 = vld [vmem:[%s10961_s1 + $0x50] sm:$0xff]  }
  0x98   : > { %7840 = vmatpush3.bf16.msra.mxu0 %v9014_v18  ;;  %v9585_v18 = vpack.c.bf16 %v1613_v14, %v1612_v12  ;;  %v9617_v12 = vpack.c.bf16 %v1621_v3, %v1620_v62  ;;  %v9621_v14 = vpack.c.bf16 %v1011_v11, %v1010_v4  ;;  %v2547_v62 = vpack.c.bf16 %v2520_v53, %v2519_v47  ;;  %v2521_v3 = vld [vmem:[#allocation2 + $0xa9] sm:$0xff]  ;;  %v2522_v4 = vld [vmem:[#allocation2 + $0xb1] sm:$0xff] }
  0x99   : > { %7873 = vmatprep.subr.bf16.mxu0 %v9538_v25  ;;  %v2548_v11 = vpack.c.bf16 %v2522_v4, %v2521_v3 }
  0x9a   : > { %7754 = vmatmul.mubr.msk.bf16.gmra.mrb[4].mxu1 %vm278_vm0, %v9585_v18 }
  0x9b   : > { %7810 = vmatmul.mubr.msk.bf16.gmra.mrb[4].mxu0 %vm278_vm0, %v9540_v29  ;;  %7757 = vmatprep.mubr.msk.bf16.mxu1 %vm278_vm0, %v9587_v26 }
  0x9c   : > { %7813 = vmatprep.mubr.msk.bf16.mxu0 %vm278_vm0, %v9542_v30 }
  0xa2   : > { %7758 = vmatmul.mubr.msk.bf16.gmra.mrb[8].mxu1 %vm278_vm0, %v9601_v43 }
  0xa3   : > { %7814 = vmatmul.mubr.msk.bf16.gmra.mrb[8].mxu0 %vm278_vm0, %v9549_v36  ;;  %7761 = vmatprep.mubr.msk.bf16.mxu1 %vm278_vm0, %v9603_v56 }
  0xa4   : > { %7817 = vmatprep.mubr.msk.bf16.mxu0 %vm278_vm0, %v9551_v37 }
  0xaa   : > { %7762 = vmatmul.mubr.msk.bf16.gmra.mrb[12].mxu1 %vm278_vm0, %v9617_v12 }
  0xab   : > { %7818 = vmatmul.mubr.msk.bf16.gmra.mrb[12].mxu0 %vm278_vm0, %v9559_v49 }
  0xac   : > { %7821 = vmatprep.mubr.msk.bf16.mxu0 %vm278_vm0, %v9563_v50 }
  0xb3   : > { %7822 = vmatmul.mubr.msk.bf16.gmra.mrb[16].mxu0 %vm278_vm0, %v9575_v6 }
  0xb4   : > { %7825 = vmatprep.mubr.msk.bf16.mxu0 %vm278_vm0, %v9579_v10 }
  0xbb   : > { %7826 = vmatmul.mubr.msk.bf16.gmra.mrb[20].mxu0 %vm278_vm0, %v9591_v31 }
  0xbc   : > { %7829 = vmatprep.mubr.msk.bf16.mxu0 %vm278_vm0, %v9595_v32 }
  0xc3   : > { %7830 = vmatmul.mubr.msk.bf16.gmra.mrb[24].mxu0 %vm278_vm0, %v9607_v57 }
  0xc4   : > { %7833 = vmatprep.mubr.msk.bf16.mxu0 %vm278_vm0, %v9611_v61 }
  0xcb   : > { %7834 = vmatmul.mubr.msk.bf16.gmra.mrb[28].mxu0 %vm278_vm0, %v9621_v14 }
  0xcc   : > { %7841 = vmatprep.mubr.msk.bf16.mxu0 %vm278_vm0, %v9450_v19  ;;  %v1316_v19 = vld [vmem:[#allocation2 + $0x180] sm:$0xff] }
  0xd3   : > { %7842 = vmatmul.mubr.msk.bf16.vlgmr.msra.gmra.mrb[0].mxu0 %vm278_vm0, %v9455_v21 }
  0xd4   : > { %7874 = vmatpush3.bf16.msra.mxu0 %v9538_v25  ;;  %7845 = vmatprep.mubr.msk.bf16.mxu0 %vm278_vm0, %v9466_v27  ;;  %v1317_v25 = vld [vmem:[#allocation2 + $0x188] sm:$0xff] }
  0xd5   : > { %7875 = vmatprep.subr.bf16.mxu0 %v9016_v15  ;;  %v9662_v22 = vpack.c.bf16 %v1317_v25, %v1316_v19 }
  0xd8   : > { %7876 = vmatpush3.bf16.msra.mxu0 %v9016_v15 }
  0xd9   : > { %7909 = vmatprep.subr.bf16.mxu0 %v9017_v20 }
  0xdb   : > { %7846 = vmatmul.mubr.msk.bf16.gmra.mrb[4].mxu0 %vm278_vm0, %v9468_v28 }
  0xdc   : > { %7849 = vmatprep.mubr.msk.bf16.mxu0 %vm278_vm0, %v9475_v33 }
  0xe3   : > { %7850 = vmatmul.mubr.msk.bf16.gmra.mrb[8].mxu0 %vm278_vm0, %v9477_v34 }
  0xe4   : > { %7853 = vmatprep.mubr.msk.bf16.mxu0 %vm278_vm0, %v9483_v39 }
  0xeb   : > { %7854 = vmatmul.mubr.msk.bf16.gmra.mrb[12].mxu0 %vm278_vm0, %v9485_v40 }
  0xec   : > { %7857 = vmatprep.mubr.msk.bf16.mxu0 %vm278_vm0, %v9491_v45 }
  0xf3   : > { %7858 = vmatmul.mubr.msk.bf16.gmra.mrb[16].mxu0 %vm278_vm0, %v9493_v46 }
  0xf4   : > { %7861 = vmatprep.mubr.msk.bf16.mxu0 %vm278_vm0, %v9499_v51 }
  0xfb   : > { %7862 = vmatmul.mubr.msk.bf16.gmra.mrb[20].mxu0 %vm278_vm0, %v9501_v52 }
  0xfc   : > { %7865 = vmatprep.mubr.msk.bf16.mxu0 %vm278_vm0, %v9508_v60 }
 0x103   : > { %7866 = vmatmul.mubr.msk.bf16.gmra.mrb[24].mxu0 %vm278_vm0, %v9510_v63 }
 0x104   : > { %7869 = vmatprep.mubr.msk.bf16.mxu0 %vm278_vm0, %v9518_v9 }
 0x10b   : > { %7870 = vmatmul.mubr.msk.bf16.gmra.mrb[28].mxu0 %vm278_vm0, %v9662_v22 }
 0x10c   : > { %7877 = vmatprep.mubr.msk.bf16.mxu0 %vm278_vm0, %v9414_v55  ;;  %v1622_v55 = vld [vmem:[#allocation2 + $0x181] sm:$0xff] }
 0x113   : > { %7878 = vmatmul.mubr.msk.bf16.vlgmr.msra.gmra.mrb[0].mxu0 %vm278_vm0, %v9419_v58  ;;  %v1623_v58 = vld [vmem:[#allocation2 + $0x189] sm:$0xff] }
 0x114   : > { %7910 = vmatpush3.bf16.msra.mxu0 %v9017_v20  ;;  %7881 = vmatprep.mubr.msk.bf16.mxu0 %vm278_vm0, %v9429_v0  ;;  %v9702_v0 = vpack.c.bf16 %v1623_v58, %v1622_v55  ;;  %v431_v58 = vld [vmem:[%s10962_s2] sm:$0x3] }
 0x115   : > { %7911 = vmatprep.subr.bf16.mxu0 %v9018_v23 }
 0x118   : > { %7912 = vmatpush3.bf16.msra.mxu0 %v9018_v23  ;;  %v3123_v23 = vlaneseq }
 0x119   : > { %7945 = vmatprep.subr.bf16.mxu0 %v9019_v24 }
 0x11b   : > { %7882 = vmatmul.mubr.msk.bf16.gmra.mrb[4].mxu0 %vm278_vm0, %v9431_v1  ;;  %v9020_v1 = vld [vmem:[%s10961_s1 + $0x68] sm:$0xff]  }
 0x11c   : > { %7885 = vmatprep.mubr.msk.bf16.mxu0 %vm278_vm0, %v9437_v7  ;;  %v9021_v7 = vld [vmem:[%s10961_s1 + $0x70] sm:$0xff]  }
 0x123   : > { %7886 = vmatmul.mubr.msk.bf16.gmra.mrb[8].mxu0 %vm278_vm0, %v9439_v8  ;;  %v1928_v8 = vld [vmem:[#allocation2 + $0x182] sm:$0xff] }
 0x124   : > { %7889 = vmatprep.mubr.msk.bf16.mxu0 %vm278_vm0, %v9445_v13  ;;  %v1929_v13 = vld [vmem:[#allocation2 + $0x18a] sm:$0xff] }
 0x12b   : > { %7890 = vmatmul.mubr.msk.bf16.gmra.mrb[12].mxu0 %vm278_vm0, %v9557_v48 }
 0x12c   : > { %7893 = vmatprep.mubr.msk.bf16.mxu0 %vm278_vm0, %v9569_v59 }
 0x133   : > { %7894 = vmatmul.mubr.msk.bf16.gmra.mrb[16].mxu0 %vm278_vm0, %v9571_v5 }
 0x134   : > { %7897 = vmatprep.mubr.msk.bf16.mxu0 %vm278_vm0, %v9585_v18 }
 0x13b   : > { %7898 = vmatmul.mubr.msk.bf16.gmra.mrb[20].mxu0 %vm278_vm0, %v9587_v26 }
 0x13c   : > { %7901 = vmatprep.mubr.msk.bf16.mxu0 %vm278_vm0, %v9601_v43 }
 0x143   : > { %7902 = vmatmul.mubr.msk.bf16.gmra.mrb[24].mxu0 %vm278_vm0, %v9603_v56 }
 0x144   : > { %7905 = vmatprep.mubr.msk.bf16.mxu0 %vm278_vm0, %v9617_v12 }
 0x14b   : > { %7906 = vmatmul.mubr.msk.bf16.gmra.mrb[28].mxu0 %vm278_vm0, %v9702_v0 }
 0x14c   : > { %7913 = vmatprep.mubr.msk.bf16.mxu0 %vm278_vm0, %v9523_v16  ;;  %v9742_v16 = vpack.c.bf16 %v1929_v13, %v1928_v8 }
 0x153   : > { %7914 = vmatmul.mubr.msk.bf16.vlgmr.msra.gmra.mrb[0].mxu0 %vm278_vm0, %v9525_v17 }
 0x154   : > { %7946 = vmatpush3.bf16.msra.mxu0 %v9019_v24  ;;  %7917 = vmatprep.mubr.msk.bf16.mxu0 %vm278_vm0, %v9540_v29  ;;  %v3124_v24 = vshrl.u32 %v3123_v23, 7 }
 0x155   : > { %7947 = vmatprep.subr.bf16.mxu0 %v9020_v1 }
 0x156   : > { %v10001_v55 = vsub.s32 0, %v3124_v24 }
 0x158   : > { %7948 = vmatpush3.bf16.msra.mxu0 %v9020_v1  ;;  %v10009_v1 = vrot.slane %v431_v58, %v10001_v55 }
 0x159   : > { %7981 = vmatprep.subr.bf16.mxu0 %v9021_v7 }
 0x15b   : > { %7918 = vmatmul.mubr.msk.bf16.gmra.mrb[4].mxu0 %vm278_vm0, %v9542_v30 }
 0x15c   : > { %7921 = vmatprep.mubr.msk.bf16.mxu0 %vm278_vm0, %v9549_v36 }
 0x163   : > { %7922 = vmatmul.mubr.msk.bf16.gmra.mrb[8].mxu0 %vm278_vm0, %v9551_v37 }
 0x164   : > { %7925 = vmatprep.mubr.msk.bf16.mxu0 %vm278_vm0, %v9559_v49 }
 0x16b   : > { %7926 = vmatmul.mubr.msk.bf16.gmra.mrb[12].mxu0 %vm278_vm0, %v9563_v50 }
 0x16c   : > { %7929 = vmatprep.mubr.msk.bf16.mxu0 %vm278_vm0, %v9575_v6 }
 0x173   : > { %7930 = vmatmul.mubr.msk.bf16.gmra.mrb[16].mxu0 %vm278_vm0, %v9579_v10 }
 0x174   : > { %7933 = vmatprep.mubr.msk.bf16.mxu0 %vm278_vm0, %v9591_v31 }
 0x17b   : > { %7934 = vmatmul.mubr.msk.bf16.gmra.mrb[20].mxu0 %vm278_vm0, %v9595_v32 }
 0x17c   : > { %7937 = vmatprep.mubr.msk.bf16.mxu0 %vm278_vm0, %v9607_v57 }
 0x183   : > { %7938 = vmatmul.mubr.msk.bf16.gmra.mrb[24].mxu0 %vm278_vm0, %v9611_v61 }
 0x184   : > { %7941 = vmatprep.mubr.msk.bf16.mxu0 %vm278_vm0, %v9621_v14 }
 0x18b   : > { %7942 = vmatmul.mubr.msk.bf16.gmra.mrb[28].mxu0 %vm278_vm0, %v9742_v16 }
 0x18c   : > { %7949 = vmatprep.mubr.msk.bf16.mxu0 %vm278_vm0, %v9455_v21  ;;  %v2235_v21 = vld [vmem:[#allocation2 + $0x198] sm:$0xff] }
 0x193   : > { %7950 = vmatmul.mubr.msk.bf16.vlgmr.msra.gmra.mrb[0].mxu0 %vm278_vm0, %v9466_v27  ;;  %v2236_v27 = vld [vmem:[#allocation2 + $0x1a0] sm:$0xff] }
 0x194   : > { %7982 = vmatpush3.bf16.msra.mxu0 %v9021_v7  ;;  %7953 = vmatprep.mubr.msk.bf16.mxu0 %vm278_vm0, %v9468_v28  ;;  %v2511_v28 = vld [vmem:[#allocation2 + $0x31] sm:$0xff] }
 0x195   : > { %7983 = vmatprep.subr.bf16.mxu0 %v9022_v35 }
 0x198   : > { %7984 = vmatpush3.bf16.msra.mxu0 %v9022_v35 }
 0x199   : > { %8017 = vmatprep.subr.bf16.mxu0 %v9023_v38 }
 0x19b   : > { %7954 = vmatmul.mubr.msk.bf16.gmra.mrb[4].mxu0 %vm278_vm0, %v9475_v33  ;;  %v2512_v33 = vld [vmem:[#allocation2 + $0x39] sm:$0xff] }
 0x19c   : > { %7957 = vmatprep.mubr.msk.bf16.mxu0 %vm278_vm0, %v9477_v34  ;;  %v2252_v34 = vpack.c.bf16 %v2236_v27, %v2235_v21 }
 0x1a3   : > { %7958 = vmatmul.mubr.msk.bf16.gmra.mrb[8].mxu0 %vm278_vm0, %v9483_v39  ;;  %v2543_v39 = vpack.c.bf16 %v2512_v33, %v2511_v28 }
 0x1a4   : > { %7961 = vmatprep.mubr.msk.bf16.mxu0 %vm278_vm0, %v9485_v40  ;;  %v9025_v40 = vld [vmem:[%s10963_s3 + $0x20] sm:$0xff]  }
 0x1a5   : > { %8053 = vmatprep.subr.bf16.mxu1 %v9025_v40 }
 0x1a6   : > { %8054 = vmatpush3.bf16.msra.mxu1 %v9025_v40 }
 0x1ab   : > { %7962 = vmatmul.mubr.msk.bf16.gmra.mrb[12].mxu0 %vm278_vm0, %v9491_v45  ;;  %v9026_v45 = vld [vmem:[%s10963_s3 + $0x28] sm:$0xff]  }
 0x1ac   : > { %7965 = vmatprep.mubr.msk.bf16.mxu0 %vm278_vm0, %v9493_v46  ;;  %v2513_v46 = vld [vmem:[#allocation2 + $0x49] sm:$0xff]  ;;  %8055 = vmatprep.subr.bf16.mxu1 %v9026_v45 }
 0x1ad   : > { %8056 = vmatpush3.bf16.msra.mxu1 %v9026_v45 }
 0x1b3   : > { %7966 = vmatmul.mubr.msk.bf16.gmra.mrb[16].mxu0 %vm278_vm0, %v9499_v51  ;;  %v2514_v51 = vld [vmem:[#allocation2 + $0x51] sm:$0xff] }
 0x1b4   : > { %7969 = vmatprep.mubr.msk.bf16.mxu0 %vm278_vm0, %v9501_v52  ;;  %v2515_v52 = vld [vmem:[#allocation2 + $0x61] sm:$0xff] }
 0x1bb   : > { %7970 = vmatmul.mubr.msk.bf16.gmra.mrb[20].mxu0 %vm278_vm0, %v9508_v60  ;;  %v2516_v60 = vld [vmem:[#allocation2 + $0x69] sm:$0xff] }
 0x1bc   : > { %7973 = vmatprep.mubr.msk.bf16.mxu0 %vm278_vm0, %v9510_v63  ;;  %v2544_v63 = vpack.c.bf16 %v2514_v51, %v2513_v46 }
 0x1c3   : > { %7974 = vmatmul.mubr.msk.bf16.gmra.mrb[24].mxu0 %vm278_vm0, %v9518_v9  ;;  %v2545_v9 = vpack.c.bf16 %v2516_v60, %v2515_v52 }
 0x1c4   : > { %7977 = vmatprep.mubr.msk.bf16.mxu0 %vm278_vm0, %v9662_v22 }
 0x1cb   : > { %7978 = vmatmul.mubr.msk.bf16.gmra.mrb[28].mxu0 %vm278_vm0, %v2252_v34 }
 0x1cc   : > { %7985 = vmatprep.mubr.msk.bf16.mxu0 %vm278_vm0, %v2543_v39 }
 0x1d3   : > { %7986 = vmatmul.mubr.msk.bf16.vlgmr.msra.gmra.mrb[0].mxu0 %vm278_vm0, %v2544_v63 }
 0x1d4   : > { %8018 = vmatpush3.bf16.msra.mxu0 %v9023_v38  ;;  %7989 = vmatprep.mubr.msk.bf16.mxu0 %vm278_vm0, %v2545_v9 }
 0x1d5   : > { %8019 = vmatprep.subr.bf16.mxu0 %v9024_v41 }
 0x1d8   : > { %8020 = vmatpush3.bf16.msra.mxu0 %v9024_v41 }
 0x1db   : > { %7990 = vmatmul.mubr.msk.bf16.gmra.mrb[4].mxu0 %vm278_vm0, %v2546_v54 }
 0x1dc   : > { %7993 = vmatprep.mubr.msk.bf16.mxu0 %vm278_vm0, %v2547_v62 }
 0x1e3   : > { %7994 = vmatmul.mubr.msk.bf16.gmra.mrb[8].mxu0 %vm278_vm0, %v2548_v11 }
 0x1e4   : > { %7997 = vmatprep.mubr.msk.bf16.mxu0 %vm278_vm0, %v9557_v48  ;;  %v2541_v48 = vld [vmem:[#allocation2 + $0x199] sm:$0xff] }
 0x1eb   : > { %7998 = vmatmul.mubr.msk.bf16.gmra.mrb[12].mxu0 %vm278_vm0, %v9569_v59  ;;  %v2542_v59 = vld [vmem:[#allocation2 + $0x1a1] sm:$0xff] }
 0x1ec   : > { %8001 = vmatprep.mubr.msk.bf16.mxu0 %vm278_vm0, %v9571_v5  ;;  %v2558_v5 = vpack.c.bf16 %v2542_v59, %v2541_v48 }
 0x1f3   : > { %8002 = vmatmul.mubr.msk.bf16.gmra.mrb[16].mxu0 %vm278_vm0, %v9585_v18 }
 0x1f4   : > { %8005 = vmatprep.mubr.msk.bf16.mxu0 %vm278_vm0, %v9587_v26 }
 0x1fb   : > { %8006 = vmatmul.mubr.msk.bf16.gmra.mrb[20].mxu0 %vm278_vm0, %v9601_v43 }
 0x1fc   : > { %8009 = vmatprep.mubr.msk.bf16.mxu0 %vm278_vm0, %v9603_v56 }
 0x203   : > { %8010 = vmatmul.mubr.msk.bf16.gmra.mrb[24].mxu0 %vm278_vm0, %v9617_v12 }
 0x204   : > { %8013 = vmatprep.mubr.msk.bf16.mxu0 %vm278_vm0, %v9702_v0  ;;  %v10006_v0 = vsub.s32 1, %v3124_v24 }
 0x206   : > { %v10012_v7 = vrot.slane %v431_v58, %v10006_v0  ;;  %v9030_v58 = vld [vmem:[%s10963_s3 + $0x8] sm:$0xff]  }
 0x20b   : > { %8014 = vmatmul.mubr.msk.bf16.gmra.mrb[28].mxu0 %vm278_vm0, %v2558_v5 }
 0x20c   : > { %8021 = vmatprep.mubr.msk.bf16.mxu0 %vm278_vm0, %v9525_v17  ;;  %v2847_v17 = vld [vmem:[#allocation2 + $0x19a] sm:$0xff] }
 0x213   : > { %8022 = vmatmul.mubr.msk.bf16.vlgmr.msra.gmra.mrb[0].mxu0 %vm278_vm0, %v9540_v29  ;;  %v2848_v29 = vld [vmem:[#allocation2 + $0x1a2] sm:$0xff] }
 0x214   : > { %8025 = vmatprep.mubr.msk.bf16.mxu0 %vm278_vm0, %v9542_v30  ;;  %v2864_v30 = vpack.c.bf16 %v2848_v29, %v2847_v17 }
 0x21b   : > { %8026 = vmatmul.mubr.msk.bf16.gmra.mrb[4].mxu0 %vm278_vm0, %v9549_v36  ;;  %v9027_v36 = vld [vmem:[%s10963_s3 + $0x30] sm:$0xff]  }
 0x21c   : > { %8029 = vmatprep.mubr.msk.bf16.mxu0 %vm278_vm0, %v9551_v37  ;;  %8057 = vmatprep.subr.bf16.mxu1 %v9027_v36  ;;  %v9028_v37 = vld [vmem:[%s10963_s3 + $0x38] sm:$0xff]  }
 0x21d   : > { %8058 = vmatpush3.bf16.msra.mxu1 %v9027_v36 }
 0x21e   : > { %8059 = vmatprep.subr.bf16.mxu1 %v9028_v37 }
 0x221   : > { %8060 = vmatpush3.bf16.msra.mxu1 %v9028_v37 }
 0x222   : > { %8093 = vmatprep.subr.bf16.mxu1 %v9966_v2 }
 0x223   : > { %8030 = vmatmul.mubr.msk.bf16.gmra.mrb[8].mxu0 %vm278_vm0, %v9559_v49  ;;  %v3372_v49 = vld [vmem:[#allocation3 + $0x1] sm:$0xff] }
 0x224   : > { %8033 = vmatprep.mubr.msk.bf16.mxu0 %vm278_vm0, %v9563_v50  ;;  %v3373_v50 = vld [vmem:[#allocation3 + $0x9] sm:$0xff] }
 0x22b   : > { %8034 = vmatmul.mubr.msk.bf16.gmra.mrb[12].mxu0 %vm278_vm0, %v9575_v6  ;;  %v3404_v6 = vpack.c.bf16 %v3373_v50, %v3372_v49 }
 0x22c   : > { %8037 = vmatprep.mubr.msk.bf16.mxu0 %vm278_vm0, %v9579_v10  ;;  %v9969_v10 = vpop.f32.mrb[0].mxu1 }
 0x22d   : > { %8061 = vmatprep.mubr.msk.bf16.mxu1 %vm3227_vm2, %v3404_v6  ;;  %v9971_v18 = vpop.f32.mrb[1].mxu1 }
 0x22e   : > { %v9973_v26 = vpop.f32.mrb[2].mxu1 }
 0x233   : > { %8038 = vmatmul.mubr.msk.bf16.gmra.mrb[16].mxu0 %vm278_vm0, %v9591_v31  ;;  %v9975_v31 = vpop.f32.mrb[3].mxu1 }
 0x234   : > { %8041 = vmatprep.mubr.msk.bf16.mxu0 %vm278_vm0, %v9595_v32  ;;  %v9977_v32 = vpop.f32.mrb[4].mxu1 }
 0x235   : > { %v9979_v43 = vpop.f32.mrb[5].mxu1 }
 0x236   : > { %v9981_v56 = vpop.f32.mrb[6].mxu1 }
 0x23b   : > { %8042 = vmatmul.mubr.msk.bf16.gmra.mrb[20].mxu0 %vm278_vm0, %v9607_v57  ;;  %v9983_v57 = vpop.f32.mrb[7].mxu1 }
 0x23c   : > { %8045 = vmatprep.mubr.msk.bf16.mxu0 %vm278_vm0, %v9611_v61  ;;  %v9985_v61 = vpop.f32.mrb[8].mxu1 }
 0x23d   : > { %v9987_v12 = vpop.f32.mrb[9].mxu1 }
 0x243   : > { %8046 = vmatmul.mubr.msk.bf16.gmra.mrb[24].mxu0 %vm278_vm0, %v9621_v14  ;;  %v9989_v14 = vpop.f32.mrb[10].mxu1 }
 0x244   : > { %8049 = vmatprep.mubr.msk.bf16.mxu0 %vm278_vm0, %v9742_v16  ;;  %v9991_v15 = vpop.f32.mrb[11].mxu1 }
 0x245   : > { %v9993_v20 = vpop.f32.mrb[12].mxu1 }
 0x246   : > { %v9995_v19 = vpop.f32.mrb[13].mxu1 }
 0x247   : > { %v9997_v25 = vpop.f32.mrb[14].mxu1 }
 0x248   : > { %v9999_v22 = vpop.f32.mrb[15].mxu1 }
 0x24b   : > { %8050 = vmatmul.mubr.msk.bf16.gmra.mrb[28].mxu0 %vm278_vm0, %v2864_v30 }
 0x2e6   : > { %v8023_v8 = vpop.f32.mrb[0].mxu0 }
 0x2e7   : > { %v3129_v13 = vmul.f32 %v8023_v8, %v10009_v1  ;;  %v2964_v16 = vpop.f32.mrb[1].mxu0 }
 0x2e8   : > { %v3127_v35 = vmul.f32 %v10009_v1, %v2964_v16  ;;  %v8024_v38 = vpop.f32.mrb[2].mxu0 }
 0x2e9   : > { %v3165_v21 = vadd.f32 %v10012_v7, %v3129_v13  ;;  %v3130_v27 = vmul.f32 %v8024_v38, %v10009_v1  ;;  %v2967_v28 = vpop.f32.mrb[3].mxu0 }
 0x2ea   : > { %v3163_v33 = vadd.f32 %v10012_v7, %v3127_v35  ;;  %v3128_v34 = vmul.f32 %v10009_v1, %v2967_v28 }
 0x2eb   : > { %v3197_v39 = vmax.f32 %v3165_v21, 0.0  ;;  %v3166_v40 = vadd.f32 %v10012_v7, %v3130_v27 }
 0x2ec   : > { %v3195_v45 = vmax.f32 %v3163_v33, 0.0  ;;  %v3164_v46 = vadd.f32 %v10012_v7, %v3128_v34 }
 0x2ed   : > { %3286 = vst.msk [vmem:[#allocation3 + $0x31] sm:$0xff] %vm3227_vm2, %v3197_v39  ;;  %v3198_v51 = vmax.f32 %v3166_v40, 0.0  ;;  %v9031_v39 = vld [vmem:[%s10963_s3 + $0x10] sm:$0xff]  }
 0x2ee   : > { %3284 = vst.msk [vmem:[#allocation3 + $0x19] sm:$0xff] %vm3227_vm2, %v3195_v45  ;;  %v3196_v52 = vmax.f32 %v3164_v46, 0.0  ;;  %v8027_v60 = vpop.f32.mrb[4].mxu0 }
 0x2ef   : > { %3287 = vst.msk [vmem:[#allocation3 + $0x39] sm:$0xff] %vm3227_vm2, %v3198_v51  ;;  %v3133_v63 = vmul.f32 %v8027_v60, %v10009_v1  ;;  %v2980_v9 = vpop.f32.mrb[5].mxu0 }
 0x2f0   : > { %3285 = vst.msk [vmem:[#allocation3 + $0x21] sm:$0xff] %vm3227_vm2, %v3196_v52  ;;  %v3131_v41 = vmul.f32 %v10009_v1, %v2980_v9  ;;  %v8028_v42 = vpop.f32.mrb[6].mxu0 }
 0x2f1   : > { %v3169_v44 = vadd.f32 %v10012_v7, %v3133_v63  ;;  %v3134_v47 = vmul.f32 %v8028_v42, %v10009_v1  ;;  %v2983_v53 = vpop.f32.mrb[7].mxu0 }
 0x2f2   : > { %v3167_v54 = vadd.f32 %v10012_v7, %v3131_v41  ;;  %v3132_v62 = vmul.f32 %v10009_v1, %v2983_v53 }
 0x2f3   : > { %v3201_v3 = vmax.f32 %v3169_v44, 0.0  ;;  %v3170_v4 = vadd.f32 %v10012_v7, %v3134_v47  ;;  %v9032_v47 = vld [vmem:[%s10963_s3 + $0x18] sm:$0xff]  }
 0x2f4   : > { %v3199_v11 = vmax.f32 %v3167_v54, 0.0  ;;  %v3168_v48 = vadd.f32 %v10012_v7, %v3132_v62  ;;  %v3376_v24 = vld [vmem:[#allocation3 + $0x31] sm:$0xff] }
 0x2f5   : > { %3290 = vst.msk [vmem:[#allocation3 + $0x61] sm:$0xff] %vm3227_vm2, %v3201_v3  ;;  %v3202_v59 = vmax.f32 %v3170_v4, 0.0  ;;  %v3374_v37 = vld [vmem:[#allocation3 + $0x19] sm:$0xff] }
 0x2f6   : > { %3288 = vst.msk [vmem:[#allocation3 + $0x49] sm:$0xff] %vm3227_vm2, %v3199_v11  ;;  %v3200_v5 = vmax.f32 %v3168_v48, 0.0  ;;  %v8031_v17 = vpop.f32.mrb[8].mxu0  ;;  %v3377_v29 = vld [vmem:[#allocation3 + $0x39] sm:$0xff] }
 0x2f7   : > { %3291 = vst.msk [vmem:[#allocation3 + $0x69] sm:$0xff] %vm3227_vm2, %v3202_v59  ;;  %v3137_v30 = vmul.f32 %v8031_v17, %v10009_v1  ;;  %v2996_v36 = vpop.f32.mrb[9].mxu0  ;;  %v3375_v49 = vld [vmem:[#allocation3 + $0x21] sm:$0xff]  ;;  %v10047_v35 = vpack.c.bf16 %v3377_v29, %v3376_v24  ;;  %v10087_v29 = vld [vmem:[%s10963_s3 + $0x40] sm:$0xff]  }
 0x2f8   : > { %3289 = vst.msk [vmem:[#allocation3 + $0x51] sm:$0xff] %vm3227_vm2, %v3200_v5  ;;  %v3135_v50 = vmul.f32 %v10009_v1, %v2996_v36  ;;  %v8032_v6 = vpop.f32.mrb[10].mxu0  ;;  %v10040_v23 = vpack.c.bf16 %v3375_v49, %v3374_v37 }
 0x2f9   : > { %v3173_v8 = vadd.f32 %v10012_v7, %v3137_v30  ;;  %v3138_v13 = vmul.f32 %v8032_v6, %v10009_v1  ;;  %v2999_v16 = vpop.f32.mrb[11].mxu0 }
 0x2fa   : > { %v3171_v38 = vadd.f32 %v10012_v7, %v3135_v50  ;;  %v3136_v21 = vmul.f32 %v10009_v1, %v2999_v16  ;;  %8062 = vmatmul.mubr.msk.bf16.vlgmr.msra.gmra.mrb[16].mxu1 %vm3227_vm2, %v10040_v23 }
 0x2fb   : > { %v3205_v27 = vmax.f32 %v3173_v8, 0.0  ;;  %v3174_v28 = vadd.f32 %v10012_v7, %v3138_v13  ;;  %8065 = vmatprep.mubr.msk.bf16.mxu1 %vm3227_vm2, %v10047_v35  ;;  %8094 = vmatpush3.bf16.msra.mxu1 %v9966_v2 }
 0x2fc   : > { %v3203_v33 = vmax.f32 %v3171_v38, 0.0  ;;  %v3172_v34 = vadd.f32 %v10012_v7, %v3136_v21  ;;  %8095 = vmatprep.subr.bf16.mxu1 %v9030_v58  ;;  %v3380_v44 = vld [vmem:[#allocation3 + $0x61] sm:$0xff] }
 0x2fd   : > { %3294 = vst.msk [vmem:[#allocation3 + $0x91] sm:$0xff] %vm3227_vm2, %v3205_v27  ;;  %v3206_v40 = vmax.f32 %v3174_v28, 0.0  ;;  %v3378_v60 = vld [vmem:[#allocation3 + $0x49] sm:$0xff] }
 0x2fe   : > { %3292 = vst.msk [vmem:[#allocation3 + $0x79] sm:$0xff] %vm3227_vm2, %v3203_v33  ;;  %v3204_v45 = vmax.f32 %v3172_v34, 0.0  ;;  %v8035_v46 = vpop.f32.mrb[12].mxu0  ;;  %v3381_v51 = vld [vmem:[#allocation3 + $0x69] sm:$0xff] }
 0x2ff   : > { %3295 = vst.msk [vmem:[#allocation3 + $0x99] sm:$0xff] %vm3227_vm2, %v3206_v40  ;;  %v3141_v2 = vmul.f32 %v8035_v46, %v10009_v1  ;;  %v3012_v52 = vpop.f32.mrb[13].mxu0  ;;  %v3379_v63 = vld [vmem:[#allocation3 + $0x51] sm:$0xff]  ;;  %8096 = vmatpush3.bf16.msra.mxu1 %v9030_v58  ;;  %v10074_v3 = vpack.c.bf16 %v3381_v51, %v3380_v44 }
 0x300   : > { %3293 = vst.msk [vmem:[#allocation3 + $0x81] sm:$0xff] %vm3227_vm2, %v3204_v45  ;;  %v3139_v9 = vmul.f32 %v10009_v1, %v3012_v52  ;;  %v8036_v41 = vpop.f32.mrb[14].mxu0  ;;  %v10067_v42 = vpack.c.bf16 %v3379_v63, %v3378_v60  ;;  %8097 = vmatprep.subr.bf16.mxu1 %v9031_v39 }
 0x301   : > { %v3177_v53 = vadd.f32 %v10012_v7, %v3141_v2  ;;  %v3142_v54 = vmul.f32 %v8036_v41, %v10009_v1  ;;  %v3015_v62 = vpop.f32.mrb[15].mxu0 }
 0x302   : > { %v3175_v4 = vadd.f32 %v10012_v7, %v3139_v9  ;;  %v3140_v11 = vmul.f32 %v10009_v1, %v3015_v62  ;;  %8066 = vmatmul.mubr.msk.bf16.gmra.mrb[20].mxu1 %vm3227_vm2, %v10067_v42 }
 0x303   : > { %v3209_v48 = vmax.f32 %v3177_v53, 0.0  ;;  %v3178_v59 = vadd.f32 %v10012_v7, %v3142_v54  ;;  %8069 = vmatprep.mubr.msk.bf16.mxu1 %vm3227_vm2, %v10074_v3  ;;  %8098 = vmatpush3.bf16.msra.mxu1 %v9031_v39 }
 0x304   : > { %v3207_v5 = vmax.f32 %v3175_v4, 0.0  ;;  %v3176_v17 = vadd.f32 %v10012_v7, %v3140_v11  ;;  %8099 = vmatprep.subr.bf16.mxu1 %v9032_v47  ;;  %v3384_v38 = vld [vmem:[#allocation3 + $0x91] sm:$0xff] }
 0x305   : > { %3298 = vst.msk [vmem:[#allocation3 + $0xc1] sm:$0xff] %vm3227_vm2, %v3209_v48  ;;  %v3210_v30 = vmax.f32 %v3178_v59, 0.0  ;;  %v3382_v24 = vld [vmem:[#allocation3 + $0x79] sm:$0xff] }
 0x306   : > { %3296 = vst.msk [vmem:[#allocation3 + $0xa9] sm:$0xff] %vm3227_vm2, %v3207_v5  ;;  %v3208_v36 = vmax.f32 %v3176_v17, 0.0  ;;  %v8039_v37 = vpop.f32.mrb[16].mxu0  ;;  %v3385_v49 = vld [vmem:[#allocation3 + $0x99] sm:$0xff] }
 0x307   : > { %3299 = vst.msk [vmem:[#allocation3 + $0xc9] sm:$0xff] %vm3227_vm2, %v3210_v30  ;;  %v8453_v50 = vadd.f32 %v8039_v37, %v9969_v10  ;;  %v3028_v6 = vpop.f32.mrb[17].mxu0  ;;  %v3383_v58 = vld [vmem:[#allocation3 + $0x81] sm:$0xff]  ;;  %8100 = vmatpush3.bf16.msra.mxu1 %v9032_v47  ;;  %v10100_v10 = vpack.c.bf16 %v3385_v49, %v3384_v38 }
 0x308   : > { %3297 = vst.msk [vmem:[#allocation3 + $0xb1] sm:$0xff] %vm3227_vm2, %v3208_v36  ;;  %v8454_v8 = vadd.f32 %v3028_v6, %v9971_v18  ;;  %v8040_v13 = vpop.f32.mrb[18].mxu0  ;;  %v10095_v16 = vpack.c.bf16 %v3383_v58, %v3382_v24  ;;  %8133 = vmatprep.subr.bf16.mxu1 %v10087_v29 }
 0x309   : > { %v3145_v21 = vmul.f32 %v8453_v50, %v10009_v1  ;;  %v8455_v27 = vadd.f32 %v8040_v13, %v9973_v26  ;;  %v3031_v28 = vpop.f32.mrb[19].mxu0 }
 0x30a   : > { %v3143_v33 = vmul.f32 %v8454_v8, %v10009_v1  ;;  %v8456_v34 = vadd.f32 %v3031_v28, %v9975_v31  ;;  %8070 = vmatmul.mubr.msk.bf16.gmra.mrb[24].mxu1 %vm3227_vm2, %v10095_v16 }
 0x30b   : > { %v3181_v18 = vadd.f32 %v10012_v7, %v3145_v21  ;;  %v3146_v39 = vmul.f32 %v8455_v27, %v10009_v1  ;;  %8073 = vmatprep.mubr.msk.bf16.mxu1 %vm3227_vm2, %v10100_v10 }
 0x30c   : > { %v3179_v40 = vadd.f32 %v10012_v7, %v3143_v33  ;;  %v3144_v26 = vmul.f32 %v8456_v34, %v10009_v1  ;;  %v3388_v4 = vld [vmem:[#allocation3 + $0xc1] sm:$0xff] }
 0x30d   : > { %v3213_v45 = vmax.f32 %v3181_v18, 0.0  ;;  %v3182_v46 = vadd.f32 %v10012_v7, %v3146_v39  ;;  %v3386_v41 = vld [vmem:[#allocation3 + $0xa9] sm:$0xff] }
 0x30e   : > { %v3211_v51 = vmax.f32 %v3179_v40, 0.0  ;;  %v3180_v31 = vadd.f32 %v10012_v7, %v3144_v26  ;;  %v8043_v2 = vpop.f32.mrb[20].mxu0  ;;  %v3389_v52 = vld [vmem:[#allocation3 + $0xc9] sm:$0xff] }
 0x30f   : > { %3302 = vst.msk [vmem:[#allocation3 + $0xf1] sm:$0xff] %vm3227_vm2, %v3213_v45  ;;  %v3214_v60 = vmax.f32 %v3182_v46, 0.0  ;;  %v8457_v63 = vadd.f32 %v8043_v2, %v9977_v32  ;;  %v3044_v9 = vpop.f32.mrb[21].mxu0  ;;  %v3387_v44 = vld [vmem:[#allocation3 + $0xb1] sm:$0xff]  ;;  %v10123_v32 = vpack.c.bf16 %v3389_v52, %v3388_v4 }
 0x310   : > { %3300 = vst.msk [vmem:[#allocation3 + $0xd9] sm:$0xff] %vm3227_vm2, %v3211_v51  ;;  %v3212_v47 = vmax.f32 %v3180_v31, 0.0  ;;  %v8458_v53 = vadd.f32 %v3044_v9, %v9979_v43  ;;  %v8044_v54 = vpop.f32.mrb[22].mxu0  ;;  %v10118_v62 = vpack.c.bf16 %v3387_v44, %v3386_v41 }
 0x311   : > { %3303 = vst.msk [vmem:[#allocation3 + $0xf9] sm:$0xff] %vm3227_vm2, %v3214_v60  ;;  %v3149_v11 = vmul.f32 %v8457_v63, %v10009_v1  ;;  %v8459_v48 = vadd.f32 %v8044_v54, %v9981_v56  ;;  %v3047_v59 = vpop.f32.mrb[23].mxu0 }
 0x312   : > { %3301 = vst.msk [vmem:[#allocation3 + $0xe1] sm:$0xff] %vm3227_vm2, %v3212_v47  ;;  %v3147_v5 = vmul.f32 %v8458_v53, %v10009_v1  ;;  %v8460_v17 = vadd.f32 %v3047_v59, %v9983_v57  ;;  %8074 = vmatmul.mubr.msk.bf16.gmra.mrb[28].mxu1 %vm3227_vm2, %v10118_v62 }
 0x313   : > { %v3185_v43 = vadd.f32 %v10012_v7, %v3149_v11  ;;  %v3150_v30 = vmul.f32 %v8459_v48, %v10009_v1  ;;  %8077 = vmatprep.mubr.msk.bf16.mxu1 %vm3227_vm2, %v10123_v32 }
 0x314   : > { %v3183_v56 = vadd.f32 %v10012_v7, %v3147_v5  ;;  %v3148_v36 = vmul.f32 %v8460_v17, %v10009_v1 }
 0x315   : > { %v3217_v37 = vmax.f32 %v3185_v43, 0.0  ;;  %v3186_v49 = vadd.f32 %v10012_v7, %v3150_v30 }
 0x316   : > { %v3215_v50 = vmax.f32 %v3183_v56, 0.0  ;;  %v3184_v57 = vadd.f32 %v10012_v7, %v3148_v36  ;;  %v8047_v6 = vpop.f32.mrb[24].mxu0 }
 0x317   : > { %3306 = vst.msk [vmem:[#allocation3 + $0x121] sm:$0xff] %vm3227_vm2, %v3217_v37  ;;  %v3218_v24 = vmax.f32 %v3186_v49, 0.0  ;;  %v8461_v58 = vadd.f32 %v8047_v6, %v9985_v61  ;;  %v3060_v8 = vpop.f32.mrb[25].mxu0  ;;  %v3390_v18 = vld [vmem:[#allocation3 + $0xd9] sm:$0xff] }
 0x318   : > { %3304 = vst.msk [vmem:[#allocation3 + $0x109] sm:$0xff] %vm3227_vm2, %v3215_v50  ;;  %v3216_v13 = vmax.f32 %v3184_v57, 0.0  ;;  %v8462_v38 = vadd.f32 %v3060_v8, %v9987_v12  ;;  %v8048_v21 = vpop.f32.mrb[26].mxu0  ;;  %v3393_v27 = vld [vmem:[#allocation3 + $0xf9] sm:$0xff]  ;;  %v3392_v12 = vld [vmem:[#allocation3 + $0xf1] sm:$0xff] }
 0x319   : > { %3307 = vst.msk [vmem:[#allocation3 + $0x129] sm:$0xff] %vm3227_vm2, %v3218_v24  ;;  %v3153_v28 = vmul.f32 %v8461_v58, %v10009_v1  ;;  %v8463_v33 = vadd.f32 %v8048_v21, %v9989_v14  ;;  %v3063_v34 = vpop.f32.mrb[27].mxu0  ;;  %v3391_v39 = vld [vmem:[#allocation3 + $0xe1] sm:$0xff]  ;;  %v10152_v51 = vpack.c.bf16 %v3393_v27, %v3392_v12  ;;  %v3318_v12 = vld [vmem:[#allocation3 + $0x18] sm:$0xff] }
 0x31a   : > { %3305 = vst.msk [vmem:[#allocation3 + $0x111] sm:$0xff] %vm3227_vm2, %v3216_v13  ;;  %v3151_v61 = vmul.f32 %v8462_v38, %v10009_v1  ;;  %v8464_v40 = vadd.f32 %v3063_v34, %v9991_v15  ;;  %v10148_v26 = vpack.c.bf16 %v3391_v39, %v3390_v18 }
 0x31b   : > { %v3189_v45 = vadd.f32 %v10012_v7, %v3153_v28  ;;  %v3154_v46 = vmul.f32 %v8463_v33, %v10009_v1  ;;  %v3317_v28 = vld [vmem:[#allocation3 + $0x8] sm:$0xff] }
 0x31c   : > { %v3187_v14 = vadd.f32 %v10012_v7, %v3151_v61  ;;  %v3152_v31 = vmul.f32 %v8464_v40, %v10009_v1  ;;  %8078 = vmatmul.mubr.msk.bf16.gmra.mrb[32].mxu1 %vm3227_vm2, %v10148_v26  ;;  %v3319_v61 = vld [vmem:[#allocation3 + $0x20] sm:$0xff]  ;;  %v3321_v40 = vld [vmem:[#allocation3 + $0x38] sm:$0xff] }
 0x31d   : > { %v3221_v2 = vmax.f32 %v3189_v45, 0.0  ;;  %v3190_v52 = vadd.f32 %v10012_v7, %v3154_v46  ;;  %8081 = vmatprep.mubr.msk.bf16.mxu1 %vm3227_vm2, %v10152_v51  ;;  %v10203_v45 = vpack.c.bf16 %v3319_v61, %v3318_v12  ;;  %v3320_v46 = vld [vmem:[#allocation3 + $0x30] sm:$0xff] }
 0x31e   : > { %v3219_v15 = vmax.f32 %v3187_v14, 0.0  ;;  %v3188_v60 = vadd.f32 %v10012_v7, %v3152_v31  ;;  %v8051_v63 = vpop.f32.mrb[28].mxu0  ;;  %v9034_v14 = vld [vmem:[%s10963_s3 + $0x48] sm:$0xff]   ;;  %v10208_v31 = vpack.c.bf16 %v3321_v40, %v3320_v46  ;;  %v3896_v61 = vld [vmem:[#allocation3 + $0xa] sm:$0xff] }
 0x31f   : > { %3310 = vst.msk [vmem:[#allocation3 + $0x151] sm:$0xff] %vm3227_vm2, %v3221_v2  ;;  %v3222_v9 = vmax.f32 %v3190_v52, 0.0  ;;  %v8465_v41 = vadd.f32 %v8051_v63, %v9993_v20  ;;  %v3076_v44 = vpop.f32.mrb[29].mxu0  ;;  %v3394_v5 = vld [vmem:[#allocation3 + $0x109] sm:$0xff]  ;;  %v9035_v2 = vld [vmem:[%s10963_s3 + $0x50] sm:$0xff]  }
 0x320   : > { %3308 = vst.msk [vmem:[#allocation3 + $0x139] sm:$0xff] %vm3227_vm2, %v3219_v15  ;;  %v3220_v47 = vmax.f32 %v3188_v60, 0.0  ;;  %v8466_v53 = vadd.f32 %v3076_v44, %v9995_v19  ;;  %v8052_v54 = vpop.f32.mrb[30].mxu0  ;;  %v3397_v4 = vld [vmem:[#allocation3 + $0x129] sm:$0xff]  ;;  %v3396_v19 = vld [vmem:[#allocation3 + $0x121] sm:$0xff] }
 0x321   : > { %3311 = vst.msk [vmem:[#allocation3 + $0x159] sm:$0xff] %vm3227_vm2, %v3222_v9  ;;  %v3157_v11 = vmul.f32 %v8465_v41, %v10009_v1  ;;  %v8467_v48 = vadd.f32 %v8052_v54, %v9997_v25  ;;  %v3079_v59 = vpop.f32.mrb[31].mxu0  ;;  %v3395_v17 = vld [vmem:[#allocation3 + $0x111] sm:$0xff]  ;;  %v10176_v37 = vpack.c.bf16 %v3397_v4, %v3396_v19  ;;  %v3325_v15 = vld [vmem:[#allocation3 + $0x68] sm:$0xff]  ;;  %v3324_v9 = vld [vmem:[#allocation3 + $0x60] sm:$0xff] }
 0x322   : > { %3309 = vst.msk [vmem:[#allocation3 + $0x141] sm:$0xff] %vm3227_vm2, %v3220_v47  ;;  %v3155_v20 = vmul.f32 %v8466_v53, %v10009_v1  ;;  %v8468_v43 = vadd.f32 %v3079_v59, %v9999_v22  ;;  %v10172_v30 = vpack.c.bf16 %v3395_v17, %v3394_v5  ;;  %v3323_v52 = vld [vmem:[#allocation3 + $0x50] sm:$0xff]  ;;  %v3322_v60 = vld [vmem:[#allocation3 + $0x48] sm:$0xff]  ;;  %v10223_v41 = vpack.c.bf16 %v3325_v15, %v3324_v9  ;;  %v3327_v47 = vld [vmem:[#allocation3 + $0x80] sm:$0xff] }
 0x323   : > { %v3193_v56 = vadd.f32 %v10012_v7, %v3157_v11  ;;  %v3158_v36 = vmul.f32 %v8467_v48, %v10009_v1  ;;  %v10218_v63 = vpack.c.bf16 %v3323_v52, %v3322_v60  ;;  %v9037_v44 = vld [vmem:[%s10963_s3 + $0x60] sm:$0xff]   ;;  %v3329_v53 = vld [vmem:[#allocation3 + $0x98] sm:$0xff]  ;;  %v3333_v5 = vld [vmem:[#allocation3 + $0xc8] sm:$0xff] }
 0x324   : > { %v3191_v25 = vadd.f32 %v10012_v7, %v3155_v20  ;;  %v3156_v49 = vmul.f32 %v8468_v43, %v10009_v1  ;;  %8082 = vmatmul.mubr.msk.bf16.gmra.mrb[36].mxu1 %vm3227_vm2, %v10172_v30  ;;  %v3326_v54 = vld [vmem:[#allocation3 + $0x78] sm:$0xff]  ;;  %v3328_v11 = vld [vmem:[#allocation3 + $0x90] sm:$0xff]  ;;  %v3330_v17 = vld [vmem:[#allocation3 + $0xa8] sm:$0xff] }
 0x325   : > { %v3225_v50 = vmax.f32 %v3193_v56, 0.0  ;;  %v3194_v57 = vadd.f32 %v10012_v7, %v3158_v36  ;;  %8085 = vmatprep.mubr.msk.bf16.mxu1 %vm3227_vm2, %v10176_v37  ;;  %v10232_v4 = vpack.c.bf16 %v3327_v47, %v3326_v54  ;;  %v10234_v48 = vpack.c.bf16 %v3329_v53, %v3328_v11  ;;  %v3331_v59 = vld [vmem:[#allocation3 + $0xb0] sm:$0xff]  ;;  %v3332_v43 = vld [vmem:[#allocation3 + $0xc0] sm:$0xff]  ;;  %v3337_v36 = vld [vmem:[#allocation3 + $0xf8] sm:$0xff] }
 0x326   : > { %v3223_v22 = vmax.f32 %v3191_v25, 0.0  ;;  %v3192_v6 = vadd.f32 %v10012_v7, %v3156_v49  ;;  %v3400_v21 = vld [vmem:[#allocation3 + $0x151] sm:$0xff]  ;;  %v3316_v7 = vld [vmem:[#allocation3] sm:$0xff]  ;;  %v10240_v20 = vpack.c.bf16 %v3331_v59, %v3330_v17  ;;  %v10242_v19 = vpack.c.bf16 %v3333_v5, %v3332_v43 }
 0x327   : > { %3314 = vst.msk [vmem:[#allocation3 + $0x181] sm:$0xff] %vm3227_vm2, %v3225_v50  ;;  %v3226_v24 = vmax.f32 %v3194_v57, 0.0  ;;  %v3398_v1 = vld [vmem:[#allocation3 + $0x139] sm:$0xff]  ;;  %v3348_v18 = vpack.c.bf16 %v3317_v28, %v3316_v7  ;;  %v3336_v50 = vld [vmem:[#allocation3 + $0xf0] sm:$0xff]  ;;  %v3898_v52 = vld [vmem:[#allocation3 + $0x22] sm:$0xff] }
 0x328   : > { %3312 = vst.msk [vmem:[#allocation3 + $0x169] sm:$0xff] %vm3227_vm2, %v3223_v22  ;;  %v3224_v58 = vmax.f32 %v3192_v6, 0.0  ;;  %v3401_v8 = vld [vmem:[#allocation3 + $0x159] sm:$0xff]  ;;  %v10250_v57 = vpack.c.bf16 %v3337_v36, %v3336_v50  ;;  %v3339_v22 = vld [vmem:[#allocation3 + $0x110] sm:$0xff]  ;;  %v3341_v6 = vld [vmem:[#allocation3 + $0x128] sm:$0xff] }
 0x329   : > { %3315 = vst.msk [vmem:[#allocation3 + $0x189] sm:$0xff] %vm3227_vm2, %v3226_v24  ;;  %v3399_v13 = vld [vmem:[#allocation3 + $0x141] sm:$0xff]  ;;  %v10192_v27 = vpack.c.bf16 %v3401_v8, %v3400_v21  ;;  %v3334_v25 = vld [vmem:[#allocation3 + $0xd8] sm:$0xff]  ;;  %v3901_v54 = vld [vmem:[#allocation3 + $0x4a] sm:$0xff] }
 0x32a   : > { %3313 = vst.msk [vmem:[#allocation3 + $0x171] sm:$0xff] %vm3227_vm2, %v3224_v58  ;;  %v10190_v38 = vpack.c.bf16 %v3399_v13, %v3398_v1  ;;  %v3335_v56 = vld [vmem:[#allocation3 + $0xe0] sm:$0xff]  ;;  %v3338_v24 = vld [vmem:[#allocation3 + $0x108] sm:$0xff]  ;;  %v3345_v21 = vld [vmem:[#allocation3 + $0x158] sm:$0xff] }
 0x32b   : > { %v10248_v49 = vpack.c.bf16 %v3335_v56, %v3334_v25  ;;  %v10256_v58 = vpack.c.bf16 %v3339_v22, %v3338_v24  ;;  %v3340_v8 = vld [vmem:[#allocation3 + $0x120] sm:$0xff]  ;;  %v3342_v7 = vld [vmem:[#allocation3 + $0x138] sm:$0xff]  ;;  %v3904_v5 = vld [vmem:[#allocation3 + $0x6a] sm:$0xff] }
 0x32c   : > { %8086 = vmatmul.mubr.msk.bf16.gmra.mrb[40].mxu1 %vm3227_vm2, %v10190_v38  ;;  %v10258_v1 = vpack.c.bf16 %v3341_v6, %v3340_v8  ;;  %v3343_v13 = vld [vmem:[#allocation3 + $0x140] sm:$0xff]  ;;  %v3899_v15 = vld [vmem:[#allocation3 + $0x32] sm:$0xff]  ;;  %v3909_v8 = vld [vmem:[#allocation3 + $0xaa] sm:$0xff] }
 0x32d   : > { %8089 = vmatprep.mubr.msk.bf16.mxu1 %vm3227_vm2, %v10192_v27  ;;  %v10264_v28 = vpack.c.bf16 %v3343_v13, %v3342_v7  ;;  %v3900_v60 = vld [vmem:[#allocation3 + $0x3a] sm:$0xff]  ;;  %v3902_v11 = vld [vmem:[#allocation3 + $0x52] sm:$0xff]  ;;  %v3903_v59 = vld [vmem:[#allocation3 + $0x62] sm:$0xff] }
 0x32e   : > { %v10282_v47 = vpack.c.bf16 %v3900_v60, %v3899_v15  ;;  %v9039_v53 = vld [vmem:[%s10963_s3 + $0x70] sm:$0xff]   ;;  %v10291_v17 = vpack.c.bf16 %v3902_v11, %v3901_v54  ;;  %v10296_v43 = vpack.c.bf16 %v3904_v5, %v3903_v59  ;;  %v9041_v56 = vld [vmem:[%s10963_s3 + $0x80] sm:$0xff]  }
 0x32f   : > { %v3402_v33 = vld [vmem:[#allocation3 + $0x169] sm:$0xff]  ;;  %v3905_v36 = vld [vmem:[#allocation3 + $0x7a] sm:$0xff]  ;;  %v3907_v50 = vld [vmem:[#allocation3 + $0x92] sm:$0xff] }
 0x330   : > { %v3346_v12 = vld [vmem:[#allocation3 + $0x168] sm:$0xff]  ;;  %v3908_v22 = vld [vmem:[#allocation3 + $0x9a] sm:$0xff]  ;;  %v3910_v13 = vld [vmem:[#allocation3 + $0xb2] sm:$0xff] }
 0x331   : > { %v3403_v34 = vld [vmem:[#allocation3 + $0x171] sm:$0xff]  ;;  %v3906_v25 = vld [vmem:[#allocation3 + $0x82] sm:$0xff]  ;;  %v10307_v24 = vpack.c.bf16 %v3908_v22, %v3907_v50  ;;  %v3921_v59 = vld [vmem:[#allocation3 + $0x13a] sm:$0xff] }
 0x332   : > { %v10198_v39 = vpack.c.bf16 %v3403_v34, %v3402_v33  ;;  %v3344_v33 = vld [vmem:[#allocation3 + $0x150] sm:$0xff]  ;;  %v10305_v6 = vpack.c.bf16 %v3906_v25, %v3905_v36  ;;  %v3922_v5 = vld [vmem:[#allocation3 + $0x142] sm:$0xff]  ;;  %v3924_v36 = vld [vmem:[#allocation3 + $0x15a] sm:$0xff] }
 0x333   : > { %v10266_v34 = vpack.c.bf16 %v3345_v21, %v3344_v33  ;;  %v3347_v40 = vld [vmem:[#allocation3 + $0x170] sm:$0xff]  ;;  %v3911_v21 = vld [vmem:[#allocation3 + $0xc2] sm:$0xff]  ;;  %v10313_v33 = vpack.c.bf16 %v3910_v13, %v3909_v8  ;;  %v10337_v25 = vpack.c.bf16 %v3922_v5, %v3921_v59 }
 0x334   : > { %8090 = vmatmul.mubr.msk.bf16.gmra.mrb[44].mxu1 %vm3227_vm2, %v10198_v39  ;;  %v3912_v7 = vld [vmem:[#allocation3 + $0xca] sm:$0xff]  ;;  %v3918_v60 = vld [vmem:[#allocation3 + $0x112] sm:$0xff] }
 0x335   : > { %8101 = vmatprep.mubr.msk.bf16.mxu1 %vm3227_vm2, %v3348_v18  ;;  %v3895_v18 = vld [vmem:[#allocation3 + $0x2] sm:$0xff]  ;;  %v3917_v15 = vld [vmem:[#allocation3 + $0x10a] sm:$0xff]  ;;  %v3926_v8 = vld [vmem:[#allocation3 + $0x172] sm:$0xff] }
 0x336   : > { %v3927_v46 = vpack.c.bf16 %v3896_v61, %v3895_v18  ;;  %v10315_v18 = vpack.c.bf16 %v3912_v7, %v3911_v21  ;;  %v3913_v61 = vld [vmem:[#allocation3 + $0xda] sm:$0xff]  ;;  %v10329_v54 = vpack.c.bf16 %v3918_v60, %v3917_v15  ;;  %v3925_v22 = vld [vmem:[#allocation3 + $0x16a] sm:$0xff] }
 0x337   : > { %v10345_v13 = vpack.c.bf16 %v3926_v8, %v3925_v22  ;;  %v9042_v21 = vld [vmem:[%s10963_s3 + $0x88] sm:$0xff]   ;;  %v9043_v7 = vld [vmem:[%s10963_s3 + $0x90] sm:$0xff]   ;;  %v9071_v60 = vld [vmem:[%s9366_s23 + $0x40] sm:$0xff]  }
 0x338   : > { %v9047_v15 = vld [vmem:[%s10963_s3 + $0xb0] sm:$0xff]   ;;  %v5511_v5 = vld [vmem:[#allocation3 + $0x69] sm:$0xff] }
 0x339   : > { %v9060_v8 = vld [vmem:[%s10963_s3 + $0x110] sm:$0xff]  }
 0x33c   : > { %8102 = vmatmul.mubr.msk.bf16.vlgmr.msra.gmra.mrb[16].mxu1 %vm3227_vm2, %v10203_v45 }
 0x33d   : > { %8134 = vmatpush3.bf16.msra.mxu1 %v10087_v29  ;;  %8105 = vmatprep.mubr.msk.bf16.mxu1 %vm3227_vm2, %v10208_v31  ;;  %v9036_v29 = vld [vmem:[%s10963_s3 + $0x58] sm:$0xff]  }
 0x33e   : > { %8135 = vmatprep.subr.bf16.mxu1 %v9034_v14 }
 0x341   : > { %8136 = vmatpush3.bf16.msra.mxu1 %v9034_v14  ;;  %v10272_v14 = vpack.c.bf16 %v3347_v40, %v3346_v12  ;;  %v3914_v40 = vld [vmem:[#allocation3 + $0xe2] sm:$0xff]  ;;  %v3915_v12 = vld [vmem:[#allocation3 + $0xf2] sm:$0xff] }
 0x342   : > { %8137 = vmatprep.subr.bf16.mxu1 %v9035_v2 }
 0x344   : > { %8106 = vmatmul.mubr.msk.bf16.gmra.mrb[20].mxu1 %vm3227_vm2, %v10218_v63 }
 0x345   : > { %8109 = vmatprep.mubr.msk.bf16.mxu1 %vm3227_vm2, %v10223_v41  ;;  %8138 = vmatpush3.bf16.msra.mxu1 %v9035_v2  ;;  %v3897_v2 = vld [vmem:[#allocation3 + $0x1a] sm:$0xff] }
 0x346   : > { %8139 = vmatprep.subr.bf16.mxu1 %v9036_v29  ;;  %v10277_v9 = vpack.c.bf16 %v3898_v52, %v3897_v2  ;;  %v10321_v2 = vpack.c.bf16 %v3914_v40, %v3913_v61  ;;  %v4248_v61 = vld [vmem:[#allocation3 + $0x188] sm:$0xff]  ;;  %v4247_v40 = vld [vmem:[#allocation3 + $0x180] sm:$0xff] }
 0x349   : > { %8140 = vmatpush3.bf16.msra.mxu1 %v9036_v29  ;;  %v9038_v29 = vld [vmem:[%s10963_s3 + $0x68] sm:$0xff]  }
 0x34a   : > { %8173 = vmatprep.subr.bf16.mxu1 %v9037_v44 }
 0x34c   : > { %8110 = vmatmul.mubr.msk.bf16.gmra.mrb[24].mxu1 %vm3227_vm2, %v10232_v4 }
 0x34d   : > { %8113 = vmatprep.mubr.msk.bf16.mxu1 %vm3227_vm2, %v10234_v48 }
 0x354   : > { %8114 = vmatmul.mubr.msk.bf16.gmra.mrb[28].mxu1 %vm3227_vm2, %v10240_v20 }
 0x355   : > { %8117 = vmatprep.mubr.msk.bf16.mxu1 %vm3227_vm2, %v10242_v19 }
 0x35c   : > { %8118 = vmatmul.mubr.msk.bf16.gmra.mrb[32].mxu1 %vm3227_vm2, %v10248_v49 }
 0x35d   : > { %8121 = vmatprep.mubr.msk.bf16.mxu1 %vm3227_vm2, %v10250_v57 }
 0x364   : > { %8122 = vmatmul.mubr.msk.bf16.gmra.mrb[36].mxu1 %vm3227_vm2, %v10256_v58 }
 0x365   : > { %8125 = vmatprep.mubr.msk.bf16.mxu1 %vm3227_vm2, %v10258_v1 }
 0x36c   : > { %8126 = vmatmul.mubr.msk.bf16.gmra.mrb[40].mxu1 %vm3227_vm2, %v10264_v28 }
 0x36d   : > { %8129 = vmatprep.mubr.msk.bf16.mxu1 %vm3227_vm2, %v10266_v34 }
 0x374   : > { %8130 = vmatmul.mubr.msk.bf16.gmra.mrb[44].mxu1 %vm3227_vm2, %v10272_v14 }
 0x375   : > { %8141 = vmatprep.mubr.msk.bf16.mxu1 %vm3227_vm2, %v3927_v46  ;;  %v3916_v46 = vld [vmem:[#allocation3 + $0xfa] sm:$0xff] }
 0x376   : > { %v10323_v52 = vpack.c.bf16 %v3916_v46, %v3915_v12  ;;  %v10391_v12 = vpack.c.bf16 %v4248_v61, %v4247_v40  ;;  %v9046_v46 = vld [vmem:[%s10963_s3 + $0xa8] sm:$0xff]   ;;  %v9062_v61 = vld [vmem:[%s10963_s3 + $0x118] sm:$0xff]  }
 0x37c   : > { %8142 = vmatmul.mubr.msk.bf16.vlgmr.msra.gmra.mrb[16].mxu1 %vm3227_vm2, %v10277_v9 }
 0x37d   : > { %8174 = vmatpush3.bf16.msra.mxu1 %v9037_v44  ;;  %8145 = vmatprep.mubr.msk.bf16.mxu1 %vm3227_vm2, %v10282_v47  ;;  %v9040_v44 = vld [vmem:[%s10963_s3 + $0x78] sm:$0xff]  }
 0x37e   : > { %8175 = vmatprep.subr.bf16.mxu1 %v9038_v29 }
 0x381   : > { %8176 = vmatpush3.bf16.msra.mxu1 %v9038_v29  ;;  %v3919_v29 = vld [vmem:[#allocation3 + $0x122] sm:$0xff] }
 0x382   : > { %8177 = vmatprep.subr.bf16.mxu1 %v9039_v53 }
 0x384   : > { %8146 = vmatmul.mubr.msk.bf16.gmra.mrb[20].mxu1 %vm3227_vm2, %v10291_v17 }
 0x385   : > { %8149 = vmatprep.mubr.msk.bf16.mxu1 %vm3227_vm2, %v10296_v43  ;;  %8178 = vmatpush3.bf16.msra.mxu1 %v9039_v53  ;;  %v3920_v53 = vld [vmem:[#allocation3 + $0x12a] sm:$0xff] }
 0x386   : > { %8179 = vmatprep.subr.bf16.mxu1 %v9040_v44  ;;  %v10331_v11 = vpack.c.bf16 %v3920_v53, %v3919_v29  ;;  %v9072_v29 = vld [vmem:[%s9366_s23 + $0x48] sm:$0xff]   ;;  %v9077_v53 = vld [vmem:[%s9366_s23 + $0x70] sm:$0xff]  }
 0x389   : > { %8180 = vmatpush3.bf16.msra.mxu1 %v9040_v44  ;;  %v3923_v44 = vld [vmem:[#allocation3 + $0x152] sm:$0xff] }
 0x38a   : > { %8213 = vmatprep.subr.bf16.mxu1 %v9041_v56  ;;  %v10339_v50 = vpack.c.bf16 %v3924_v36, %v3923_v44  ;;  %v5508_v44 = vld [vmem:[#allocation3 + $0x49] sm:$0xff] }
 0x38c   : > { %8150 = vmatmul.mubr.msk.bf16.gmra.mrb[24].mxu1 %vm3227_vm2, %v10305_v6 }
 0x38d   : > { %8153 = vmatprep.mubr.msk.bf16.mxu1 %vm3227_vm2, %v10307_v24 }
 0x394   : > { %8154 = vmatmul.mubr.msk.bf16.gmra.mrb[28].mxu1 %vm3227_vm2, %v10313_v33 }
 0x395   : > { %8157 = vmatprep.mubr.msk.bf16.mxu1 %vm3227_vm2, %v10315_v18 }
 0x39c   : > { %8158 = vmatmul.mubr.msk.bf16.gmra.mrb[32].mxu1 %vm3227_vm2, %v10321_v2 }
 0x39d   : > { %8161 = vmatprep.mubr.msk.bf16.mxu1 %vm3227_vm2, %v10323_v52 }
 0x3a4   : > { %8162 = vmatmul.mubr.msk.bf16.gmra.mrb[36].mxu1 %vm3227_vm2, %v10329_v54 }
 0x3a5   : > { %8165 = vmatprep.mubr.msk.bf16.mxu1 %vm3227_vm2, %v10331_v11 }
 0x3ac   : > { %8166 = vmatmul.mubr.msk.bf16.gmra.mrb[40].mxu1 %vm3227_vm2, %v10337_v25 }
 0x3ad   : > { %8169 = vmatprep.mubr.msk.bf16.mxu1 %vm3227_vm2, %v10339_v50 }
 0x3b4   : > { %8170 = vmatmul.mubr.msk.bf16.gmra.mrb[44].mxu1 %vm3227_vm2, %v10345_v13 }
 0x3b5   : > { %8181 = vmatprep.mubr.msk.bf16.mxu1 %vm3227_vm2, %v10203_v45  ;;  %v9044_v45 = vld [vmem:[%s10963_s3 + $0x98] sm:$0xff]  }
 0x3bc   : > { %8182 = vmatmul.mubr.msk.bf16.vlgmr.msra.gmra.mrb[16].mxu1 %vm3227_vm2, %v10208_v31 }
 0x3bd   : > { %8214 = vmatpush3.bf16.msra.mxu1 %v9041_v56  ;;  %8185 = vmatprep.mubr.msk.bf16.mxu1 %vm3227_vm2, %v10218_v63  ;;  %v9045_v56 = vld [vmem:[%s10963_s3 + $0xa0] sm:$0xff]  }
 0x3be   : > { %8215 = vmatprep.subr.bf16.mxu1 %v9042_v21 }
 0x3c1   : > { %8216 = vmatpush3.bf16.msra.mxu1 %v9042_v21  ;;  %v5515_v21 = vld [vmem:[#allocation3 + $0x99] sm:$0xff] }
 0x3c2   : > { %8217 = vmatprep.subr.bf16.mxu1 %v9043_v7 }
 0x3c4   : > { %8186 = vmatmul.mubr.msk.bf16.gmra.mrb[20].mxu1 %vm3227_vm2, %v10223_v41 }
 0x3c5   : > { %8189 = vmatprep.mubr.msk.bf16.mxu1 %vm3227_vm2, %v10232_v4  ;;  %8218 = vmatpush3.bf16.msra.mxu1 %v9043_v7  ;;  %v5512_v7 = vld [vmem:[#allocation3 + $0x79] sm:$0xff] }
 0x3c6   : > { %8219 = vmatprep.subr.bf16.mxu1 %v9044_v45 }
 0x3c9   : > { %8220 = vmatpush3.bf16.msra.mxu1 %v9044_v45 }
 0x3ca   : > { %8253 = vmatprep.subr.bf16.mxu1 %v9045_v56 }
 0x3cc   : > { %8190 = vmatmul.mubr.msk.bf16.gmra.mrb[24].mxu1 %vm3227_vm2, %v10234_v48 }
 0x3cd   : > { %8193 = vmatprep.mubr.msk.bf16.mxu1 %vm3227_vm2, %v10240_v20 }
 0x3d4   : > { %8194 = vmatmul.mubr.msk.bf16.gmra.mrb[28].mxu1 %vm3227_vm2, %v10242_v19 }
 0x3d5   : > { %8197 = vmatprep.mubr.msk.bf16.mxu1 %vm3227_vm2, %v10248_v49 }
 0x3dc   : > { %8198 = vmatmul.mubr.msk.bf16.gmra.mrb[32].mxu1 %vm3227_vm2, %v10250_v57 }
 0x3dd   : > { %8201 = vmatprep.mubr.msk.bf16.mxu1 %vm3227_vm2, %v10256_v58 }
 0x3e4   : > { %8202 = vmatmul.mubr.msk.bf16.gmra.mrb[36].mxu1 %vm3227_vm2, %v10258_v1 }
 0x3e5   : > { %8205 = vmatprep.mubr.msk.bf16.mxu1 %vm3227_vm2, %v10264_v28 }
 0x3ec   : > { %8206 = vmatmul.mubr.msk.bf16.gmra.mrb[40].mxu1 %vm3227_vm2, %v10266_v34 }
 0x3ed   : > { %8209 = vmatprep.mubr.msk.bf16.mxu1 %vm3227_vm2, %v10272_v14 }
 0x3f4   : > { %8210 = vmatmul.mubr.msk.bf16.gmra.mrb[44].mxu1 %vm3227_vm2, %v10391_v12 }
 0x3f5   : > { %8221 = vmatprep.mubr.msk.bf16.mxu1 %vm3227_vm2, %v10040_v23  ;;  %v9048_v23 = vld [vmem:[%s10963_s3 + $0xb8] sm:$0xff]  }
 0x3fc   : > { %8222 = vmatmul.mubr.msk.bf16.vlgmr.msra.gmra.mrb[16].mxu1 %vm3227_vm2, %v10047_v35  ;;  %v9049_v35 = vld [vmem:[%s10963_s3 + $0xc0] sm:$0xff]  }
 0x3fd   : > { %8254 = vmatpush3.bf16.msra.mxu1 %v9045_v56  ;;  %8225 = vmatprep.mubr.msk.bf16.mxu1 %vm3227_vm2, %v10067_v42  ;;  %v4570_v42 = vld [vmem:[#allocation3 + $0x189] sm:$0xff]  ;;  %v5514_v56 = vld [vmem:[#allocation3 + $0x91] sm:$0xff] }
 0x3fe   : > { %8255 = vmatprep.subr.bf16.mxu1 %v9046_v46  ;;  %v5542_v40 = vpack.c.bf16 %v5515_v21, %v5514_v56  ;;  %v5855_v56 = vld [vmem:[#allocation3 + $0x172] sm:$0xff] }
 0x401   : > { %8256 = vmatpush3.bf16.msra.mxu1 %v9046_v46  ;;  %v5519_v46 = vld [vmem:[#allocation3 + $0xc9] sm:$0xff] }
 0x402   : > { %8257 = vmatprep.subr.bf16.mxu1 %v9047_v15 }
 0x404   : > { %8226 = vmatmul.mubr.msk.bf16.gmra.mrb[20].mxu1 %vm3227_vm2, %v10074_v3  ;;  %v4569_v3 = vld [vmem:[#allocation3 + $0x181] sm:$0xff] }
 0x405   : > { %8229 = vmatprep.mubr.msk.bf16.mxu1 %vm3227_vm2, %v10095_v16  ;;  %8258 = vmatpush3.bf16.msra.mxu1 %v9047_v15  ;;  %v10437_v16 = vpack.c.bf16 %v4570_v42, %v4569_v3  ;;  %v5516_v15 = vld [vmem:[#allocation3 + $0xa9] sm:$0xff]  ;;  %v5521_v3 = vld [vmem:[#allocation3 + $0xe1] sm:$0xff] }
 0x406   : > { %8259 = vmatprep.subr.bf16.mxu1 %v9048_v23 }
 0x409   : > { %8260 = vmatpush3.bf16.msra.mxu1 %v9048_v23 }
 0x40a   : > { %8293 = vmatprep.subr.bf16.mxu1 %v9049_v35 }
 0x40c   : > { %8230 = vmatmul.mubr.msk.bf16.gmra.mrb[24].mxu1 %vm3227_vm2, %v10100_v10  ;;  %v9058_v10 = vld [vmem:[%s10965_s5] sm:$0xff]  }
 0x40d   : > { %8233 = vmatprep.mubr.msk.bf16.mxu1 %vm3227_vm2, %v10118_v62  ;;  %8413 = vmatprep.subr.bf16.mxu0 %v9058_v10  ;;  %v9050_v62 = vld [vmem:[%s10963_s3 + $0xc8] sm:$0xff]  }
 0x40e   : > { %8414 = vmatpush3.bf16.msra.mxu0 %v9058_v10  ;;  %v5523_v10 = vld [vmem:[#allocation3 + $0xf9] sm:$0xff] }
 0x414   : > { %8234 = vmatmul.mubr.msk.bf16.gmra.mrb[28].mxu1 %vm3227_vm2, %v10123_v32  ;;  %v9051_v32 = vld [vmem:[%s10963_s3 + $0xd0] sm:$0xff]  }
 0x415   : > { %8237 = vmatprep.mubr.msk.bf16.mxu1 %vm3227_vm2, %v10148_v26  ;;  %v9052_v26 = vld [vmem:[%s10963_s3 + $0xd8] sm:$0xff]  }
 0x41c   : > { %8238 = vmatmul.mubr.msk.bf16.gmra.mrb[32].mxu1 %vm3227_vm2, %v10152_v51  ;;  %v9053_v51 = vld [vmem:[%s10963_s3 + $0xe0] sm:$0xff]  }
 0x41d   : > { %8241 = vmatprep.mubr.msk.bf16.mxu1 %vm3227_vm2, %v10172_v30  ;;  %v9061_v30 = vld [vmem:[%s10965_s5 + $0x8] sm:$0xff]  }
 0x41e   : > { %8415 = vmatprep.subr.bf16.mxu0 %v9061_v30 }
 0x41f   : > { %8416 = vmatpush3.bf16.msra.mxu0 %v9061_v30  ;;  %v5525_v30 = vld [vmem:[#allocation3 + $0x111] sm:$0xff] }
 0x424   : > { %8242 = vmatmul.mubr.msk.bf16.gmra.mrb[36].mxu1 %vm3227_vm2, %v10176_v37  ;;  %v4891_v37 = vld [vmem:[#allocation3 + $0x182] sm:$0xff] }
 0x425   : > { %8245 = vmatprep.mubr.msk.bf16.mxu1 %vm3227_vm2, %v10190_v38  ;;  %v4892_v38 = vld [vmem:[#allocation3 + $0x18a] sm:$0xff] }
 0x42c   : > { %8246 = vmatmul.mubr.msk.bf16.gmra.mrb[40].mxu1 %vm3227_vm2, %v10192_v27  ;;  %v10489_v27 = vpack.c.bf16 %v4892_v38, %v4891_v37  ;;  %v5527_v37 = vld [vmem:[#allocation3 + $0x129] sm:$0xff] }
 0x42d   : > { %8249 = vmatprep.mubr.msk.bf16.mxu1 %vm3227_vm2, %v10198_v39  ;;  %v9063_v39 = vld [vmem:[%s9366_s23] sm:$0xff]  }
 0x42e   : > { %8417 = vmatprep.mubr.msk.bf16.mxu0 %vm278_vm0, %v9063_v39  ;;  %v5524_v38 = vld [vmem:[#allocation3 + $0x109] sm:$0xff] }
 0x42f   : > { %v5547_v39 = vpack.c.bf16 %v5525_v30, %v5524_v38 }
 0x434   : > { %8250 = vmatmul.mubr.msk.bf16.gmra.mrb[44].mxu1 %vm3227_vm2, %v10437_v16 }
 0x435   : > { %8261 = vmatprep.mubr.msk.bf16.mxu1 %vm3227_vm2, %v10277_v9  ;;  %v9064_v9 = vld [vmem:[%s9366_s23 + $0x8] sm:$0xff]  }
 0x436   : > { %8418 = vmatmul.mubr.msk.bf16.vlgmr.msra.gmra.mrb[32].mxu0 %vm278_vm0, %v9064_v9  ;;  %v5526_v9 = vld [vmem:[#allocation3 + $0x121] sm:$0xff] }
 0x43c   : > { %8262 = vmatmul.mubr.msk.bf16.vlgmr.msra.gmra.mrb[16].mxu1 %vm3227_vm2, %v10282_v47 }
 0x43d   : > { %8294 = vmatpush3.bf16.msra.mxu1 %v9049_v35  ;;  %8265 = vmatprep.mubr.msk.bf16.mxu1 %vm3227_vm2, %v10291_v17  ;;  %v5518_v35 = vld [vmem:[#allocation3 + $0xc1] sm:$0xff] }
 0x43e   : > { %8295 = vmatprep.subr.bf16.mxu1 %v9050_v62  ;;  %v5544_v42 = vpack.c.bf16 %v5519_v46, %v5518_v35 }
 0x441   : > { %8296 = vmatpush3.bf16.msra.mxu1 %v9050_v62  ;;  %v5520_v62 = vld [vmem:[#allocation3 + $0xd9] sm:$0xff] }
 0x442   : > { %8297 = vmatprep.subr.bf16.mxu1 %v9051_v32 }
 0x444   : > { %8266 = vmatmul.mubr.msk.bf16.gmra.mrb[20].mxu1 %vm3227_vm2, %v10296_v43 }
 0x445   : > { %8269 = vmatprep.mubr.msk.bf16.mxu1 %vm3227_vm2, %v10305_v6  ;;  %8298 = vmatpush3.bf16.msra.mxu1 %v9051_v32  ;;  %v9054_v6 = vld [vmem:[%s10963_s3 + $0xe8] sm:$0xff]   ;;  %v5545_v32 = vpack.c.bf16 %v5521_v3, %v5520_v62 }
 0x446   : > { %8299 = vmatprep.subr.bf16.mxu1 %v9052_v26 }
 0x449   : > { %8300 = vmatpush3.bf16.msra.mxu1 %v9052_v26  ;;  %v5522_v26 = vld [vmem:[#allocation3 + $0xf1] sm:$0xff] }
 0x44a   : > { %8333 = vmatprep.subr.bf16.mxu1 %v9053_v51 }
 0x44c   : > { %8270 = vmatmul.mubr.msk.bf16.gmra.mrb[24].mxu1 %vm3227_vm2, %v10307_v24 }
 0x44d   : > { %8273 = vmatprep.mubr.msk.bf16.mxu1 %vm3227_vm2, %v10313_v33  ;;  %v9066_v33 = vld [vmem:[%s9366_s23 + $0x18] sm:$0xff]  }
 0x454   : > { %8274 = vmatmul.mubr.msk.bf16.gmra.mrb[28].mxu1 %vm3227_vm2, %v10315_v18  ;;  %v9055_v18 = vld [vmem:[%s10963_s3 + $0xf0] sm:$0xff]  }
 0x455   : > { %8277 = vmatprep.mubr.msk.bf16.mxu1 %vm3227_vm2, %v10321_v2  ;;  %v9068_v2 = vld [vmem:[%s9366_s23 + $0x28] sm:$0xff]  }
 0x45c   : > { %8278 = vmatmul.mubr.msk.bf16.gmra.mrb[32].mxu1 %vm3227_vm2, %v10323_v52  ;;  %v9057_v52 = vld [vmem:[%s10963_s3 + $0x100] sm:$0xff]  }
 0x45d   : > { %8281 = vmatprep.mubr.msk.bf16.mxu1 %vm3227_vm2, %v10329_v54  ;;  %v9078_v54 = vld [vmem:[%s9366_s23 + $0x78] sm:$0xff]  }
 0x464   : > { %8282 = vmatmul.mubr.msk.bf16.gmra.mrb[36].mxu1 %vm3227_vm2, %v10331_v11  ;;  %v5506_v11 = vld [vmem:[#allocation3 + $0x31] sm:$0xff] }
 0x465   : > { %8285 = vmatprep.mubr.msk.bf16.mxu1 %vm3227_vm2, %v10337_v25  ;;  %v5510_v25 = vld [vmem:[#allocation3 + $0x61] sm:$0xff] }
 0x466   : > { %v5540_v22 = vpack.c.bf16 %v5511_v5, %v5510_v25  ;;  %v5848_v5 = vld [vmem:[#allocation3 + $0x122] sm:$0xff] }
 0x46c   : > { %8286 = vmatmul.mubr.msk.bf16.gmra.mrb[40].mxu1 %vm3227_vm2, %v10339_v50  ;;  %v9059_v50 = vld [vmem:[%s10963_s3 + $0x108] sm:$0xff]  }
 0x46d   : > { %8289 = vmatprep.mubr.msk.bf16.mxu1 %vm3227_vm2, %v10345_v13  ;;  %v5513_v13 = vld [vmem:[#allocation3 + $0x81] sm:$0xff] }
 0x46e   : > { %v5541_v45 = vpack.c.bf16 %v5513_v13, %v5512_v7  ;;  %v5853_v13 = vld [vmem:[#allocation3 + $0x15a] sm:$0xff] }
 0x474   : > { %8290 = vmatmul.mubr.msk.bf16.gmra.mrb[44].mxu1 %vm3227_vm2, %v10489_v27 }
 0x475   : > { %8301 = vmatprep.mubr.msk.bf16.mxu1 %vm3227_vm2, %v10208_v31  ;;  %v9065_v31 = vld [vmem:[%s9366_s23 + $0x10] sm:$0xff]  }
 0x476   : > { %8421 = vmatprep.mubr.msk.bf16.mxu0 %vm278_vm0, %v9065_v31  ;;  %v5529_v31 = vld [vmem:[#allocation3 + $0x141] sm:$0xff] }
 0x477   : > { %8422 = vmatmul.mubr.msk.bf16.gmra.mrb[36].mxu0 %vm278_vm0, %v9066_v33  ;;  %v5531_v33 = vld [vmem:[#allocation3 + $0x159] sm:$0xff] }
 0x47c   : > { %8302 = vmatmul.mubr.msk.bf16.vlgmr.msra.gmra.mrb[16].mxu1 %vm3227_vm2, %v10218_v63  ;;  %v9056_v63 = vld [vmem:[%s10963_s3 + $0xf8] sm:$0xff]  }
 0x47d   : > { %8334 = vmatpush3.bf16.msra.mxu1 %v9053_v51  ;;  %8305 = vmatprep.mubr.msk.bf16.mxu1 %vm3227_vm2, %v10223_v41  ;;  %v9067_v41 = vld [vmem:[%s9366_s23 + $0x20] sm:$0xff]   ;;  %v5546_v51 = vpack.c.bf16 %v5523_v10, %v5522_v26 }
 0x47e   : > { %8335 = vmatprep.subr.bf16.mxu1 %v9054_v6  ;;  %8425 = vmatprep.mubr.msk.bf16.mxu0 %vm278_vm0, %v9067_v41  ;;  %v5530_v41 = vld [vmem:[#allocation3 + $0x151] sm:$0xff] }
 0x47f   : > { %8426 = vmatmul.mubr.msk.bf16.gmra.mrb[40].mxu0 %vm278_vm0, %v9068_v2  ;;  %v5550_v2 = vpack.c.bf16 %v5531_v33, %v5530_v41 }
 0x481   : > { %8336 = vmatpush3.bf16.msra.mxu1 %v9054_v6  ;;  %v5548_v6 = vpack.c.bf16 %v5527_v37, %v5526_v9 }
 0x482   : > { %8337 = vmatprep.subr.bf16.mxu1 %v9055_v18 }
 0x484   : > { %8306 = vmatmul.mubr.msk.bf16.gmra.mrb[20].mxu1 %vm3227_vm2, %v10232_v4  ;;  %v9069_v4 = vld [vmem:[%s9366_s23 + $0x30] sm:$0xff]  }
 0x485   : > { %8309 = vmatprep.mubr.msk.bf16.mxu1 %vm3227_vm2, %v10234_v48  ;;  %8338 = vmatpush3.bf16.msra.mxu1 %v9055_v18  ;;  %v9070_v48 = vld [vmem:[%s9366_s23 + $0x38] sm:$0xff]   ;;  %v5528_v18 = vld [vmem:[#allocation3 + $0x139] sm:$0xff] }
 0x486   : > { %8339 = vmatprep.subr.bf16.mxu1 %v9056_v63  ;;  %8429 = vmatprep.mubr.msk.bf16.mxu0 %vm278_vm0, %v9069_v4  ;;  %v5532_v4 = vld [vmem:[#allocation3 + $0x169] sm:$0xff] }
 0x487   : > { %8430 = vmatmul.mubr.msk.bf16.gmra.mrb[44].mxu0 %vm278_vm0, %v9070_v48 }
 0x488   : > { %8433 = vmatprep.mubr.msk.bf16.mxu0 %vm278_vm0, %v9071_v60  ;;  %v5536_v60 = vld [vmem:[#allocation3 + $0x199] sm:$0xff] }
 0x489   : > { %8340 = vmatpush3.bf16.msra.mxu1 %v9056_v63  ;;  %v5549_v63 = vpack.c.bf16 %v5529_v31, %v5528_v18 }
 0x48a   : > { %8373 = vmatprep.subr.bf16.mxu1 %v9057_v52 }
 0x48c   : > { %8310 = vmatmul.mubr.msk.bf16.gmra.mrb[24].mxu1 %vm3227_vm2, %v10240_v20  ;;  %v9073_v20 = vld [vmem:[%s9366_s23 + $0x50] sm:$0xff]  }
 0x48d   : > { %8313 = vmatprep.mubr.msk.bf16.mxu1 %vm3227_vm2, %v10242_v19  ;;  %v9074_v19 = vld [vmem:[%s9366_s23 + $0x58] sm:$0xff]  }
 0x48f   : > { %8434 = vmatmul.mubr.msk.bf16.gmra.mrb[48].mxu0 %vm278_vm0, %v9072_v29  ;;  %v5537_v29 = vld [vmem:[#allocation3 + $0x1a1] sm:$0xff] }
 0x490   : > { %8437 = vmatprep.mubr.msk.bf16.mxu0 %vm278_vm0, %v9073_v20  ;;  %v5553_v20 = vpack.c.bf16 %v5537_v29, %v5536_v60 }
 0x494   : > { %8314 = vmatmul.mubr.msk.bf16.gmra.mrb[28].mxu1 %vm3227_vm2, %v10248_v49  ;;  %v9075_v49 = vld [vmem:[%s9366_s23 + $0x60] sm:$0xff]  }
 0x495   : > { %8317 = vmatprep.mubr.msk.bf16.mxu1 %vm3227_vm2, %v10250_v57  ;;  %v9076_v57 = vld [vmem:[%s9366_s23 + $0x68] sm:$0xff]  }
 0x497   : > { %8438 = vmatmul.mubr.msk.bf16.gmra.mrb[52].mxu0 %vm278_vm0, %v9074_v19  ;;  %v5834_v19 = vld [vmem:[#allocation3 + $0x7a] sm:$0xff] }
 0x498   : > { %8441 = vmatprep.mubr.msk.bf16.mxu0 %vm278_vm0, %v9075_v49  ;;  %v5835_v49 = vld [vmem:[#allocation3 + $0x82] sm:$0xff] }
 0x49c   : > { %8318 = vmatmul.mubr.msk.bf16.gmra.mrb[32].mxu1 %vm3227_vm2, %v10256_v58  ;;  %v5214_v58 = vld [vmem:[#allocation3 + $0x198] sm:$0xff] }
 0x49d   : > { %8321 = vmatprep.mubr.msk.bf16.mxu1 %vm3227_vm2, %v10258_v1  ;;  %v5215_v1 = vld [vmem:[#allocation3 + $0x1a0] sm:$0xff] }
 0x49f   : > { %8442 = vmatmul.mubr.msk.bf16.gmra.mrb[56].mxu0 %vm278_vm0, %v9076_v57  ;;  %v5863_v57 = vpack.c.bf16 %v5835_v49, %v5834_v19 }
 0x4a0   : > { %8445 = vmatprep.mubr.msk.bf16.mxu0 %vm278_vm0, %v9077_v53  ;;  %v5841_v53 = vld [vmem:[#allocation3 + $0xca] sm:$0xff] }
 0x4a4   : > { %8322 = vmatmul.mubr.msk.bf16.gmra.mrb[36].mxu1 %vm3227_vm2, %v10264_v28  ;;  %v5231_v28 = vpack.c.bf16 %v5215_v1, %v5214_v58  ;;  %v5839_v58 = vld [vmem:[#allocation3 + $0xb2] sm:$0xff]  ;;  %v5840_v1 = vld [vmem:[#allocation3 + $0xc2] sm:$0xff] }
 0x4a5   : > { %8325 = vmatprep.mubr.msk.bf16.mxu1 %vm3227_vm2, %v10266_v34  ;;  %v5507_v34 = vld [vmem:[#allocation3 + $0x39] sm:$0xff] }
 0x4a6   : > { %v5538_v59 = vpack.c.bf16 %v5507_v34, %v5506_v11  ;;  %v5845_v34 = vld [vmem:[#allocation3 + $0xfa] sm:$0xff] }
 0x4a7   : > { %8446 = vmatmul.mubr.msk.bf16.gmra.mrb[60].mxu0 %vm278_vm0, %v9078_v54 }
 0x4ac   : > { %8326 = vmatmul.mubr.msk.bf16.gmra.mrb[40].mxu1 %vm3227_vm2, %v10272_v14  ;;  %v5509_v14 = vld [vmem:[#allocation3 + $0x51] sm:$0xff] }
 0x4ad   : > { %8329 = vmatprep.mubr.msk.bf16.mxu1 %vm3227_vm2, %v10391_v12  ;;  %v5539_v36 = vpack.c.bf16 %v5509_v14, %v5508_v44  ;;  %v5517_v12 = vld [vmem:[#allocation3 + $0xb1] sm:$0xff] }
 0x4ae   : > { %v5543_v23 = vpack.c.bf16 %v5517_v12, %v5516_v15  ;;  %v5847_v14 = vld [vmem:[#allocation3 + $0x112] sm:$0xff]  ;;  %v5849_v44 = vld [vmem:[#allocation3 + $0x12a] sm:$0xff]  ;;  %v5859_v12 = vld [vmem:[#allocation3 + $0x1a2] sm:$0xff] }
 0x4af   : > { %v5870_v25 = vpack.c.bf16 %v5849_v44, %v5848_v5 }
 0x4b4   : > { %8330 = vmatmul.mubr.msk.bf16.gmra.mrb[44].mxu1 %vm3227_vm2, %v5231_v28  ;;  %v5844_v28 = vld [vmem:[#allocation3 + $0xf2] sm:$0xff] }
 0x4b5   : > { %8341 = vmatprep.mubr.msk.bf16.mxu1 %vm3227_vm2, %v5538_v59  ;;  %v5868_v59 = vpack.c.bf16 %v5845_v34, %v5844_v28 }
 0x4bc   : > { %8342 = vmatmul.mubr.msk.bf16.vlgmr.msra.gmra.mrb[16].mxu1 %vm3227_vm2, %v5539_v36 }
 0x4bd   : > { %8374 = vmatpush3.bf16.msra.mxu1 %v9057_v52  ;;  %8345 = vmatprep.mubr.msk.bf16.mxu1 %vm3227_vm2, %v5540_v22  ;;  %v5533_v52 = vld [vmem:[#allocation3 + $0x171] sm:$0xff]  ;;  %v5851_v22 = vld [vmem:[#allocation3 + $0x142] sm:$0xff] }
 0x4be   : > { %8375 = vmatprep.subr.bf16.mxu1 %v9059_v50  ;;  %v5551_v48 = vpack.c.bf16 %v5533_v52, %v5532_v4 }
 0x4c1   : > { %8376 = vmatpush3.bf16.msra.mxu1 %v9059_v50  ;;  %v5850_v50 = vld [vmem:[#allocation3 + $0x13a] sm:$0xff] }
 0x4c2   : > { %8377 = vmatprep.subr.bf16.mxu1 %v9060_v8  ;;  %v5871_v21 = vpack.c.bf16 %v5851_v22, %v5850_v50 }
 0x4c4   : > { %8346 = vmatmul.mubr.msk.bf16.gmra.mrb[20].mxu1 %vm3227_vm2, %v5541_v45  ;;  %v5854_v45 = vld [vmem:[#allocation3 + $0x16a] sm:$0xff] }
 0x4c5   : > { %8349 = vmatprep.mubr.msk.bf16.mxu1 %vm3227_vm2, %v5542_v40  ;;  %8378 = vmatpush3.bf16.msra.mxu1 %v9060_v8  ;;  %v5852_v8 = vld [vmem:[#allocation3 + $0x152] sm:$0xff]  ;;  %v5858_v40 = vld [vmem:[#allocation3 + $0x19a] sm:$0xff] }
 0x4c6   : > { %8379 = vmatprep.subr.bf16.mxu1 %v9062_v61  ;;  %v5872_v7 = vpack.c.bf16 %v5853_v13, %v5852_v8  ;;  %v5875_v46 = vpack.c.bf16 %v5859_v12, %v5858_v40 }
 0x4c9   : > { %8380 = vmatpush3.bf16.msra.mxu1 %v9062_v61  ;;  %v5873_v61 = vpack.c.bf16 %v5855_v56, %v5854_v45 }
 0x4cc   : > { %8350 = vmatmul.mubr.msk.bf16.gmra.mrb[24].mxu1 %vm3227_vm2, %v5543_v23 }
 0x4cd   : > { %8353 = vmatprep.mubr.msk.bf16.mxu1 %vm3227_vm2, %v5544_v42 }
 0x4d4   : > { %8354 = vmatmul.mubr.msk.bf16.gmra.mrb[28].mxu1 %vm3227_vm2, %v5545_v32 }
 0x4d5   : > { %8357 = vmatprep.mubr.msk.bf16.mxu1 %vm3227_vm2, %v5546_v51 }
 0x4dc   : > { %8358 = vmatmul.mubr.msk.bf16.gmra.mrb[32].mxu1 %vm3227_vm2, %v5547_v39 }
 0x4dd   : > { %8361 = vmatprep.mubr.msk.bf16.mxu1 %vm3227_vm2, %v5548_v6 }
 0x4e4   : > { %8362 = vmatmul.mubr.msk.bf16.gmra.mrb[36].mxu1 %vm3227_vm2, %v5549_v63 }
 0x4e5   : > { %8365 = vmatprep.mubr.msk.bf16.mxu1 %vm3227_vm2, %v5550_v2 }
 0x4ec   : > { %8366 = vmatmul.mubr.msk.bf16.gmra.mrb[40].mxu1 %vm3227_vm2, %v5551_v48 }
 0x4ed   : > { %8369 = vmatprep.mubr.msk.bf16.mxu1 %vm3227_vm2, %v10437_v16  ;;  %v5838_v16 = vld [vmem:[#allocation3 + $0xaa] sm:$0xff] }
 0x4ee   : > { %v5865_v54 = vpack.c.bf16 %v5839_v58, %v5838_v16  ;;  %v6559_v16 = vld [vmem:[%s10966_s6] sm:$0x3] }
 0x4ef   : > { %v10671_v58 = vrot.slane %v6559_v16, %v10001_v55 }
 0x4f4   : > { %8370 = vmatmul.mubr.msk.bf16.gmra.mrb[44].mxu1 %vm3227_vm2, %v5553_v20 }
 0x4f5   : > { %8381 = vmatprep.mubr.msk.bf16.mxu1 %vm3227_vm2, %v10282_v47  ;;  %v5866_v47 = vpack.c.bf16 %v5841_v53, %v5840_v1  ;;  %v432_v1 = vld [vmem:[%s10964_s4] sm:$0x3] }
 0x4fc   : > { %8382 = vmatmul.mubr.msk.bf16.vlgmr.msra.gmra.mrb[16].mxu1 %vm3227_vm2, %v10291_v17  ;;  %v5842_v17 = vld [vmem:[#allocation3 + $0xda] sm:$0xff] }
 0x4fd   : > { %8385 = vmatprep.mubr.msk.bf16.mxu1 %vm3227_vm2, %v10296_v43  ;;  %v5843_v43 = vld [vmem:[#allocation3 + $0xe2] sm:$0xff] }
 0x4fe   : > { %v5867_v11 = vpack.c.bf16 %v5843_v43, %v5842_v17  ;;  %v10685_v43 = vrot.slane %v432_v1, %v10006_v0 }
 0x504   : > { %8386 = vmatmul.mubr.msk.bf16.gmra.mrb[20].mxu1 %vm3227_vm2, %v5863_v57 }
 0x505   : > { %8389 = vmatprep.mubr.msk.bf16.mxu1 %vm3227_vm2, %v10307_v24  ;;  %v5846_v24 = vld [vmem:[#allocation3 + $0x10a] sm:$0xff] }
 0x506   : > { %v5869_v36 = vpack.c.bf16 %v5847_v14, %v5846_v24 }
 0x509   : > { %v8419_v15 = vpop.f32.mrb[32].mxu0 }
 0x50a   : > { %v6432_v23 = vpop.f32.mrb[33].mxu0  ;;  %v6566_v53 = vmul.f32 %v8419_v15, %v10671_v58 }
 0x50b   : > { %v8420_v35 = vpop.f32.mrb[34].mxu0  ;;  %v6564_v17 = vmul.f32 %v10671_v58, %v6432_v23 }
 0x50c   : > { %8390 = vmatmul.mubr.msk.bf16.gmra.mrb[24].mxu1 %vm3227_vm2, %v5865_v54  ;;  %v6435_v42 = vpop.f32.mrb[35].mxu0  ;;  %v10678_v54 = vrot.slane %v6559_v16, %v10006_v0 }
 0x50d   : > { %8393 = vmatprep.mubr.msk.bf16.mxu1 %vm3227_vm2, %v5866_v47  ;;  %v10681_v47 = vrot.slane %v432_v1, %v10001_v55  ;;  %v6565_v5 = vmul.f32 %v10671_v58, %v6435_v42 }
 0x50e   : > { %v6602_v34 = vadd.f32 %v10678_v54, %v6566_v53  ;;  %v6600_v14 = vadd.f32 %v10678_v54, %v6564_v17 }
 0x50f   : > { %v6601_v45 = vadd.f32 %v10678_v54, %v6565_v5 }
 0x514   : > { %8394 = vmatmul.mubr.msk.bf16.gmra.mrb[28].mxu1 %vm3227_vm2, %v5867_v11  ;;  %v6567_v11 = vmul.f32 %v8420_v35, %v10671_v58 }
 0x515   : > { %8397 = vmatprep.mubr.msk.bf16.mxu1 %vm3227_vm2, %v5868_v59 }
 0x516   : > { %v6603_v8 = vadd.f32 %v10678_v54, %v6567_v11 }
 0x51c   : > { %8398 = vmatmul.mubr.msk.bf16.gmra.mrb[32].mxu1 %vm3227_vm2, %v5869_v36 }
 0x51d   : > { %8401 = vmatprep.mubr.msk.bf16.mxu1 %vm3227_vm2, %v5870_v25 }
 0x524   : > { %8402 = vmatmul.mubr.msk.bf16.gmra.mrb[36].mxu1 %vm3227_vm2, %v5871_v21 }
 0x525   : > { %8405 = vmatprep.mubr.msk.bf16.mxu1 %vm3227_vm2, %v5872_v7 }
 0x52c   : > { %8406 = vmatmul.mubr.msk.bf16.gmra.mrb[40].mxu1 %vm3227_vm2, %v5873_v61 }
 0x52d   : > { %8409 = vmatprep.mubr.msk.bf16.mxu1 %vm3227_vm2, %v10489_v27 }
 0x534   : > { %8410 = vmatmul.mubr.msk.bf16.gmra.mrb[44].mxu1 %vm3227_vm2, %v5875_v46 }
 0x54a   : > { %v8423_v3 = vpop.f32.mrb[36].mxu0 }
 0x54b   : > { %v6448_v10 = vpop.f32.mrb[37].mxu0  ;;  %v6570_v7 = vmul.f32 %v8423_v3, %v10671_v58 }
 0x54c   : > { %v10615_v62 = vpop.f32.mrb[38].mxu0  ;;  %v6568_v40 = vmul.f32 %v10671_v58, %v6448_v10 }
 0x54d   : > { %v10617_v32 = vpop.f32.mrb[39].mxu0  ;;  %v6606_v3 = vadd.f32 %v10678_v54, %v6570_v7  ;;  %v6571_v16 = vmul.f32 %v10615_v62, %v10671_v58 }
 0x54e   : > { %v6604_v17 = vadd.f32 %v10678_v54, %v6568_v40 }
 0x552   : > { %v10619_v26 = vpop.f32.mrb[40].mxu0 }
 0x553   : > { %v10621_v51 = vpop.f32.mrb[41].mxu0 }
 0x554   : > { %v10623_v27 = vpop.f32.mrb[42].mxu0 }
 0x555   : > { %v10625_v30 = vpop.f32.mrb[43].mxu0 }
 0x55a   : > { %v10627_v37 = vpop.f32.mrb[44].mxu0 }
 0x55b   : > { %v10629_v38 = vpop.f32.mrb[45].mxu0 }
 0x55c   : > { %v10631_v39 = vpop.f32.mrb[46].mxu0 }
 0x55d   : > { %v10633_v9 = vpop.f32.mrb[47].mxu0 }
 0x562   : > { %v10635_v6 = vpop.f32.mrb[48].mxu0 }
 0x563   : > { %v10637_v31 = vpop.f32.mrb[49].mxu0 }
 0x564   : > { %v10639_v33 = vpop.f32.mrb[50].mxu0 }
 0x565   : > { %v10641_v18 = vpop.f32.mrb[51].mxu0 }
 0x56a   : > { %v10643_v63 = vpop.f32.mrb[52].mxu0 }
 0x56b   : > { %v10645_v41 = vpop.f32.mrb[53].mxu0 }
 0x56c   : > { %v10647_v2 = vpop.f32.mrb[54].mxu0 }
 0x56d   : > { %v10649_v52 = vpop.f32.mrb[55].mxu0 }
 0x572   : > { %v10651_v4 = vpop.f32.mrb[56].mxu0 }
 0x573   : > { %v10653_v48 = vpop.f32.mrb[57].mxu0 }
 0x574   : > { %v10655_v60 = vpop.f32.mrb[58].mxu0 }
 0x575   : > { %v10657_v29 = vpop.f32.mrb[59].mxu0 }
 0x57a   : > { %v10659_v20 = vpop.f32.mrb[60].mxu0 }
 0x57b   : > { %v10661_v19 = vpop.f32.mrb[61].mxu0 }
 0x57c   : > { %v10663_v49 = vpop.f32.mrb[62].mxu0 }
 0x57d   : > { %v10665_v57 = vpop.f32.mrb[63].mxu0 }
 0x5cf   : > { %v8383_v28 = vpop.f32.mrb[16].mxu1 }
 0x5d0   : > { %v6156_v59 = vmul.f32 %v8383_v28, %v10681_v47  ;;  %v5991_v24 = vpop.f32.mrb[17].mxu1  ;;  %v6569_v28 = vmul.f32 %v10671_v58, %v10617_v32 }
 0x5d1   : > { %v6154_v55 = vmul.f32 %v10681_v47, %v5991_v24  ;;  %v8384_v44 = vpop.f32.mrb[18].mxu1 }
 0x5d2   : > { %v6192_v0 = vadd.f32 %v10685_v43, %v6156_v59  ;;  %v6157_v36 = vmul.f32 %v8384_v44, %v10681_v47  ;;  %v5994_v25 = vpop.f32.mrb[19].mxu1 }
 0x5d3   : > { %v6190_v50 = vadd.f32 %v10685_v43, %v6154_v55  ;;  %v6155_v22 = vmul.f32 %v10681_v47, %v5994_v25  ;;  %v6607_v55 = vadd.f32 %v10678_v54, %v6571_v16 }
 0x5d4   : > { %v6634_v13 = vadd.f32 %v6602_v34, %v6192_v0  ;;  %v6193_v21 = vadd.f32 %v10685_v43, %v6157_v36  ;;  %v6574_v0 = vmul.f32 %v10619_v26, %v10671_v58  ;;  %v6605_v36 = vadd.f32 %v10678_v54, %v6569_v28 }
 0x5d5   : > { %v6632_v56 = vadd.f32 %v6600_v14, %v6190_v50  ;;  %v6191_v61 = vadd.f32 %v10685_v43, %v6155_v22  ;;  %v6572_v22 = vmul.f32 %v10671_v58, %v10621_v51 }
 0x5d6   : > { %v6666_v12 = vmax.f32 %v6634_v13, 0.0  ;;  %v6635_v46 = vadd.f32 %v6603_v8, %v6193_v21  ;;  %v6610_v26 = vadd.f32 %v10678_v54, %v6574_v0 }
 0x5d7   : > { %v6664_v15 = vmax.f32 %v6632_v56, 0.0  ;;  %v6633_v23 = vadd.f32 %v6601_v45, %v6191_v61  ;;  %v8387_v35 = vpop.f32.mrb[20].mxu1  ;;  %v6575_v61 = vmul.f32 %v10623_v27, %v10671_v58 }
 0x5d8   : > { %6698 = vst.msk [vmem:[%s10706_s19 + $0x10] sm:$0xff] %vm3227_vm2, %v6666_v12  ;;  %v6667_v42 = vmax.f32 %v6635_v46, 0.0  ;;  %v6160_v10 = vmul.f32 %v8387_v35, %v10681_v47  ;;  %v6007_v1 = vpop.f32.mrb[21].mxu1  ;;  %v6608_v46 = vadd.f32 %v10678_v54, %v6572_v22 }
 0x5d9   : > { %6696 = vst.msk [vmem:[%s10706_s19] sm:$0xff] %vm3227_vm2, %v6664_v15  ;;  %v6665_v53 = vmax.f32 %v6633_v23, 0.0  ;;  %v6158_v34 = vmul.f32 %v10681_v47, %v6007_v1  ;;  %v8388_v11 = vpop.f32.mrb[22].mxu1  ;;  %v6573_v15 = vmul.f32 %v10671_v58, %v10625_v30  ;;  %v6611_v1 = vadd.f32 %v10678_v54, %v6575_v61 }
 0x5da   : > { %6699 = vst.msk [vmem:[%s10706_s19 + $0x18] sm:$0xff] %vm3227_vm2, %v6667_v42  ;;  %v6196_v59 = vadd.f32 %v10685_v43, %v6160_v10  ;;  %v6161_v62 = vmul.f32 %v8388_v11, %v10681_v47  ;;  %v6010_v24 = vpop.f32.mrb[23].mxu1  ;;  %v6582_v61 = vmul.f32 %v10635_v6, %v10671_v58 }
 0x5db   : > { %6697 = vst.msk [vmem:[%s10706_s19 + $0x8] sm:$0xff] %vm3227_vm2, %v6665_v53  ;;  %v6194_v14 = vadd.f32 %v10685_v43, %v6158_v34  ;;  %v6159_v5 = vmul.f32 %v10681_v47, %v6010_v24  ;;  %v6609_v28 = vadd.f32 %v10678_v54, %v6573_v15 }
 0x5dc   : > { %v6638_v32 = vadd.f32 %v6606_v3, %v6196_v59  ;;  %v6197_v44 = vadd.f32 %v10685_v43, %v6161_v62  ;;  %v6576_v59 = vmul.f32 %v10671_v58, %v10629_v38  ;;  %v6618_v6 = vadd.f32 %v10678_v54, %v6582_v61 }
 0x5dd   : > { %v6636_v25 = vadd.f32 %v6604_v17, %v6194_v14  ;;  %v6195_v50 = vadd.f32 %v10685_v43, %v6159_v5  ;;  %v6578_v17 = vmul.f32 %v10627_v37, %v10671_v58 }
 0x5de   : > { %v6670_v8 = vmax.f32 %v6638_v32, 0.0  ;;  %v6639_v13 = vadd.f32 %v6607_v55, %v6197_v44  ;;  %v6579_v44 = vmul.f32 %v10631_v39, %v10671_v58 }
 0x5df   : > { %v6668_v21 = vmax.f32 %v6636_v25, 0.0  ;;  %v6637_v7 = vadd.f32 %v6605_v36, %v6195_v50  ;;  %v8391_v45 = vpop.f32.mrb[24].mxu1  ;;  %v6614_v37 = vadd.f32 %v10678_v54, %v6578_v17  ;;  %v6612_v25 = vadd.f32 %v10678_v54, %v6576_v59 }
 0x5e0   : > { %6702 = vst.msk [vmem:[%s10706_s19 + $0x30] sm:$0xff] %vm3227_vm2, %v6670_v8  ;;  %v6671_v56 = vmax.f32 %v6639_v13, 0.0  ;;  %v6164_v40 = vmul.f32 %v8391_v45, %v10681_v47  ;;  %v6023_v12 = vpop.f32.mrb[25].mxu1  ;;  %v6577_v50 = vmul.f32 %v10671_v58, %v10633_v9 }
 0x5e1   : > { %6700 = vst.msk [vmem:[%s10706_s19 + $0x20] sm:$0xff] %vm3227_vm2, %v6668_v21  ;;  %v6669_v51 = vmax.f32 %v6637_v7, 0.0  ;;  %v6162_v23 = vmul.f32 %v10681_v47, %v6023_v12  ;;  %v8392_v35 = vpop.f32.mrb[26].mxu1 }
 0x5e2   : > { %6703 = vst.msk [vmem:[%s10706_s19 + $0x38] sm:$0xff] %vm3227_vm2, %v6671_v56  ;;  %v6200_v42 = vadd.f32 %v10685_v43, %v6164_v40  ;;  %v6165_v27 = vmul.f32 %v8392_v35, %v10681_v47  ;;  %v6026_v3 = vpop.f32.mrb[27].mxu1  ;;  %v6615_v56 = vadd.f32 %v10678_v54, %v6579_v44  ;;  %v6613_v40 = vadd.f32 %v10678_v54, %v6577_v50 }
 0x5e3   : > { %6701 = vst.msk [vmem:[%s10706_s19 + $0x28] sm:$0xff] %vm3227_vm2, %v6669_v51  ;;  %v6198_v16 = vadd.f32 %v10685_v43, %v6162_v23  ;;  %v6163_v10 = vmul.f32 %v10681_v47, %v6026_v3  ;;  %v6584_v44 = vmul.f32 %v10671_v58, %v10645_v41 }
 0x5e4   : > { %v6642_v30 = vadd.f32 %v6610_v26, %v6200_v42  ;;  %v6201_v53 = vadd.f32 %v10685_v43, %v6165_v27 }
 0x5e5   : > { %v6640_v34 = vadd.f32 %v6608_v46, %v6198_v16  ;;  %v6199_v11 = vadd.f32 %v10685_v43, %v6163_v10  ;;  %v6580_v46 = vmul.f32 %v10671_v58, %v10637_v31  ;;  %v6583_v16 = vmul.f32 %v10639_v33, %v10671_v58 }
 0x5e6   : > { %v6674_v62 = vmax.f32 %v6642_v30, 0.0  ;;  %v6643_v24 = vadd.f32 %v6611_v1, %v6201_v53  ;;  %v6581_v53 = vmul.f32 %v10671_v58, %v10641_v18 }
 0x5e7   : > { %v6672_v14 = vmax.f32 %v6640_v34, 0.0  ;;  %v6641_v5 = vadd.f32 %v6609_v28, %v6199_v11  ;;  %v8395_v55 = vpop.f32.mrb[28].mxu1  ;;  %v6616_v30 = vadd.f32 %v10678_v54, %v6580_v46  ;;  %v6590_v46 = vmul.f32 %v10651_v4, %v10671_v58 }
 0x5e8   : > { %6706 = vst.msk [vmem:[%s10706_s19 + $0x50] sm:$0xff] %vm3227_vm2, %v6674_v62  ;;  %v6675_v32 = vmax.f32 %v6643_v24, 0.0  ;;  %v6168_v0 = vmul.f32 %v8395_v55, %v10681_v47  ;;  %v6039_v36 = vpop.f32.mrb[29].mxu1  ;;  %v6619_v24 = vadd.f32 %v10678_v54, %v6583_v16  ;;  %v6617_v55 = vadd.f32 %v10678_v54, %v6581_v53 }
 0x5e9   : > { %6704 = vst.msk [vmem:[%s10706_s19 + $0x40] sm:$0xff] %vm3227_vm2, %v6672_v14  ;;  %v6673_v38 = vmax.f32 %v6641_v5, 0.0  ;;  %v6166_v22 = vmul.f32 %v10681_v47, %v6039_v36  ;;  %v8396_v8 = vpop.f32.mrb[30].mxu1  ;;  %v6586_v5 = vmul.f32 %v10643_v63, %v10671_v58  ;;  %v6626_v4 = vadd.f32 %v10678_v54, %v6590_v46 }
 0x5ea   : > { %6707 = vst.msk [vmem:[%s10706_s19 + $0x58] sm:$0xff] %vm3227_vm2, %v6675_v32  ;;  %v6204_v13 = vadd.f32 %v10685_v43, %v6168_v0  ;;  %v6169_v39 = vmul.f32 %v8396_v8, %v10681_v47  ;;  %v6042_v21 = vpop.f32.mrb[31].mxu1  ;;  %v6587_v8 = vmul.f32 %v10647_v2, %v10671_v58 }
 0x5eb   : > { %6705 = vst.msk [vmem:[%s10706_s19 + $0x48] sm:$0xff] %vm3227_vm2, %v6673_v38  ;;  %v6202_v7 = vadd.f32 %v10685_v43, %v6166_v22  ;;  %v6167_v45 = vmul.f32 %v10681_v47, %v6042_v21  ;;  %v6622_v63 = vadd.f32 %v10678_v54, %v6586_v5  ;;  %v6620_v21 = vadd.f32 %v10678_v54, %v6584_v44 }
 0x5ec   : > { %v6646_v9 = vadd.f32 %v6614_v37, %v6204_v13  ;;  %v6205_v26 = vadd.f32 %v10685_v43, %v6169_v39  ;;  %v6594_v5 = vmul.f32 %v10659_v20, %v10671_v58  ;;  %v6592_v44 = vmul.f32 %v10671_v58, %v10661_v19 }
 0x5ed   : > { %v6644_v12 = vadd.f32 %v6612_v25, %v6202_v7  ;;  %v6203_v51 = vadd.f32 %v10685_v43, %v6167_v45  ;;  %v6585_v7 = vmul.f32 %v10671_v58, %v10649_v52 }
 0x5ee   : > { %v6678_v15 = vmax.f32 %v6646_v9, 0.0  ;;  %v6647_v23 = vadd.f32 %v6615_v56, %v6205_v26  ;;  %v6630_v20 = vadd.f32 %v10678_v54, %v6594_v5 }
 0x5ef   : > { %v6676_v35 = vmax.f32 %v6644_v12, 0.0  ;;  %v6645_v42 = vadd.f32 %v6613_v40, %v6203_v51  ;;  %v8399_v27 = vpop.f32.mrb[32].mxu1  ;;  %v6623_v12 = vadd.f32 %v10678_v54, %v6587_v8 }
 0x5f0   : > { %6710 = vst.msk [vmem:[%s10706_s19 + $0x70] sm:$0xff] %vm3227_vm2, %v6678_v15  ;;  %v6679_v3 = vmax.f32 %v6647_v23, 0.0  ;;  %v6172_v10 = vmul.f32 %v8399_v27, %v10681_v47  ;;  %v6055_v1 = vpop.f32.mrb[33].mxu1  ;;  %v6621_v15 = vadd.f32 %v10678_v54, %v6585_v7 }
 0x5f1   : > { %6708 = vst.msk [vmem:[%s10706_s19 + $0x60] sm:$0xff] %vm3227_vm2, %v6676_v35  ;;  %v6677_v31 = vmax.f32 %v6645_v42, 0.0  ;;  %v6170_v17 = vmul.f32 %v10681_v47, %v6055_v1  ;;  %v8400_v28 = vpop.f32.mrb[34].mxu1  ;;  %v6588_v42 = vmul.f32 %v10671_v58, %v10653_v48 }
 0x5f2   : > { %6711 = vst.msk [vmem:[%s10706_s19 + $0x78] sm:$0xff] %vm3227_vm2, %v6679_v3  ;;  %v6208_v34 = vadd.f32 %v10685_v43, %v6172_v10  ;;  %v6173_v33 = vmul.f32 %v8400_v28, %v10681_v47  ;;  %v6058_v11 = vpop.f32.mrb[35].mxu1  ;;  %v6589_v28 = vmul.f32 %v10671_v58, %v10657_v29 }
 0x5f3   : > { %6709 = vst.msk [vmem:[%s10706_s19 + $0x68] sm:$0xff] %vm3227_vm2, %v6677_v31  ;;  %v6206_v59 = vadd.f32 %v10685_v43, %v6170_v17  ;;  %v6171_v62 = vmul.f32 %v10681_v47, %v6058_v11  ;;  %v6591_v31 = vmul.f32 %v10655_v60, %v10671_v58  ;;  %v6624_v17 = vadd.f32 %v10678_v54, %v6588_v42 }
 0x5f4   : > { %v6650_v18 = vadd.f32 %v6618_v6, %v6208_v34  ;;  %v6209_v14 = vadd.f32 %v10685_v43, %v6173_v33 }
 0x5f5   : > { %v6648_v32 = vadd.f32 %v6616_v30, %v6206_v59  ;;  %v6207_v37 = vadd.f32 %v10685_v43, %v6171_v62 }
 0x5f6   : > { %v6682_v0 = vmax.f32 %v6650_v18, 0.0  ;;  %v6651_v36 = vadd.f32 %v6619_v24, %v6209_v14  ;;  %v6627_v18 = vadd.f32 %v10678_v54, %v6591_v31 }
 0x5f7   : > { %v6680_v38 = vmax.f32 %v6648_v32, 0.0  ;;  %v6649_v25 = vadd.f32 %v6617_v55, %v6207_v37  ;;  %v8403_v50 = vpop.f32.mrb[36].mxu1  ;;  %v6625_v55 = vadd.f32 %v10678_v54, %v6589_v28 }
 0x5f8   : > { %6714 = vst.msk [vmem:[%s10706_s19 + $0x90] sm:$0xff] %vm3227_vm2, %v6682_v0  ;;  %v6683_v22 = vmax.f32 %v6651_v36, 0.0  ;;  %v6176_v13 = vmul.f32 %v8403_v50, %v10681_v47  ;;  %v6071_v39 = vpop.f32.mrb[37].mxu1 }
 0x5f9   : > { %6712 = vst.msk [vmem:[%s10706_s19 + $0x80] sm:$0xff] %vm3227_vm2, %v6680_v38  ;;  %v6681_v41 = vmax.f32 %v6649_v25, 0.0  ;;  %v6174_v45 = vmul.f32 %v10681_v47, %v6071_v39  ;;  %v8404_v56 = vpop.f32.mrb[38].mxu1  ;;  %v6628_v39 = vadd.f32 %v10678_v54, %v6592_v44 }
 0x5fa   : > { %6715 = vst.msk [vmem:[%s10706_s19 + $0x98] sm:$0xff] %vm3227_vm2, %v6683_v22  ;;  %v6212_v9 = vadd.f32 %v10685_v43, %v6176_v13  ;;  %v6177_v2 = vmul.f32 %v8404_v56, %v10681_v47  ;;  %v6074_v26 = vpop.f32.mrb[39].mxu1 }
 0x5fb   : > { %6713 = vst.msk [vmem:[%s10706_s19 + $0x88] sm:$0xff] %vm3227_vm2, %v6681_v41  ;;  %v6210_v61 = vadd.f32 %v10685_v43, %v6174_v45  ;;  %v6175_v40 = vmul.f32 %v10681_v47, %v6074_v26  ;;  %v6593_v41 = vmul.f32 %v10671_v58, %v10665_v57 }
 0x5fc   : > { %v6654_v52 = vadd.f32 %v6622_v63, %v6212_v9  ;;  %v6213_v51 = vadd.f32 %v10685_v43, %v6177_v2  ;;  %v6595_v63 = vmul.f32 %v10663_v49, %v10671_v58 }
 0x5fd   : > { %v6652_v23 = vadd.f32 %v6620_v21, %v6210_v61  ;;  %v6211_v35 = vadd.f32 %v10685_v43, %v6175_v40  ;;  %v6629_v61 = vadd.f32 %v10678_v54, %v6593_v41 }
 0x5fe   : > { %v6686_v27 = vmax.f32 %v6654_v52, 0.0  ;;  %v6655_v3 = vadd.f32 %v6623_v12, %v6213_v51  ;;  %v6631_v57 = vadd.f32 %v10678_v54, %v6595_v63 }
 0x5ff   : > { %v6684_v6 = vmax.f32 %v6652_v23, 0.0  ;;  %v6653_v16 = vadd.f32 %v6621_v15, %v6211_v35  ;;  %v8407_v10 = vpop.f32.mrb[40].mxu1 }
 0x600   : > { %6718 = vst.msk [vmem:[%s10706_s19 + $0xb0] sm:$0xff] %vm3227_vm2, %v6686_v27  ;;  %v6687_v1 = vmax.f32 %v6655_v3, 0.0  ;;  %v6180_v30 = vmul.f32 %v8407_v10, %v10681_v47  ;;  %v6087_v53 = vpop.f32.mrb[41].mxu1 }
 0x601   : > { %6716 = vst.msk [vmem:[%s10706_s19 + $0xa0] sm:$0xff] %vm3227_vm2, %v6684_v6  ;;  %v6685_v48 = vmax.f32 %v6653_v16, 0.0  ;;  %v6178_v34 = vmul.f32 %v10681_v47, %v6087_v53  ;;  %v8408_v33 = vpop.f32.mrb[42].mxu1 }
 0x602   : > { %6719 = vst.msk [vmem:[%s10706_s19 + $0xb8] sm:$0xff] %vm3227_vm2, %v6687_v1  ;;  %v6216_v11 = vadd.f32 %v10685_v43, %v6180_v30  ;;  %v6181_v60 = vmul.f32 %v8408_v33, %v10681_v47  ;;  %v6090_v59 = vpop.f32.mrb[43].mxu1 }
 0x603   : > { %6717 = vst.msk [vmem:[%s10706_s19 + $0xa8] sm:$0xff] %vm3227_vm2, %v6685_v48  ;;  %v6214_v62 = vadd.f32 %v10685_v43, %v6178_v34  ;;  %v6179_v24 = vmul.f32 %v10681_v47, %v6090_v59 }
 0x604   : > { %v6658_v29 = vadd.f32 %v6626_v4, %v6216_v11  ;;  %v6217_v14 = vadd.f32 %v10685_v43, %v6181_v60 }
 0x605   : > { %v6656_v32 = vadd.f32 %v6624_v17, %v6214_v62  ;;  %v6215_v37 = vadd.f32 %v10685_v43, %v6179_v24 }
 0x606   : > { %v6690_v0 = vmax.f32 %v6658_v29, 0.0  ;;  %v6659_v36 = vadd.f32 %v6627_v18, %v6217_v14 }
 0x607   : > { %v6688_v38 = vmax.f32 %v6656_v32, 0.0  ;;  %v6657_v25 = vadd.f32 %v6625_v55, %v6215_v37  ;;  %v8411_v50 = vpop.f32.mrb[44].mxu1 }
 0x608   : > { %6722 = vst.msk [vmem:[%s10706_s19 + $0xd0] sm:$0xff] %vm3227_vm2, %v6690_v0  ;;  %v6691_v22 = vmax.f32 %v6659_v36, 0.0  ;;  %v6184_v8 = vmul.f32 %v8411_v50, %v10681_v47  ;;  %v6103_v13 = vpop.f32.mrb[45].mxu1 }
 0x609   : > { %6720 = vst.msk [vmem:[%s10706_s19 + $0xc0] sm:$0xff] %vm3227_vm2, %v6688_v38  ;;  %v6689_v19 = vmax.f32 %v6657_v25, 0.0  ;;  %v6182_v21 = vmul.f32 %v10681_v47, %v6103_v13  ;;  %v8412_v7 = vpop.f32.mrb[46].mxu1 }
 0x60a   : > { %6723 = vst.msk [vmem:[%s10706_s19 + $0xd8] sm:$0xff] %vm3227_vm2, %v6691_v22  ;;  %v6220_v49 = vadd.f32 %v10685_v43, %v6184_v8  ;;  %v6185_v45 = vmul.f32 %v8412_v7, %v10681_v47  ;;  %v6106_v56 = vpop.f32.mrb[47].mxu1 }
 0x60b   : > { %6721 = vst.msk [vmem:[%s10706_s19 + $0xc8] sm:$0xff] %vm3227_vm2, %v6689_v19  ;;  %v6218_v9 = vadd.f32 %v10685_v43, %v6182_v21  ;;  %v6183_v2 = vmul.f32 %v10681_v47, %v6106_v56 }
 0x60c   : > { %v6662_v58 = vadd.f32 %v6630_v20, %v6220_v49  ;;  %v6221_v26 = vadd.f32 %v10685_v43, %v6185_v45 }
 0x60d   : > { %v6660_v40 = vadd.f32 %v6628_v39, %v6218_v9  ;;  %v6219_v12 = vadd.f32 %v10685_v43, %v6183_v2 }
 0x60e   : > { %v6694_v52 = vmax.f32 %v6662_v58, 0.0  ;;  %v6663_v51 = vadd.f32 %v6631_v57, %v6221_v26 }
 0x60f   : > { %v6692_v47 = vmax.f32 %v6660_v40, 0.0  ;;  %v6661_v46 = vadd.f32 %v6629_v61, %v6219_v12 }
 0x610   : > { %6726 = vst.msk [vmem:[%s10706_s19 + $0xf0] sm:$0xff] %vm3227_vm2, %v6694_v52  ;;  %v6695_v15 = vmax.f32 %v6663_v51, 0.0 }
 0x611   : > { %6724 = vst.msk [vmem:[%s10706_s19 + $0xe0] sm:$0xff] %vm3227_vm2, %v6692_v47  ;;  %v6693_v54 = vmax.f32 %v6661_v46, 0.0 }
 0x612   : > { %6727 = vst.msk [vmem:[%s10706_s19 + $0xf8] sm:$0xff] %vm3227_vm2, %v6695_v15 }
 0x613   : > { %6725 = vst.msk [vmem:[%s10706_s19 + $0xe8] sm:$0xff] %vm3227_vm2, %v6693_v54 }
 0x614   : > { %9092 = shalt.err (!%p9089_p3)
}
 0x615   : > { %s9093_s15 = scalar_lea.hbm %s10907_s29, 4096  ;;  %s9097_s18 = scalar_lea.hbm %s10967_s7, 8192 }
 0x616   : > { %p9094_p4 = scmp.ne.s32.totalorder %s10907_s29, %s9093_s15  ;;  %p9098_p9 = scmp.lt.u32.totalorder %s10907_s29, %s10967_s7 }
 0x617   : > { %p9099_p10 = scmp.lt.u32.totalorder %s9097_s18, %s9093_s15  ;;  %p9101_p12 = scmp.lt.u32.totalorder %s9093_s15, %s10907_s29 }
 0x618   : > { %p9095_p7 = pnand %p9094_p4, %p9225_p5 }
 0x619   : > { %p9100_p11 = por %p9099_p10, %p9098_p9 }
 0x61a   : > { %p9096_p8 = pneg %p9095_p7 }
 0x61b   : > { %p9102_p13 = por %p9101_p12, %p9100_p11 }
 0x61d   : > { %p9103_p0 = pnand %p9102_p13, %p9096_p8 }
 0x61f   : > { %9106 = shalt.err (!%p9103_p0)
}
 0x620   : > { %s9145_s22 = smov 128   ;;  %s9146_s23 = smov 8  }
 0x621   : > { %8965 = dma.vmem_to_hbm [thread:$0]  (%p9225_p5), %s10909_s21, 4096, %s10907_s29, %s10919_s28, %s9145_s22, %s9145_s22, %s9146_s23  }
 0x622 PF: > { %p8971_p1 = scmp.ge.s32.totalorder %s9141_s27, 2  ;;  %s6757_s8 = sand.u32 1, %s9129_s24  }
 0x623   : > { %s6758_s9 = scalar_lea.sflag [#allocation5], %s6757_s8 }
 0x624   : > { %p8968_p2 = pnand %p8971_p1, %p9229_p6 }
 0x626   : > { %9124 = dma.done.wait (!%p8968_p2), %s6758_s9, 4096  }
 0x627   : > { %9126 = vsyncadd (!%p8968_p2), %s6758_s9, 4294963200  ;;  %p17_p3 = scmp.ge.s32.totalorder %s9212_s30, 4   ;;  %s10970_s24 = smov %s9133_s25 }
 0x628   : > { %s10971_s25 = smov %s9137_s26  ;;  %s10972_s26 = smov %s9223_s10 }
 0x629   : > { %s10973_s27 = smov %s9212_s30  ;;  %19 = sbr.rel (!%p17_p3) target bundleno = 3 (0x3), region = 103 }
 0x630   :  { %6763 = vsyncpa [#allocation5], 1 }
 0x631   :  { %6765 = vsyncpa [#allocation5 + $0x1], 1 }

</bundles_post_ra>
